<compile_context>
chip_gen: v7x
topology: tpu7x:2x2x1
jax: 0.10.0
libtpu: 0.0.40
codegen_flags: <defaults>
</compile_context>

<pallas_src>
import functools
import math

import jax
import jax.numpy as jnp
from jax.experimental import pallas as pl
from jax.experimental.pallas import tpu as pltpu


# ----------------------------------------------------------------------------
# Kernel
# ----------------------------------------------------------------------------
def _layer_norm(x, gamma, beta, eps=1e-5):
    # Single-pass LayerNorm: mean and E[x^2] in one sweep over D.
    mean = jnp.mean(x, axis=-1, keepdims=True)
    msq = jnp.mean(x * x, axis=-1, keepdims=True)
    var = jnp.maximum(msq - mean * mean, 0.0)
    return (x - mean) * jax.lax.rsqrt(var + eps) * gamma + beta


def encoder_stack_kernel(
    x_ref,                                               # (bt*S, D)  f32
    wq_ref, bq_ref, wk_ref, bk_ref, wv_ref, bv_ref,      # stacked per-block
    wo_ref, bo_ref,
    g1_ref, be1_ref,
    w1_ref, b1_ref, w2_ref, b2_ref,
    g2_ref, be2_ref,
    wkv_ref, bkv_ref,                                    # fused K/V projection
    kv_ref,                                              # (bt*S, d_k+d_v) out
    act_ref,                                             # VMEM scratch carry
    *, bt, S, h, d_k, d_v,
):
    l = pl.program_id(1)                                 # encoder-block index
    last = pl.num_programs(1) - 1

    @pl.when(l == 0)
    def _():
        act_ref[...] = x_ref[...]                        # load embeddings once

    x = act_ref[...]                                     # (bt*S, D) f32 carry
    xb = x.astype(jnp.bfloat16)

    # ----- multi-head self-attention -------------------------------------
    scale = 1.0 / jnp.sqrt(jnp.float32(d_k))
    q = jnp.dot(xb, wq_ref[0], preferred_element_type=jnp.float32) + bq_ref[0]
    k = jnp.dot(xb, wk_ref[0], preferred_element_type=jnp.float32) + bk_ref[0]
    v = jnp.dot(xb, wv_ref[0], preferred_element_type=jnp.float32) + bv_ref[0]

    q = (q * scale).astype(jnp.bfloat16).reshape(bt, S, h * d_k)
    k = k.astype(jnp.bfloat16).reshape(bt, S, h * d_k)
    v = v.astype(jnp.bfloat16).reshape(bt, S, h * d_v)

    wo = wo_ref[0]                                       # (h*d_v, D) bf16
    attn = None
    for i in range(h):  # h is small & static -> unrolled; batched over bt
        qh = q[:, :, i * d_k:(i + 1) * d_k]              # (bt, S, d_k)
        kh = k[:, :, i * d_k:(i + 1) * d_k]
        vh = v[:, :, i * d_v:(i + 1) * d_v]
        s = jnp.einsum("bqd,bkd->bqk", qh, kh,
                       preferred_element_type=jnp.float32)   # (bt, S, S) f32
        s = s - jnp.max(s, axis=-1, keepdims=True)
        p = jnp.exp(s)
        p = p * pl.reciprocal(jnp.sum(p, axis=-1, keepdims=True), approx=True)
        pv = jnp.einsum("bqk,bkd->bqd", p.astype(jnp.bfloat16), vh,
                        preferred_element_type=jnp.float32)  # (bt, S, d_v)
        # Fold the head-concat into the output projection (no lane concat).
        part = jnp.dot(pv.reshape(bt * S, d_v).astype(jnp.bfloat16),
                       wo[i * d_v:(i + 1) * d_v, :],
                       preferred_element_type=jnp.float32)   # (bt*S, D)
        attn = part if attn is None else attn + part
    attn = attn + bo_ref[0]

    y1 = _layer_norm(x + attn, g1_ref[0], be1_ref[0])

    # ----- position-wise feed-forward -------------------------------------
    # Fused bias + ReLU + bf16 cast: the f32 (bt*S, d_ff) temp never persists.
    hid = jnp.maximum(
        jnp.dot(y1.astype(jnp.bfloat16), w1_ref[0],
                preferred_element_type=jnp.float32) + b1_ref[0],
        0.0,
    ).astype(jnp.bfloat16)
    ff = jnp.dot(hid, w2_ref[0], preferred_element_type=jnp.float32) + b2_ref[0]
    y2 = _layer_norm(y1 + ff, g2_ref[0], be2_ref[0])

    @pl.when(l < last)                                   # skip dead carry store
    def _():
        act_ref[...] = y2

    # ----- fused K/V output projection on the final block -----------------
    @pl.when(l == last)
    def _():
        kv_ref[...] = (jnp.dot(y2.astype(jnp.bfloat16), wkv_ref[...],
                               preferred_element_type=jnp.float32)
                       + bkv_ref[...])


# ----------------------------------------------------------------------------
# Wrapper
# ----------------------------------------------------------------------------
def _vmem_limit_bytes(default=48 * 1024 * 1024):
    """Chip-aware VMEM limit (v7x has 64 MiB/TC); safe fallback if query fails."""
    try:
        info = pltpu.get_tpu_info()
        cap = getattr(info, "vmem_capacity_bytes", None)
        if not cap:
            return default
        return int(min(max(cap * 3 // 4, 32 * 1024 * 1024), 100 * 1024 * 1024))
    except Exception:
        return default


def _per_block_weight_bytes(params):
    names = ["wq", "bq", "wk", "bk", "wv", "bv", "wo", "bo",
             "ln1_g", "ln1_b", "w1", "b1", "w2", "b2", "ln2_g", "ln2_b"]
    total = 0
    for n in names:
        a = params[n]
        total += math.prod(a.shape[1:]) * a.dtype.itemsize
    total += math.prod(params["wkv_out"].shape) * params["wkv_out"].dtype.itemsize
    total += math.prod(params["bkv_out"].shape) * params["bkv_out"].dtype.itemsize
    return total


def _estimate_vmem_bytes(bt, S, D, d_ff, h, d_k, d_v, d_kv, wblock_bytes):
    rows = bt * S
    act = rows * D * 4                              # carry scratch
    xin = 2 * rows * D * 4                          # double-buffered input
    out = 2 * rows * d_kv * 4                       # double-buffered output
    qkv = rows * (2 * h * d_k + h * d_v) * 2        # bf16 q, k, v
    scores = bt * S * S * 4 * 2                     # per-head scores + probs
    hid = rows * d_ff * (4 + 2)                     # transient f32 + bf16 copy
    temps = rows * D * 4 * 3                        # attn / y1 / y2
    weights = 2 * wblock_bytes                      # double-buffered weights
    return act + xin + out + qkv + scores + hid + temps + weights


def _pick_batch_tile(B, S, D, d_ff, h, d_k, d_v, d_kv, wblock_bytes, budget):
    """Prefer a single batch tile (bt=B): the weight stack is then streamed
    exactly once.  Only split the batch if the activation slab would not fit
    the VMEM budget."""
    for bt in range(B, 0, -1):
        if B % bt != 0:
            continue
        if _estimate_vmem_bytes(bt, S, D, d_ff, h, d_k, d_v, d_kv,
                                wblock_bytes) <= budget:
            return bt
    return 1


def transformer_encoder1(embeddings, params, *, h, d_k, d_v, batch_tile=None):
    B, S, D = embeddings.shape
    L = params["wq"].shape[0]
    d_ff = params["w1"].shape[-1]
    d_kv = d_k + d_v

    vmem_limit = _vmem_limit_bytes()
    if batch_tile is not None:
        bt = batch_tile
    else:
        bt = _pick_batch_tile(B, S, D, d_ff, h, d_k, d_v, d_kv,
                              _per_block_weight_bytes(params),
                              int(vmem_limit * 0.7))
    assert B % bt == 0
    rows = bt * S

    # Host-side fold of (B, S) -> rows; free (contiguous dims) and removes the
    # in-kernel reshapes at l==0 and before the kv store.
    x2 = embeddings.reshape(B * S, D)

    stacked = [
        params["wq"], params["bq"], params["wk"], params["bk"],
        params["wv"], params["bv"], params["wo"], params["bo"],
        params["ln1_g"], params["ln1_b"],
        params["w1"], params["b1"], params["w2"], params["b2"],
        params["ln2_g"], params["ln2_b"],
    ]

    def stacked_spec(w):  # per-block slice, streamed along the block grid axis
        return pl.BlockSpec((1,) + w.shape[1:],
                            lambda b, l, nd=w.ndim: (l,) + (0,) * (nd - 1))

    def const_spec(w):    # grid-invariant (loaded once)
        return pl.BlockSpec(w.shape, lambda b, l, nd=w.ndim: (0,) * nd)

    kernel = functools.partial(encoder_stack_kernel,
                               bt=bt, S=S, h=h, d_k=d_k, d_v=d_v)

    kv = pl.pallas_call(
        kernel,
        out_shape=jax.ShapeDtypeStruct((B * S, d_kv), jnp.float32),
        grid_spec=pltpu.PrefetchScalarGridSpec(
            num_scalar_prefetch=0,
            grid=(B // bt, L),
            in_specs=[pl.BlockSpec((rows, D), lambda b, l: (b, 0))]
                     + [stacked_spec(w) for w in stacked]
                     + [const_spec(params["wkv_out"]),
                        const_spec(params["bkv_out"])],
            out_specs=pl.BlockSpec((rows, d_kv), lambda b, l: (b, 0)),
            scratch_shapes=[pltpu.VMEM((rows, D), jnp.float32)],
        ),
        compiler_params=pltpu.CompilerParams(
            dimension_semantics=("parallel", "arbitrary"),
            vmem_limit_bytes=vmem_limit,
        ),
    )(x2, *stacked, params["wkv_out"], params["bkv_out"])

    kv = kv.reshape(B, S, d_kv)
    return kv[..., :d_k], kv[..., d_k:]


# ----------------------------------------------------------------------------
# Deterministic parameter construction (weights stored bf16, biases/LN f32)
# ----------------------------------------------------------------------------
def make_params(key, *, d_model, h, d_k, d_v, d_ff, n_blocks):
    def lin(key, din, dout, scale=0.02):
        kw, kb = jax.random.split(key)
        w = (scale * jax.random.normal(kw, (din, dout), jnp.float32)
             ).astype(jnp.bfloat16)
        b = scale * jax.random.normal(kb, (1, dout), jnp.float32)
        return w, b

    keys = jax.random.split(key, n_blocks + 1)
    blocks = {n: [] for n in
              ["wq", "bq", "wk", "bk", "wv", "bv", "wo", "bo",
               "ln1_g", "ln1_b", "w1", "b1", "w2", "b2", "ln2_g", "ln2_b"]}
    for i in range(n_blocks):
        ks = jax.random.split(keys[i], 6)
        for (wn, bn), (w, b) in zip(
            [("wq", "bq"), ("wk", "bk"), ("wv", "bv")],
            [lin(ks[0], d_model, h * d_k), lin(ks[1], d_model, h * d_k),
             lin(ks[2], d_model, h * d_v)],
        ):
            blocks[wn].append(w)
            blocks[bn].append(b)
        wo, bo = lin(ks[3], h * d_v, d_model)
        w1, b1 = lin(ks[4], d_model, d_ff)
        w2, b2 = lin(ks[5], d_ff, d_model)
        blocks["wo"].append(wo); blocks["bo"].append(bo)
        blocks["w1"].append(w1); blocks["b1"].append(b1)
        blocks["w2"].append(w2); blocks["b2"].append(b2)
        blocks["ln1_g"].append(jnp.ones((1, d_model), jnp.float32))
        blocks["ln1_b"].append(jnp.zeros((1, d_model), jnp.float32))
        blocks["ln2_g"].append(jnp.ones((1, d_model), jnp.float32))
        blocks["ln2_b"].append(jnp.zeros((1, d_model), jnp.float32))

    params = {name: jnp.stack(vals, axis=0) for name, vals in blocks.items()}

    # Fused output projections: [W_keys | W_values] concatenated along columns.
    ks = jax.random.split(keys[-1], 2)
    wk_out, bk_out = lin(ks[0], d_model, d_k)
    wv_out, bv_out = lin(ks[1], d_model, d_v)
    params["wkv_out"] = jnp.concatenate([wk_out, wv_out], axis=-1)
    params["bkv_out"] = jnp.concatenate([bk_out, bv_out], axis=-1)
    return params


# ----------------------------------------------------------------------------
# Pure-JAX reference (f32 activations, same bf16-stored weights)
# ----------------------------------------------------------------------------
def reference_forward(embeddings, params, *, h, d_k, d_v):
    f32 = jnp.float32

    def ln(x, g, b, eps=1e-5):
        m = jnp.mean(x, -1, keepdims=True)
        v = jnp.mean((x - m) ** 2, -1, keepdims=True)
        return (x - m) / jnp.sqrt(v + eps) * g + b

    x = embeddings
    B, S, D = x.shape
    L = params["wq"].shape[0]
    for l in range(L):
        q = x @ params["wq"][l].astype(f32) + params["bq"][l]
        k = x @ params["wk"][l].astype(f32) + params["bk"][l]
        v = x @ params["wv"][l].astype(f32) + params["bv"][l]
        qh = q.reshape(B, S, h, d_k).transpose(0, 2, 1, 3)
        kh = k.reshape(B, S, h, d_k).transpose(0, 2, 1, 3)
        vh = v.reshape(B, S, h, d_v).transpose(0, 2, 1, 3)
        s = (qh @ kh.transpose(0, 1, 3, 2)) / jnp.sqrt(f32(d_k))
        p = jax.nn.softmax(s, axis=-1)
        o = (p @ vh).transpose(0, 2, 1, 3).reshape(B, S, h * d_v)
        attn = o @ params["wo"][l].astype(f32) + params["bo"][l]
        y1 = ln(x + attn, params["ln1_g"][l], params["ln1_b"][l])
        hid = jnp.maximum(y1 @ params["w1"][l].astype(f32) + params["b1"][l], 0.0)
        ff = hid @ params["w2"][l].astype(f32) + params["b2"][l]
        x = ln(y1 + ff, params["ln2_g"][l], params["ln2_b"][l])
    kv = x @ params["wkv_out"].astype(f32) + params["bkv_out"]
    return kv[..., :d_k], kv[..., d_k:]


# ----------------------------------------------------------------------------
if __name__ == "__main__":
    # Small TPU-friendly configuration consistent with the module structure
    # (original defaults: d_model=512, h=8, d_k=d_v=64, d_ff=2048, 6 blocks).
    d_model, h, d_k, d_v, d_ff, n_blocks = 256, 4, 64, 64, 512, 2
    B, S = 2, 16

    # TODO(synk): EncoderBlock internals are not shown in the reference file;
    # canonical Vaswani encoder-block semantics (post-LN, ReLU FFN, no dropout
    # at inference) are implemented here.

    key = jax.random.PRNGKey(0)
    k_emb, k_par = jax.random.split(key)
    embeddings = jax.random.normal(k_emb, (B, S, d_model), jnp.float32)
    params = make_params(k_par, d_model=d_model, h=h, d_k=d_k, d_v=d_v,
                         d_ff=d_ff, n_blocks=n_blocks)

    K, V = transformer_encoder1(embeddings, params, h=h, d_k=d_k, d_v=d_v)
    jax.block_until_ready((K, V))

    assert K.shape == (B, S, d_k) and V.shape == (B, S, d_v)
    assert jnp.all(jnp.isfinite(K)) and jnp.all(jnp.isfinite(V))

    # Loose-tolerance check vs. a pure-JAX reference (bf16 weights / f32 ref
    # activations; kernel uses bf16 matmul operands + approx reciprocal).
    K_ref, V_ref = reference_forward(embeddings, params, h=h, d_k=d_k, d_v=d_v)
    max_diff = float(jnp.maximum(jnp.max(jnp.abs(K - K_ref)),
                                 jnp.max(jnp.abs(V - V_ref))))
    assert max_diff < 5e-2, f"max abs diff vs reference too large: {max_diff}"

    print("KERNEL_OK")
</pallas_src>

<mosaic_0001>
module attributes {stable_mosaic.version = 11 : i64} {
  func.func @encoder_stack_kernel(%arg0: i32, %arg1: i32, %arg2: memref<32x256xf32, #tpu.memory_space<vmem>>, %arg3: memref<1x256x256xbf16, #tpu.memory_space<vmem>>, %arg4: memref<1x1x256xf32, #tpu.memory_space<vmem>>, %arg5: memref<1x256x256xbf16, #tpu.memory_space<vmem>>, %arg6: memref<1x1x256xf32, #tpu.memory_space<vmem>>, %arg7: memref<1x256x256xbf16, #tpu.memory_space<vmem>>, %arg8: memref<1x1x256xf32, #tpu.memory_space<vmem>>, %arg9: memref<1x256x256xbf16, #tpu.memory_space<vmem>>, %arg10: memref<1x1x256xf32, #tpu.memory_space<vmem>>, %arg11: memref<1x1x256xf32, #tpu.memory_space<vmem>>, %arg12: memref<1x1x256xf32, #tpu.memory_space<vmem>>, %arg13: memref<1x256x512xbf16, #tpu.memory_space<vmem>>, %arg14: memref<1x1x512xf32, #tpu.memory_space<vmem>>, %arg15: memref<1x512x256xbf16, #tpu.memory_space<vmem>>, %arg16: memref<1x1x256xf32, #tpu.memory_space<vmem>>, %arg17: memref<1x1x256xf32, #tpu.memory_space<vmem>>, %arg18: memref<1x1x256xf32, #tpu.memory_space<vmem>>, %arg19: memref<256x128xbf16, #tpu.memory_space<vmem>>, %arg20: memref<1x128xf32, #tpu.memory_space<vmem>>, %arg21: memref<32x128xf32, #tpu.memory_space<vmem>>, %arg22: memref<32x256xf32, #tpu.memory_space<vmem>>) attributes {dimension_semantics = [#tpu.dimension_semantics<parallel>, #tpu.dimension_semantics<arbitrary>], iteration_bounds = array<i64: 1, 2>, scalar_prefetch = 0 : i64, scratch_operands = 1 : i64, tpu.core_type = #tpu.core_type<tc>, window_params = [{transform_indices = @transform_0, window_bounds = array<i64: 32, 256>}, {transform_indices = @transform_1, window_bounds = array<i64: 1, 256, 256>}, {transform_indices = @transform_2, window_bounds = array<i64: 1, 1, 256>}, {transform_indices = @transform_3, window_bounds = array<i64: 1, 256, 256>}, {transform_indices = @transform_4, window_bounds = array<i64: 1, 1, 256>}, {transform_indices = @transform_5, window_bounds = array<i64: 1, 256, 256>}, {transform_indices = @transform_6, window_bounds = array<i64: 1, 1, 256>}, {transform_indices = @transform_7, window_bounds = array<i64: 1, 256, 256>}, {transform_indices = @transform_8, window_bounds = array<i64: 1, 1, 256>}, {transform_indices = @transform_9, window_bounds = array<i64: 1, 1, 256>}, {transform_indices = @transform_10, window_bounds = array<i64: 1, 1, 256>}, {transform_indices = @transform_11, window_bounds = array<i64: 1, 256, 512>}, {transform_indices = @transform_12, window_bounds = array<i64: 1, 1, 512>}, {transform_indices = @transform_13, window_bounds = array<i64: 1, 512, 256>}, {transform_indices = @transform_14, window_bounds = array<i64: 1, 1, 256>}, {transform_indices = @transform_15, window_bounds = array<i64: 1, 1, 256>}, {transform_indices = @transform_16, window_bounds = array<i64: 1, 1, 256>}, {pipeline_mode = #tpu.pipeline_mode<synchronous>, transform_indices = @transform_17, window_bounds = array<i64: 256, 128>}, {pipeline_mode = #tpu.pipeline_mode<synchronous>, transform_indices = @transform_18, window_bounds = array<i64: 1, 128>}, {transform_indices = @transform_19, window_bounds = array<i64: 32, 128>}]} {
    %c0_i32 = arith.constant 0 : i32
    %0 = arith.cmpi eq, %arg1, %c0_i32 : i32
    %1 = arith.extui %0 : i1 to i32
    %c0_i32_0 = arith.constant 0 : i32
    %2 = arith.cmpi ne, %1, %c0_i32_0 : i32
    scf.if %2 {
      %c0_92 = arith.constant 0 : index
      %c0_93 = arith.constant 0 : index
      %207 = vector.load %arg2[%c0_92, %c0_93] : memref<32x256xf32, #tpu.memory_space<vmem>>, vector<32x256xf32>
      %c0_94 = arith.constant 0 : index
      %c0_95 = arith.constant 0 : index
      %208 = vector.load %arg22[%c0_94, %c0_95] : memref<32x256xf32, #tpu.memory_space<vmem>>, vector<32x256xf32>
      tpu.vector_store %arg22[%c0_94, %c0_95], %207 {strides = array<i32>} : memref<32x256xf32, #tpu.memory_space<vmem>>, vector<32x256xf32>,
    } else {
    }
    %c0 = arith.constant 0 : index
    %c0_1 = arith.constant 0 : index
    %3 = vector.load %arg22[%c0, %c0_1] : memref<32x256xf32, #tpu.memory_space<vmem>>, vector<32x256xf32>
    %4 = arith.truncf %3 : vector<32x256xf32> to vector<32x256xbf16>
    %cst = arith.constant 6.400000e+01 : f32
    %5 = math.sqrt %cst : f32
    %cst_2 = arith.constant 1.000000e+00 : f32
    %6 = arith.divf %cst_2, %5 : f32
    %c0_3 = arith.constant 0 : index
    %c0_4 = arith.constant 0 : index
    %c0_5 = arith.constant 0 : index
    %7 = vector.load %arg3[%c0_3, %c0_4, %c0_5] : memref<1x256x256xbf16, #tpu.memory_space<vmem>>, vector<1x256x256xbf16>
    %8 = vector.shape_cast %7 : vector<1x256x256xbf16> to vector<256x256xbf16>
    %cst_6 = arith.constant dense<0.000000e+00> : vector<32x256xf32>
    %9 = tpu.matmul %4, %8, %cst_6 {dimension_numbers = #tpu.dot_dimension_numbers<[1], [0], [0], [1], [0, 0, 1, 1], [], []>} : vector<32x256xbf16>, vector<256x256xbf16>, vector<32x256xf32> -> vector<32x256xf32>
    %c0_7 = arith.constant 0 : index
    %c0_8 = arith.constant 0 : index
    %c0_9 = arith.constant 0 : index
    %10 = vector.load %arg4[%c0_7, %c0_8, %c0_9] : memref<1x1x256xf32, #tpu.memory_space<vmem>>, vector<1x1x256xf32>
    %11 = vector.shape_cast %10 : vector<1x1x256xf32> to vector<1x256xf32>
    %12 = vector.broadcast %11 : vector<1x256xf32> to vector<32x256xf32>
    %13 = arith.addf %9, %12 : vector<32x256xf32>
    %c0_10 = arith.constant 0 : index
    %c0_11 = arith.constant 0 : index
    %c0_12 = arith.constant 0 : index
    %14 = vector.load %arg5[%c0_10, %c0_11, %c0_12] : memref<1x256x256xbf16, #tpu.memory_space<vmem>>, vector<1x256x256xbf16>
    %15 = vector.shape_cast %14 : vector<1x256x256xbf16> to vector<256x256xbf16>
    %cst_13 = arith.constant dense<0.000000e+00> : vector<32x256xf32>
    %16 = tpu.matmul %4, %15, %cst_13 {dimension_numbers = #tpu.dot_dimension_numbers<[1], [0], [0], [1], [0, 0, 1, 1], [], []>} : vector<32x256xbf16>, vector<256x256xbf16>, vector<32x256xf32> -> vector<32x256xf32>
    %c0_14 = arith.constant 0 : index
    %c0_15 = arith.constant 0 : index
    %c0_16 = arith.constant 0 : index
    %17 = vector.load %arg6[%c0_14, %c0_15, %c0_16] : memref<1x1x256xf32, #tpu.memory_space<vmem>>, vector<1x1x256xf32>
    %18 = vector.shape_cast %17 : vector<1x1x256xf32> to vector<1x256xf32>
    %19 = vector.broadcast %18 : vector<1x256xf32> to vector<32x256xf32>
    %20 = arith.addf %16, %19 : vector<32x256xf32>
    %c0_17 = arith.constant 0 : index
    %c0_18 = arith.constant 0 : index
    %c0_19 = arith.constant 0 : index
    %21 = vector.load %arg7[%c0_17, %c0_18, %c0_19] : memref<1x256x256xbf16, #tpu.memory_space<vmem>>, vector<1x256x256xbf16>
    %22 = vector.shape_cast %21 : vector<1x256x256xbf16> to vector<256x256xbf16>
    %cst_20 = arith.constant dense<0.000000e+00> : vector<32x256xf32>
    %23 = tpu.matmul %4, %22, %cst_20 {dimension_numbers = #tpu.dot_dimension_numbers<[1], [0], [0], [1], [0, 0, 1, 1], [], []>} : vector<32x256xbf16>, vector<256x256xbf16>, vector<32x256xf32> -> vector<32x256xf32>
    %c0_21 = arith.constant 0 : index
    %c0_22 = arith.constant 0 : index
    %c0_23 = arith.constant 0 : index
    %24 = vector.load %arg8[%c0_21, %c0_22, %c0_23] : memref<1x1x256xf32, #tpu.memory_space<vmem>>, vector<1x1x256xf32>
    %25 = vector.shape_cast %24 : vector<1x1x256xf32> to vector<1x256xf32>
    %26 = vector.broadcast %25 : vector<1x256xf32> to vector<32x256xf32>
    %27 = arith.addf %23, %26 : vector<32x256xf32>
    %28 = vector.broadcast %6 : f32 to vector<32x256xf32>
    %29 = arith.mulf %13, %28 : vector<32x256xf32>
    %30 = arith.truncf %29 : vector<32x256xf32> to vector<32x256xbf16>
    %31 = vector.shape_cast %30 : vector<32x256xbf16> to vector<2x16x256xbf16>
    %32 = arith.truncf %20 : vector<32x256xf32> to vector<32x256xbf16>
    %33 = vector.shape_cast %32 : vector<32x256xbf16> to vector<2x16x256xbf16>
    %34 = arith.truncf %27 : vector<32x256xf32> to vector<32x256xbf16>
    %35 = vector.shape_cast %34 : vector<32x256xbf16> to vector<2x16x256xbf16>
    %c0_24 = arith.constant 0 : index
    %c0_25 = arith.constant 0 : index
    %c0_26 = arith.constant 0 : index
    %36 = vector.load %arg9[%c0_24, %c0_25, %c0_26] : memref<1x256x256xbf16, #tpu.memory_space<vmem>>, vector<1x256x256xbf16>
    %37 = vector.shape_cast %36 : vector<1x256x256xbf16> to vector<256x256xbf16>
    %38 = vector.extract_strided_slice %31 {offsets = [0, 0, 0], sizes = [2, 16, 64], strides = [1, 1, 1]} : vector<2x16x256xbf16> to vector<2x16x64xbf16>
    %39 = vector.extract_strided_slice %33 {offsets = [0, 0, 0], sizes = [2, 16, 64], strides = [1, 1, 1]} : vector<2x16x256xbf16> to vector<2x16x64xbf16>
    %40 = vector.extract_strided_slice %35 {offsets = [0, 0, 0], sizes = [2, 16, 64], strides = [1, 1, 1]} : vector<2x16x256xbf16> to vector<2x16x64xbf16>
    "tpu.trace_start"() <{level = 10 : i32, message = "bqd,bkd->bqk"}> : () -> ()
    %cst_27 = arith.constant dense<0.000000e+00> : vector<2x16x16xf32>
    %41 = tpu.matmul %38, %39, %cst_27 {dimension_numbers = #tpu.dot_dimension_numbers<[2], [2], [1], [1], [0, 0, 0, 1, 1, 1], [0], [0]>} : vector<2x16x64xbf16>, vector<2x16x64xbf16>, vector<2x16x16xf32> -> vector<2x16x16xf32>
    "tpu.trace_stop"() : () -> ()
    %cst_28 = arith.constant dense<0xFF800000> : vector<2x16xf32>
    %42 = vector.multi_reduction <maximumf>, %41, %cst_28 [2] : vector<2x16x16xf32> to vector<2x16xf32>
    %43 = vector.shape_cast %42 : vector<2x16xf32> to vector<2x16x1xf32>
    %44 = vector.broadcast %43 : vector<2x16x1xf32> to vector<2x16x16xf32>
    %45 = arith.subf %41, %44 : vector<2x16x16xf32>
    %46 = math.exp %45 : vector<2x16x16xf32>
    %cst_29 = arith.constant dense<0.000000e+00> : vector<2x16xf32>
    %47 = vector.multi_reduction <add>, %46, %cst_29 [2] : vector<2x16x16xf32> to vector<2x16xf32>
    %48 = vector.shape_cast %47 : vector<2x16xf32> to vector<2x16x1xf32>
    %49 = tpu.reciprocal %48 {approx = true} : vector<2x16x1xf32> -> vector<2x16x1xf32>
    %50 = vector.broadcast %49 : vector<2x16x1xf32> to vector<2x16x16xf32>
    %51 = arith.mulf %46, %50 : vector<2x16x16xf32>
    %52 = arith.truncf %51 : vector<2x16x16xf32> to vector<2x16x16xbf16>
    "tpu.trace_start"() <{level = 10 : i32, message = "bqk,bkd->bqd"}> : () -> ()
    %cst_30 = arith.constant dense<0.000000e+00> : vector<2x16x64xf32>
    %53 = tpu.matmul %52, %40, %cst_30 {dimension_numbers = #tpu.dot_dimension_numbers<[2], [1], [1], [2], [0, 0, 0, 1, 1, 2], [0], [0]>} : vector<2x16x16xbf16>, vector<2x16x64xbf16>, vector<2x16x64xf32> -> vector<2x16x64xf32>
    "tpu.trace_stop"() : () -> ()
    %54 = vector.shape_cast %53 : vector<2x16x64xf32> to vector<32x64xf32>
    %55 = arith.truncf %54 : vector<32x64xf32> to vector<32x64xbf16>
    %56 = vector.extract_strided_slice %37 {offsets = [0, 0], sizes = [64, 256], strides = [1, 1]} : vector<256x256xbf16> to vector<64x256xbf16>
    %cst_31 = arith.constant dense<0.000000e+00> : vector<32x256xf32>
    %57 = tpu.matmul %55, %56, %cst_31 {dimension_numbers = #tpu.dot_dimension_numbers<[1], [0], [0], [1], [0, 0, 1, 1], [], []>} : vector<32x64xbf16>, vector<64x256xbf16>, vector<32x256xf32> -> vector<32x256xf32>
    %58 = vector.extract_strided_slice %31 {offsets = [0, 0, 64], sizes = [2, 16, 64], strides = [1, 1, 1]} : vector<2x16x256xbf16> to vector<2x16x64xbf16>
    %59 = vector.extract_strided_slice %33 {offsets = [0, 0, 64], sizes = [2, 16, 64], strides = [1, 1, 1]} : vector<2x16x256xbf16> to vector<2x16x64xbf16>
    %60 = vector.extract_strided_slice %35 {offsets = [0, 0, 64], sizes = [2, 16, 64], strides = [1, 1, 1]} : vector<2x16x256xbf16> to vector<2x16x64xbf16>
    "tpu.trace_start"() <{level = 10 : i32, message = "bqd,bkd->bqk"}> : () -> ()
    %cst_32 = arith.constant dense<0.000000e+00> : vector<2x16x16xf32>
    %61 = tpu.matmul %58, %59, %cst_32 {dimension_numbers = #tpu.dot_dimension_numbers<[2], [2], [1], [1], [0, 0, 0, 1, 1, 1], [0], [0]>} : vector<2x16x64xbf16>, vector<2x16x64xbf16>, vector<2x16x16xf32> -> vector<2x16x16xf32>
    "tpu.trace_stop"() : () -> ()
    %cst_33 = arith.constant dense<0xFF800000> : vector<2x16xf32>
    %62 = vector.multi_reduction <maximumf>, %61, %cst_33 [2] : vector<2x16x16xf32> to vector<2x16xf32>
    %63 = vector.shape_cast %62 : vector<2x16xf32> to vector<2x16x1xf32>
    %64 = vector.broadcast %63 : vector<2x16x1xf32> to vector<2x16x16xf32>
    %65 = arith.subf %61, %64 : vector<2x16x16xf32>
    %66 = math.exp %65 : vector<2x16x16xf32>
    %cst_34 = arith.constant dense<0.000000e+00> : vector<2x16xf32>
    %67 = vector.multi_reduction <add>, %66, %cst_34 [2] : vector<2x16x16xf32> to vector<2x16xf32>
    %68 = vector.shape_cast %67 : vector<2x16xf32> to vector<2x16x1xf32>
    %69 = tpu.reciprocal %68 {approx = true} : vector<2x16x1xf32> -> vector<2x16x1xf32>
    %70 = vector.broadcast %69 : vector<2x16x1xf32> to vector<2x16x16xf32>
    %71 = arith.mulf %66, %70 : vector<2x16x16xf32>
    %72 = arith.truncf %71 : vector<2x16x16xf32> to vector<2x16x16xbf16>
    "tpu.trace_start"() <{level = 10 : i32, message = "bqk,bkd->bqd"}> : () -> ()
    %cst_35 = arith.constant dense<0.000000e+00> : vector<2x16x64xf32>
    %73 = tpu.matmul %72, %60, %cst_35 {dimension_numbers = #tpu.dot_dimension_numbers<[2], [1], [1], [2], [0, 0, 0, 1, 1, 2], [0], [0]>} : vector<2x16x16xbf16>, vector<2x16x64xbf16>, vector<2x16x64xf32> -> vector<2x16x64xf32>
    "tpu.trace_stop"() : () -> ()
    %74 = vector.shape_cast %73 : vector<2x16x64xf32> to vector<32x64xf32>
    %75 = arith.truncf %74 : vector<32x64xf32> to vector<32x64xbf16>
    %76 = vector.extract_strided_slice %37 {offsets = [64, 0], sizes = [64, 256], strides = [1, 1]} : vector<256x256xbf16> to vector<64x256xbf16>
    %cst_36 = arith.constant dense<0.000000e+00> : vector<32x256xf32>
    %77 = tpu.matmul %75, %76, %cst_36 {dimension_numbers = #tpu.dot_dimension_numbers<[1], [0], [0], [1], [0, 0, 1, 1], [], []>} : vector<32x64xbf16>, vector<64x256xbf16>, vector<32x256xf32> -> vector<32x256xf32>
    %78 = arith.addf %57, %77 : vector<32x256xf32>
    %79 = vector.extract_strided_slice %31 {offsets = [0, 0, 128], sizes = [2, 16, 64], strides = [1, 1, 1]} : vector<2x16x256xbf16> to vector<2x16x64xbf16>
    %80 = vector.extract_strided_slice %33 {offsets = [0, 0, 128], sizes = [2, 16, 64], strides = [1, 1, 1]} : vector<2x16x256xbf16> to vector<2x16x64xbf16>
    %81 = vector.extract_strided_slice %35 {offsets = [0, 0, 128], sizes = [2, 16, 64], strides = [1, 1, 1]} : vector<2x16x256xbf16> to vector<2x16x64xbf16>
    "tpu.trace_start"() <{level = 10 : i32, message = "bqd,bkd->bqk"}> : () -> ()
    %cst_37 = arith.constant dense<0.000000e+00> : vector<2x16x16xf32>
    %82 = tpu.matmul %79, %80, %cst_37 {dimension_numbers = #tpu.dot_dimension_numbers<[2], [2], [1], [1], [0, 0, 0, 1, 1, 1], [0], [0]>} : vector<2x16x64xbf16>, vector<2x16x64xbf16>, vector<2x16x16xf32> -> vector<2x16x16xf32>
    "tpu.trace_stop"() : () -> ()
    %cst_38 = arith.constant dense<0xFF800000> : vector<2x16xf32>
    %83 = vector.multi_reduction <maximumf>, %82, %cst_38 [2] : vector<2x16x16xf32> to vector<2x16xf32>
    %84 = vector.shape_cast %83 : vector<2x16xf32> to vector<2x16x1xf32>
    %85 = vector.broadcast %84 : vector<2x16x1xf32> to vector<2x16x16xf32>
    %86 = arith.subf %82, %85 : vector<2x16x16xf32>
    %87 = math.exp %86 : vector<2x16x16xf32>
    %cst_39 = arith.constant dense<0.000000e+00> : vector<2x16xf32>
    %88 = vector.multi_reduction <add>, %87, %cst_39 [2] : vector<2x16x16xf32> to vector<2x16xf32>
    %89 = vector.shape_cast %88 : vector<2x16xf32> to vector<2x16x1xf32>
    %90 = tpu.reciprocal %89 {approx = true} : vector<2x16x1xf32> -> vector<2x16x1xf32>
    %91 = vector.broadcast %90 : vector<2x16x1xf32> to vector<2x16x16xf32>
    %92 = arith.mulf %87, %91 : vector<2x16x16xf32>
    %93 = arith.truncf %92 : vector<2x16x16xf32> to vector<2x16x16xbf16>
    "tpu.trace_start"() <{level = 10 : i32, message = "bqk,bkd->bqd"}> : () -> ()
    %cst_40 = arith.constant dense<0.000000e+00> : vector<2x16x64xf32>
    %94 = tpu.matmul %93, %81, %cst_40 {dimension_numbers = #tpu.dot_dimension_numbers<[2], [1], [1], [2], [0, 0, 0, 1, 1, 2], [0], [0]>} : vector<2x16x16xbf16>, vector<2x16x64xbf16>, vector<2x16x64xf32> -> vector<2x16x64xf32>
    "tpu.trace_stop"() : () -> ()
    %95 = vector.shape_cast %94 : vector<2x16x64xf32> to vector<32x64xf32>
    %96 = arith.truncf %95 : vector<32x64xf32> to vector<32x64xbf16>
    %97 = vector.extract_strided_slice %37 {offsets = [128, 0], sizes = [64, 256], strides = [1, 1]} : vector<256x256xbf16> to vector<64x256xbf16>
    %cst_41 = arith.constant dense<0.000000e+00> : vector<32x256xf32>
    %98 = tpu.matmul %96, %97, %cst_41 {dimension_numbers = #tpu.dot_dimension_numbers<[1], [0], [0], [1], [0, 0, 1, 1], [], []>} : vector<32x64xbf16>, vector<64x256xbf16>, vector<32x256xf32> -> vector<32x256xf32>
    %99 = arith.addf %78, %98 : vector<32x256xf32>
    %100 = vector.extract_strided_slice %31 {offsets = [0, 0, 192], sizes = [2, 16, 64], strides = [1, 1, 1]} : vector<2x16x256xbf16> to vector<2x16x64xbf16>
    %101 = vector.extract_strided_slice %33 {offsets = [0, 0, 192], sizes = [2, 16, 64], strides = [1, 1, 1]} : vector<2x16x256xbf16> to vector<2x16x64xbf16>
    %102 = vector.extract_strided_slice %35 {offsets = [0, 0, 192], sizes = [2, 16, 64], strides = [1, 1, 1]} : vector<2x16x256xbf16> to vector<2x16x64xbf16>
    "tpu.trace_start"() <{level = 10 : i32, message = "bqd,bkd->bqk"}> : () -> ()
    %cst_42 = arith.constant dense<0.000000e+00> : vector<2x16x16xf32>
    %103 = tpu.matmul %100, %101, %cst_42 {dimension_numbers = #tpu.dot_dimension_numbers<[2], [2], [1], [1], [0, 0, 0, 1, 1, 1], [0], [0]>} : vector<2x16x64xbf16>, vector<2x16x64xbf16>, vector<2x16x16xf32> -> vector<2x16x16xf32>
    "tpu.trace_stop"() : () -> ()
    %cst_43 = arith.constant dense<0xFF800000> : vector<2x16xf32>
    %104 = vector.multi_reduction <maximumf>, %103, %cst_43 [2] : vector<2x16x16xf32> to vector<2x16xf32>
    %105 = vector.shape_cast %104 : vector<2x16xf32> to vector<2x16x1xf32>
    %106 = vector.broadcast %105 : vector<2x16x1xf32> to vector<2x16x16xf32>
    %107 = arith.subf %103, %106 : vector<2x16x16xf32>
    %108 = math.exp %107 : vector<2x16x16xf32>
    %cst_44 = arith.constant dense<0.000000e+00> : vector<2x16xf32>
    %109 = vector.multi_reduction <add>, %108, %cst_44 [2] : vector<2x16x16xf32> to vector<2x16xf32>
    %110 = vector.shape_cast %109 : vector<2x16xf32> to vector<2x16x1xf32>
    %111 = tpu.reciprocal %110 {approx = true} : vector<2x16x1xf32> -> vector<2x16x1xf32>
    %112 = vector.broadcast %111 : vector<2x16x1xf32> to vector<2x16x16xf32>
    %113 = arith.mulf %108, %112 : vector<2x16x16xf32>
    %114 = arith.truncf %113 : vector<2x16x16xf32> to vector<2x16x16xbf16>
    "tpu.trace_start"() <{level = 10 : i32, message = "bqk,bkd->bqd"}> : () -> ()
    %cst_45 = arith.constant dense<0.000000e+00> : vector<2x16x64xf32>
    %115 = tpu.matmul %114, %102, %cst_45 {dimension_numbers = #tpu.dot_dimension_numbers<[2], [1], [1], [2], [0, 0, 0, 1, 1, 2], [0], [0]>} : vector<2x16x16xbf16>, vector<2x16x64xbf16>, vector<2x16x64xf32> -> vector<2x16x64xf32>
    "tpu.trace_stop"() : () -> ()
    %116 = vector.shape_cast %115 : vector<2x16x64xf32> to vector<32x64xf32>
    %117 = arith.truncf %116 : vector<32x64xf32> to vector<32x64xbf16>
    %118 = vector.extract_strided_slice %37 {offsets = [192, 0], sizes = [64, 256], strides = [1, 1]} : vector<256x256xbf16> to vector<64x256xbf16>
    %cst_46 = arith.constant dense<0.000000e+00> : vector<32x256xf32>
    %119 = tpu.matmul %117, %118, %cst_46 {dimension_numbers = #tpu.dot_dimension_numbers<[1], [0], [0], [1], [0, 0, 1, 1], [], []>} : vector<32x64xbf16>, vector<64x256xbf16>, vector<32x256xf32> -> vector<32x256xf32>
    %120 = arith.addf %99, %119 : vector<32x256xf32>
    %c0_47 = arith.constant 0 : index
    %c0_48 = arith.constant 0 : index
    %c0_49 = arith.constant 0 : index
    %121 = vector.load %arg10[%c0_47, %c0_48, %c0_49] : memref<1x1x256xf32, #tpu.memory_space<vmem>>, vector<1x1x256xf32>
    %122 = vector.shape_cast %121 : vector<1x1x256xf32> to vector<1x256xf32>
    %123 = vector.broadcast %122 : vector<1x256xf32> to vector<32x256xf32>
    %124 = arith.addf %120, %123 : vector<32x256xf32>
    %125 = arith.addf %3, %124 : vector<32x256xf32>
    %c0_50 = arith.constant 0 : index
    %c0_51 = arith.constant 0 : index
    %c0_52 = arith.constant 0 : index
    %126 = vector.load %arg11[%c0_50, %c0_51, %c0_52] : memref<1x1x256xf32, #tpu.memory_space<vmem>>, vector<1x1x256xf32>
    %127 = vector.shape_cast %126 : vector<1x1x256xf32> to vector<1x256xf32>
    %c0_53 = arith.constant 0 : index
    %c0_54 = arith.constant 0 : index
    %c0_55 = arith.constant 0 : index
    %128 = vector.load %arg12[%c0_53, %c0_54, %c0_55] : memref<1x1x256xf32, #tpu.memory_space<vmem>>, vector<1x1x256xf32>
    %129 = vector.shape_cast %128 : vector<1x1x256xf32> to vector<1x256xf32>
    %cst_56 = arith.constant dense<0.000000e+00> : vector<32xf32>
    %130 = vector.multi_reduction <add>, %125, %cst_56 [1] : vector<32x256xf32> to vector<32xf32>
    %131 = vector.shape_cast %130 : vector<32xf32> to vector<32x1xf32>
    %cst_57 = arith.constant 2.560000e+02 : f32
    %132 = vector.broadcast %cst_57 : f32 to vector<32x1xf32>
    %133 = arith.divf %131, %132 : vector<32x1xf32>
    %134 = arith.mulf %125, %125 : vector<32x256xf32>
    %cst_58 = arith.constant dense<0.000000e+00> : vector<32xf32>
    %135 = vector.multi_reduction <add>, %134, %cst_58 [1] : vector<32x256xf32> to vector<32xf32>
    %136 = vector.shape_cast %135 : vector<32xf32> to vector<32x1xf32>
    %cst_59 = arith.constant 2.560000e+02 : f32
    %137 = vector.broadcast %cst_59 : f32 to vector<32x1xf32>
    %138 = arith.divf %136, %137 : vector<32x1xf32>
    %139 = arith.mulf %133, %133 : vector<32x1xf32>
    %140 = arith.subf %138, %139 : vector<32x1xf32>
    %cst_60 = arith.constant 0.000000e+00 : f32
    %141 = vector.broadcast %cst_60 : f32 to vector<32x1xf32>
    %142 = arith.maximumf %140, %141 : vector<32x1xf32>
    %143 = vector.broadcast %133 : vector<32x1xf32> to vector<32x256xf32>
    %144 = arith.subf %125, %143 : vector<32x256xf32>
    %cst_61 = arith.constant 9.99999974E-6 : f32
    %145 = vector.broadcast %cst_61 : f32 to vector<32x1xf32>
    %146 = arith.addf %142, %145 : vector<32x1xf32>
    %147 = math.rsqrt %146 : vector<32x1xf32>
    %148 = vector.broadcast %147 : vector<32x1xf32> to vector<32x256xf32>
    %149 = arith.mulf %144, %148 : vector<32x256xf32>
    %150 = vector.broadcast %127 : vector<1x256xf32> to vector<32x256xf32>
    %151 = arith.mulf %149, %150 : vector<32x256xf32>
    %152 = vector.broadcast %129 : vector<1x256xf32> to vector<32x256xf32>
    %153 = arith.addf %151, %152 : vector<32x256xf32>
    %154 = arith.truncf %153 : vector<32x256xf32> to vector<32x256xbf16>
    %c0_62 = arith.constant 0 : index
    %c0_63 = arith.constant 0 : index
    %c0_64 = arith.constant 0 : index
    %155 = vector.load %arg13[%c0_62, %c0_63, %c0_64] : memref<1x256x512xbf16, #tpu.memory_space<vmem>>, vector<1x256x512xbf16>
    %156 = vector.shape_cast %155 : vector<1x256x512xbf16> to vector<256x512xbf16>
    %cst_65 = arith.constant dense<0.000000e+00> : vector<32x512xf32>
    %157 = tpu.matmul %154, %156, %cst_65 {dimension_numbers = #tpu.dot_dimension_numbers<[1], [0], [0], [1], [0, 0, 1, 1], [], []>} : vector<32x256xbf16>, vector<256x512xbf16>, vector<32x512xf32> -> vector<32x512xf32>
    %c0_66 = arith.constant 0 : index
    %c0_67 = arith.constant 0 : index
    %c0_68 = arith.constant 0 : index
    %158 = vector.load %arg14[%c0_66, %c0_67, %c0_68] : memref<1x1x512xf32, #tpu.memory_space<vmem>>, vector<1x1x512xf32>
    %159 = vector.shape_cast %158 : vector<1x1x512xf32> to vector<1x512xf32>
    %160 = vector.broadcast %159 : vector<1x512xf32> to vector<32x512xf32>
    %161 = arith.addf %157, %160 : vector<32x512xf32>
    %cst_69 = arith.constant 0.000000e+00 : f32
    %162 = vector.broadcast %cst_69 : f32 to vector<32x512xf32>
    %163 = arith.maximumf %161, %162 : vector<32x512xf32>
    %164 = arith.truncf %163 : vector<32x512xf32> to vector<32x512xbf16>
    %c0_70 = arith.constant 0 : index
    %c0_71 = arith.constant 0 : index
    %c0_72 = arith.constant 0 : index
    %165 = vector.load %arg15[%c0_70, %c0_71, %c0_72] : memref<1x512x256xbf16, #tpu.memory_space<vmem>>, vector<1x512x256xbf16>
    %166 = vector.shape_cast %165 : vector<1x512x256xbf16> to vector<512x256xbf16>
    %cst_73 = arith.constant dense<0.000000e+00> : vector<32x256xf32>
    %167 = tpu.matmul %164, %166, %cst_73 {dimension_numbers = #tpu.dot_dimension_numbers<[1], [0], [0], [1], [0, 0, 1, 1], [], []>} : vector<32x512xbf16>, vector<512x256xbf16>, vector<32x256xf32> -> vector<32x256xf32>
    %c0_74 = arith.constant 0 : index
    %c0_75 = arith.constant 0 : index
    %c0_76 = arith.constant 0 : index
    %168 = vector.load %arg16[%c0_74, %c0_75, %c0_76] : memref<1x1x256xf32, #tpu.memory_space<vmem>>, vector<1x1x256xf32>
    %169 = vector.shape_cast %168 : vector<1x1x256xf32> to vector<1x256xf32>
    %170 = vector.broadcast %169 : vector<1x256xf32> to vector<32x256xf32>
    %171 = arith.addf %167, %170 : vector<32x256xf32>
    %172 = arith.addf %153, %171 : vector<32x256xf32>
    %c0_77 = arith.constant 0 : index
    %c0_78 = arith.constant 0 : index
    %c0_79 = arith.constant 0 : index
    %173 = vector.load %arg17[%c0_77, %c0_78, %c0_79] : memref<1x1x256xf32, #tpu.memory_space<vmem>>, vector<1x1x256xf32>
    %174 = vector.shape_cast %173 : vector<1x1x256xf32> to vector<1x256xf32>
    %c0_80 = arith.constant 0 : index
    %c0_81 = arith.constant 0 : index
    %c0_82 = arith.constant 0 : index
    %175 = vector.load %arg18[%c0_80, %c0_81, %c0_82] : memref<1x1x256xf32, #tpu.memory_space<vmem>>, vector<1x1x256xf32>
    %176 = vector.shape_cast %175 : vector<1x1x256xf32> to vector<1x256xf32>
    %cst_83 = arith.constant dense<0.000000e+00> : vector<32xf32>
    %177 = vector.multi_reduction <add>, %172, %cst_83 [1] : vector<32x256xf32> to vector<32xf32>
    %178 = vector.shape_cast %177 : vector<32xf32> to vector<32x1xf32>
    %cst_84 = arith.constant 2.560000e+02 : f32
    %179 = vector.broadcast %cst_84 : f32 to vector<32x1xf32>
    %180 = arith.divf %178, %179 : vector<32x1xf32>
    %181 = arith.mulf %172, %172 : vector<32x256xf32>
    %cst_85 = arith.constant dense<0.000000e+00> : vector<32xf32>
    %182 = vector.multi_reduction <add>, %181, %cst_85 [1] : vector<32x256xf32> to vector<32xf32>
    %183 = vector.shape_cast %182 : vector<32xf32> to vector<32x1xf32>
    %cst_86 = arith.constant 2.560000e+02 : f32
    %184 = vector.broadcast %cst_86 : f32 to vector<32x1xf32>
    %185 = arith.divf %183, %184 : vector<32x1xf32>
    %186 = arith.mulf %180, %180 : vector<32x1xf32>
    %187 = arith.subf %185, %186 : vector<32x1xf32>
    %cst_87 = arith.constant 0.000000e+00 : f32
    %188 = vector.broadcast %cst_87 : f32 to vector<32x1xf32>
    %189 = arith.maximumf %187, %188 : vector<32x1xf32>
    %190 = vector.broadcast %180 : vector<32x1xf32> to vector<32x256xf32>
    %191 = arith.subf %172, %190 : vector<32x256xf32>
    %cst_88 = arith.constant 9.99999974E-6 : f32
    %192 = vector.broadcast %cst_88 : f32 to vector<32x1xf32>
    %193 = arith.addf %189, %192 : vector<32x1xf32>
    %194 = math.rsqrt %193 : vector<32x1xf32>
    %195 = vector.broadcast %194 : vector<32x1xf32> to vector<32x256xf32>
    %196 = arith.mulf %191, %195 : vector<32x256xf32>
    %197 = vector.broadcast %174 : vector<1x256xf32> to vector<32x256xf32>
    %198 = arith.mulf %196, %197 : vector<32x256xf32>
    %199 = vector.broadcast %176 : vector<1x256xf32> to vector<32x256xf32>
    %200 = arith.addf %198, %199 : vector<32x256xf32>
    %c1_i32 = arith.constant 1 : i32
    %201 = arith.cmpi slt, %arg1, %c1_i32 : i32
    %202 = arith.extui %201 : i1 to i32
    %c0_i32_89 = arith.constant 0 : i32
    %203 = arith.cmpi ne, %202, %c0_i32_89 : i32
    scf.if %203 {
      %c0_92 = arith.constant 0 : index
      %c0_93 = arith.constant 0 : index
      %207 = vector.load %arg22[%c0_92, %c0_93] : memref<32x256xf32, #tpu.memory_space<vmem>>, vector<32x256xf32>
      tpu.vector_store %arg22[%c0_92, %c0_93], %200 {strides = array<i32>} : memref<32x256xf32, #tpu.memory_space<vmem>>, vector<32x256xf32>,
    } else {
    }
    %c1_i32_90 = arith.constant 1 : i32
    %204 = arith.cmpi eq, %arg1, %c1_i32_90 : i32
    %205 = arith.extui %204 : i1 to i32
    %c0_i32_91 = arith.constant 0 : i32
    %206 = arith.cmpi ne, %205, %c0_i32_91 : i32
    scf.if %206 {
      %207 = arith.truncf %200 : vector<32x256xf32> to vector<32x256xbf16>
      %c0_92 = arith.constant 0 : index
      %c0_93 = arith.constant 0 : index
      %208 = vector.load %arg19[%c0_92, %c0_93] : memref<256x128xbf16, #tpu.memory_space<vmem>>, vector<256x128xbf16>
      %cst_94 = arith.constant dense<0.000000e+00> : vector<32x128xf32>
      %209 = tpu.matmul %207, %208, %cst_94 {dimension_numbers = #tpu.dot_dimension_numbers<[1], [0], [0], [1], [0, 0, 1, 1], [], []>} : vector<32x256xbf16>, vector<256x128xbf16>, vector<32x128xf32> -> vector<32x128xf32>
      %c0_95 = arith.constant 0 : index
      %c0_96 = arith.constant 0 : index
      %210 = vector.load %arg20[%c0_95, %c0_96] : memref<1x128xf32, #tpu.memory_space<vmem>>, vector<1x128xf32>
      %211 = vector.broadcast %210 : vector<1x128xf32> to vector<32x128xf32>
      %212 = arith.addf %209, %211 : vector<32x128xf32>
      %c0_97 = arith.constant 0 : index
      %c0_98 = arith.constant 0 : index
      %213 = vector.load %arg21[%c0_97, %c0_98] : memref<32x128xf32, #tpu.memory_space<vmem>>, vector<32x128xf32>
      tpu.vector_store %arg21[%c0_97, %c0_98], %212 {strides = array<i32>} : memref<32x128xf32, #tpu.memory_space<vmem>>, vector<32x128xf32>,
    } else {
    }
    return
  }
  func.func @transform_0(%arg0: i32, %arg1: i32) -> (i32, i32) {
    %c0_i32 = arith.constant 0 : i32
    %c0_i32_0 = arith.constant 0 : i32
    return %arg0, %c0_i32 : i32, i32
  }
  func.func @transform_1(%arg0: i32, %arg1: i32) -> (i32, i32, i32) {
    %c0_i32 = arith.constant 0 : i32
    %c0_i32_0 = arith.constant 0 : i32
    %c0_i32_1 = arith.constant 0 : i32
    return %arg1, %c0_i32, %c0_i32_0 : i32, i32, i32
  }
  func.func @transform_2(%arg0: i32, %arg1: i32) -> (i32, i32, i32) {
    %c0_i32 = arith.constant 0 : i32
    %c0_i32_0 = arith.constant 0 : i32
    %c0_i32_1 = arith.constant 0 : i32
    return %arg1, %c0_i32, %c0_i32_0 : i32, i32, i32
  }
  func.func @transform_3(%arg0: i32, %arg1: i32) -> (i32, i32, i32) {
    %c0_i32 = arith.constant 0 : i32
    %c0_i32_0 = arith.constant 0 : i32
    %c0_i32_1 = arith.constant 0 : i32
    return %arg1, %c0_i32, %c0_i32_0 : i32, i32, i32
  }
  func.func @transform_4(%arg0: i32, %arg1: i32) -> (i32, i32, i32) {
    %c0_i32 = arith.constant 0 : i32
    %c0_i32_0 = arith.constant 0 : i32
    %c0_i32_1 = arith.constant 0 : i32
    return %arg1, %c0_i32, %c0_i32_0 : i32, i32, i32
  }
  func.func @transform_5(%arg0: i32, %arg1: i32) -> (i32, i32, i32) {
    %c0_i32 = arith.constant 0 : i32
    %c0_i32_0 = arith.constant 0 : i32
    %c0_i32_1 = arith.constant 0 : i32
    return %arg1, %c0_i32, %c0_i32_0 : i32, i32, i32
  }
  func.func @transform_6(%arg0: i32, %arg1: i32) -> (i32, i32, i32) {
    %c0_i32 = arith.constant 0 : i32
    %c0_i32_0 = arith.constant 0 : i32
    %c0_i32_1 = arith.constant 0 : i32
    return %arg1, %c0_i32, %c0_i32_0 : i32, i32, i32
  }
  func.func @transform_7(%arg0: i32, %arg1: i32) -> (i32, i32, i32) {
    %c0_i32 = arith.constant 0 : i32
    %c0_i32_0 = arith.constant 0 : i32
    %c0_i32_1 = arith.constant 0 : i32
    return %arg1, %c0_i32, %c0_i32_0 : i32, i32, i32
  }
  func.func @transform_8(%arg0: i32, %arg1: i32) -> (i32, i32, i32) {
    %c0_i32 = arith.constant 0 : i32
    %c0_i32_0 = arith.constant 0 : i32
    %c0_i32_1 = arith.constant 0 : i32
    return %arg1, %c0_i32, %c0_i32_0 : i32, i32, i32
  }
  func.func @transform_9(%arg0: i32, %arg1: i32) -> (i32, i32, i32) {
    %c0_i32 = arith.constant 0 : i32
    %c0_i32_0 = arith.constant 0 : i32
    %c0_i32_1 = arith.constant 0 : i32
    return %arg1, %c0_i32, %c0_i32_0 : i32, i32, i32
  }
  func.func @transform_10(%arg0: i32, %arg1: i32) -> (i32, i32, i32) {
    %c0_i32 = arith.constant 0 : i32
    %c0_i32_0 = arith.constant 0 : i32
    %c0_i32_1 = arith.constant 0 : i32
    return %arg1, %c0_i32, %c0_i32_0 : i32, i32, i32
  }
  func.func @transform_11(%arg0: i32, %arg1: i32) -> (i32, i32, i32) {
    %c0_i32 = arith.constant 0 : i32
    %c0_i32_0 = arith.constant 0 : i32
    %c0_i32_1 = arith.constant 0 : i32
    return %arg1, %c0_i32, %c0_i32_0 : i32, i32, i32
  }
  func.func @transform_12(%arg0: i32, %arg1: i32) -> (i32, i32, i32) {
    %c0_i32 = arith.constant 0 : i32
    %c0_i32_0 = arith.constant 0 : i32
    %c0_i32_1 = arith.constant 0 : i32
    return %arg1, %c0_i32, %c0_i32_0 : i32, i32, i32
  }
  func.func @transform_13(%arg0: i32, %arg1: i32) -> (i32, i32, i32) {
    %c0_i32 = arith.constant 0 : i32
    %c0_i32_0 = arith.constant 0 : i32
    %c0_i32_1 = arith.constant 0 : i32
    return %arg1, %c0_i32, %c0_i32_0 : i32, i32, i32
  }
  func.func @transform_14(%arg0: i32, %arg1: i32) -> (i32, i32, i32) {
    %c0_i32 = arith.constant 0 : i32
    %c0_i32_0 = arith.constant 0 : i32
    %c0_i32_1 = arith.constant 0 : i32
    return %arg1, %c0_i32, %c0_i32_0 : i32, i32, i32
  }
  func.func @transform_15(%arg0: i32, %arg1: i32) -> (i32, i32, i32) {
    %c0_i32 = arith.constant 0 : i32
    %c0_i32_0 = arith.constant 0 : i32
    %c0_i32_1 = arith.constant 0 : i32
    return %arg1, %c0_i32, %c0_i32_0 : i32, i32, i32
  }
  func.func @transform_16(%arg0: i32, %arg1: i32) -> (i32, i32, i32) {
    %c0_i32 = arith.constant 0 : i32
    %c0_i32_0 = arith.constant 0 : i32
    %c0_i32_1 = arith.constant 0 : i32
    return %arg1, %c0_i32, %c0_i32_0 : i32, i32, i32
  }
  func.func @transform_17(%arg0: i32, %arg1: i32) -> (i32, i32) {
    %c0_i32 = arith.constant 0 : i32
    %c0_i32_0 = arith.constant 0 : i32
    %c0_i32_1 = arith.constant 0 : i32
    return %c0_i32, %c0_i32_0 : i32, i32
  }
  func.func @transform_18(%arg0: i32, %arg1: i32) -> (i32, i32) {
    %c0_i32 = arith.constant 0 : i32
    %c0_i32_0 = arith.constant 0 : i32
    %c0_i32_1 = arith.constant 0 : i32
    return %c0_i32, %c0_i32_0 : i32, i32
  }
  func.func @transform_19(%arg0: i32, %arg1: i32) -> (i32, i32) {
    %c0_i32 = arith.constant 0 : i32
    %c0_i32_0 = arith.constant 0 : i32
    return %arg0, %c0_i32 : i32, i32
  }
}

</mosaic_0001>

<bundles_post_ra>
// kernel: tpu_custom_call.1
= control target key start
LH: loop header
LB: loop body
LE: loop exit
PB: predicated region body
PF: predicated region fallthrough
CT: control target
= control target key end

     0   :  { %s8008_s0 = inlined_call_operand.hbm [shape: f32[32,256], index: 0, kind: input, shape index: {}]   ;;  %s8009_s1 = inlined_call_operand.hbm [shape: bf16[2,256,256], index: 1, kind: input, shape index: {}]   ;;  %s8010_s2 = inlined_call_operand.vmem [shape: f32[2,1,256], index: 2, kind: input, shape index: {}]   ;;  %s8011_s3 = inlined_call_operand.hbm [shape: bf16[2,256,256], index: 3, kind: input, shape index: {}]   ;;  %s8012_s4 = inlined_call_operand.hbm [shape: f32[2,1,256], index: 4, kind: input, shape index: {}]   ;;  %s8013_s5 = inlined_call_operand.hbm [shape: bf16[2,256,256], index: 5, kind: input, shape index: {}]   ;;  %s8014_s6 = inlined_call_operand.vmem [shape: f32[2,1,256], index: 6, kind: input, shape index: {}]   ;;  %s8015_s7 = inlined_call_operand.hbm [shape: bf16[2,256,256], index: 7, kind: input, shape index: {}]   ;;  %s8016_s8 = inlined_call_operand.vmem [shape: f32[2,1,256], index: 8, kind: input, shape index: {}]   ;;  %s8017_s9 = inlined_call_operand.vmem [shape: f32[2,1,256], index: 9, kind: input, shape index: {}]   ;;  %s8018_s10 = inlined_call_operand.vmem [shape: f32[2,1,256], index: 10, kind: input, shape index: {}]   ;;  %s8019_s11 = inlined_call_operand.hbm [shape: bf16[2,256,512], index: 11, kind: input, shape index: {}]   ;;  %s8020_s12 = inlined_call_operand.vmem [shape: f32[2,1,512], index: 12, kind: input, shape index: {}]   ;;  %s8021_s13 = inlined_call_operand.hbm [shape: bf16[2,512,256], index: 13, kind: input, shape index: {}]   ;;  %s8022_s14 = inlined_call_operand.vmem [shape: f32[2,1,256], index: 14, kind: input, shape index: {}]   ;;  %s8023_s15 = inlined_call_operand.vmem [shape: f32[2,1,256], index: 15, kind: input, shape index: {}]   ;;  %s8024_s16 = inlined_call_operand.vmem [shape: f32[2,1,256], index: 16, kind: input, shape index: {}]   ;;  %s8025_s17 = inlined_call_operand.hbm [shape: bf16[256,128], index: 17, kind: input, shape index: {}]   ;;  %s8026_s18 = inlined_call_operand.vmem [shape: f32[1,128], index: 18, kind: input, shape index: {}]   ;;  %s8027_s19 = inlined_call_operand.hbm [shape: f32[32,128], index: 19, kind: output, shape index: {}]  }
   0x1   :  { %8061 = sst [smem:[#allocation35_spill]] %s8008_s0 }
   0x2   :  { %8062 = sst [smem:[#allocation36_spill]] %s8009_s1 }
   0x3   :  { %8063 = sst [smem:[#allocation37_spill]] %s8010_s2 }
   0x4   :  { %8064 = sst [smem:[#allocation38_spill]] %s8011_s3 }
   0x5   :  { %8065 = sst [smem:[#allocation39_spill]] %s8012_s4 }
   0x6   :  { %8066 = sst [smem:[#allocation40_spill]] %s8013_s5 }
   0x7   :  { %8067 = sst [smem:[#allocation41_spill]] %s8014_s6 }
   0x8   :  { %8068 = sst [smem:[#allocation42_spill]] %s8015_s7 }
   0x9   :  { %8069 = sst [smem:[#allocation43_spill]] %s8016_s8 }
   0xa   :  { %8070 = sst [smem:[#allocation44_spill]] %s8017_s9 }
   0xb   :  { %8071 = sst [smem:[#allocation45_spill]] %s8018_s10 }
   0xc   :  { %8072 = sst [smem:[#allocation46_spill]] %s8019_s11 }
   0xd   :  { %8073 = sst [smem:[#allocation47_spill]] %s8020_s12 }
   0xe   :  { %8074 = sst [smem:[#allocation48_spill]] %s8021_s13 }
   0xf   :  { %8075 = sst [smem:[#allocation49_spill]] %s8022_s14 }
  0x10   :  { %8076 = sst [smem:[#allocation50_spill]] %s8023_s15 }
  0x11   :  { %8077 = sst [smem:[#allocation51_spill]] %s8024_s16 }
  0x12   :  { %8078 = sst [smem:[#allocation52_spill]] %s8025_s17 }
  0x13   :  { %8079 = sst [smem:[#allocation53_spill]] %s8026_s18 }
  0x14   :  { %8080 = sst [smem:[#allocation54_spill]] %s8027_s19 }
  0x15   :  { %24 = vsyncpa [#allocation4], 0 }
  0x16   :  { %25 = vsyncpa [#allocation7], 0 }
  0x17   :  { %27 = vsyncpa [#allocation7 + $0x1], 0 }
  0x18   :  { %28 = vsyncpa [#allocation10], 0 }
  0x19   :  { %30 = vsyncpa [#allocation10 + $0x1], 0 }
  0x1a   :  { %31 = vsyncpa [#allocation13], 0 }
  0x1b   :  { %33 = vsyncpa [#allocation13 + $0x1], 0 }
  0x1c   :  { %34 = vsyncpa [#allocation16], 0 }
  0x1d   :  { %36 = vsyncpa [#allocation16 + $0x1], 0 }
  0x1e   :  { %37 = vsyncpa [#allocation5], 0  ;;  %s6801_s0 = smov 0   ;;  %s6803_s30 = smov 0  }
  0x1f   :  { %s6805_s20 = smov 0   ;;  %s6807_s21 = smov 0  }
  0x20   :  { %s6809_s1 = smov 0   ;;  %s6811_s22 = smov 0  }
  0x21 LB: > { %8081 = sst [smem:[#allocation26_spill]] %s6661_s30  ;;  %s6830_s2 = sadd.s32 4294967295, %s6677_s22   ;;  %s6677_s22 = sphi %s6811_s22, %s43_s22   ;;  %s6673_s1 = sphi %s6809_s1, %s8157_s1   ;;  %s6669_s21 = sphi %s6807_s21, %s8156_s21   ;;  %s6665_s20 = sphi %s6805_s20, %s8155_s20   ;;  %s6661_s30 = sphi %s6803_s30, %s8154_s30   ;;  %s6657_s0 = sphi %s6801_s0, %s8153_s0  }
  0x22   : > { %8082 = sst [smem:[#allocation27_spill]] %s6665_s20  ;;  %p95_p0 = scmp.ne.s32.totalorder %s6665_s20, %s6661_s30 }
  0x23   : > { %8083 = sst [smem:[#allocation28_spill]] %s6669_s21  ;;  %p96_p1 = scmp.eq.s32.totalorder %s6677_s22, 0 }
  0x24   : > { %8084 = sst [smem:[#allocation29_spill]] %s6673_s1  ;;  %p101_p2 = scmp.ne.s32.totalorder %s6661_s30, %s6657_s0 }
  0x25   : > { %8085 = sst [smem:[#allocation30_spill]] %s6677_s22  ;;  %p8032_p3 = scmp.eq.s32.totalorder %s6830_s2, 0 }
  0x26   : > { %8086 = sst [smem:[#allocation31_spill]] %s6830_s2  ;;  %p97_p4 = por %p96_p1, %p95_p0 }
  0x27   : > { %p5131_p5 = scmp.ge.s32.totalorder %s6677_s22, 1  ;;  %p6841_p6 = por %p8032_p3, %p101_p2 }
  0x28   : > { %p570_p7 = scmp.lt.s32.totalorder %s6677_s22, 3  ;;  %s6679_s3 = smov [#allocation17]  }
  0x29   : > { %s8087_s24 = scalar_select %p6841_p6, 1, 0 }
  0x2a   : > { %p6846_p8 = pnand %p5131_p5, %p570_p7  ;;  %s599_s26 = sshll.u32 %s6679_s3, 4  ;;  %s600_s26 = int_to_ptr.vmem [resolvable:$true] %s599_s26 }
  0x2b   : > { %p5755_p10 = scmp.lt.s32.totalorder %s6677_s22, 2  ;;  %s52_s29 = sadd.s32 1, %s6673_s1 }
  0x2c   : > { %s8088_s25 = scalar_select %p6846_p8, 1, 0 }
  0x2d   : > { %p5724_p9 = pneg %p6846_p8  ;;  %p6859_p12 = pnand %p5755_p10, %p97_p4 }
  0x2e   : > { %s8091_s17 = sld [smem:[#allocation52_spill]] }
  0x2f   : > { %p6855_p11 = pnand %p5724_p9, %p8032_p3 }
  0x30   : > { %s8090_s28 = scalar_select %p6859_p12, 1, 0 }
  0x31   : > { %s8089_s27 = scalar_select %p6855_p11, 1, 0 }
  0x32   : > { %p8038_p0 = pneg %p6855_p11 }
  0x34   : > { %s6311_s3 = scalar_lea.hbm %s8091_s17, 2048 }
  0x35   : > { %p6312_p13 = scmp.ne.s32.totalorder %s8091_s17, %s6311_s3  ;;  %p6318_p4 = scmp.lt.u32.totalorder %s6311_s3, %s8091_s17 }
  0x37   : > { %p6314_p1 = pnand %p8038_p0, %p6312_p13 }
  0x39   : > { %p6315_p2 = pneg %p6314_p1 }
  0x3b   : > { %p6320_p5 = pnand %p6318_p4, %p6315_p2 }
  0x3d   : > { %6323 = shalt.err (!%p6320_p5)
}
  0x3e   : > { %s6324_s14 = scalar_lea.vmem %s600_s26, 2048  ;;  %p6332_p3 = scmp.lt.s32.totalorder %s600_s26, %s600_s26 }
  0x3f   : > { %p6325_p7 = scmp.ne.s32.totalorder %s600_s26, %s6324_s14  ;;  %p6333_p6 = scmp.lt.s32.totalorder %s6324_s14, %s6324_s14 }
  0x41   : > { %p6327_p9 = pnand %p6325_p7, %p8038_p0  ;;  %p6334_p8 = por %p6333_p6, %p6332_p3 }
  0x43   : > { %p6328_p10 = pneg %p6327_p9 }
  0x45   : > { %p6335_p12 = pnand %p6334_p8, %p6328_p10 }
  0x47   : > { %6338 = shalt.err (!%p6335_p12)
}
  0x48   : > { %s6680_s18 = smov 64   ;;  %s6681_s15 = smov 4  }
  0x49   : > { %5730 = dma.hbm_to_vmem [thread:$0]  (!%p6855_p11), %s8091_s17, 2048, %s600_s26, [#allocation16], %s6680_s18, %s6680_s18, %s6681_s15  }
  0x4a   : > { %p53_p13 = scmp.ge.s32.totalorder %s52_s29, 2  ;;  %s6887_s14 = sand.u32 1, %s6677_s22  }
  0x4b   : > { %s6890_s23 = sand.u32 1, %s6665_s20   ;;  %s6900_s12 = sshll.u32 %s6673_s1, 12 }
  0x4c   : > { %s8159_s29 = smov (%p53_p13, %s52_s29), 0  ;;  %s6895_s0 = sshll.u32 %s6890_s23, 8 }
  0x4d   : > { %8092 = sst [smem:[#allocation32_spill]] %s8159_s29  ;;  %s85_s3 = ssub.s32 %s6673_s1, %s8159_s29 }
  0x4e   : > { %p86_p3 = scmp.eq.s32.totalorder %s85_s3, 0  ;;  %s8093_s15 = sld [smem:[#allocation36_spill]] }
  0x4f   : > { %s620_s19 = scalar_lea.vmem [#allocation6], %s6895_s0  ;;  %s8094_s22 = sadd.s32 1, %s6665_s20 }
  0x50   : > { %s627_s17 = sshll.u32 %s620_s19, 4  ;;  %p8096_p8 = scmp.ne.s32.totalorder %s8090_s28, 0  ;;  %s6914_s17 = int_to_ptr.vmem [resolvable:$true] %s627_s17 }
  0x51   : > { %s6912_s10 = scalar_select %p86_p3, %s6665_s20, %s8094_s22  }
  0x52   : > { %p6921_p12 = pneg %p8096_p8 }
  0x53   : > { %8095 = sst [smem:[#allocation33_spill]] %s6912_s10 }
  0x54   : > { %s6906_s16 = scalar_lea.hbm %s8093_s15, %s6900_s12  ;;  %s6344_s19 = scalar_lea.hbm %s8093_s15, 8192 }
  0x55   : > { %s6339_s29 = scalar_lea.hbm %s6906_s16, 4096  ;;  %p6345_p4 = scmp.lt.u32.totalorder %s6906_s16, %s8093_s15 }
  0x56   : > { %p6340_p6 = scmp.ne.s32.totalorder %s6906_s16, %s6339_s29  ;;  %p6346_p5 = scmp.lt.u32.totalorder %s6344_s19, %s6339_s29 }
  0x57   : > { %s8097_s9 = scalar_select %p6921_p12, 1, 0 }
  0x58   : > { %p6342_p1 = pnand %p6921_p12, %p6340_p6  ;;  %p6347_p7 = por %p6346_p5, %p6345_p4 }
  0x59   : > { %p6348_p9 = scmp.lt.u32.totalorder %s6339_s29, %s6906_s16 }
  0x5a   : > { %p6343_p2 = pneg %p6342_p1 }
  0x5b   : > { %p6349_p10 = por %p6348_p9, %p6347_p7 }
  0x5d   : > { %p6350_p13 = pnand %p6349_p10, %p6343_p2 }
  0x5f   : > { %6353 = shalt.err (!%p6350_p13)
}
  0x60   : > { %s6354_s3 = scalar_lea.vmem %s6914_s17, 4096  ;;  %s6682_s26 = smov [#allocation6]  }
  0x61   : > { %p6355_p3 = scmp.ne.s32.totalorder %s6914_s17, %s6354_s3  ;;  %s6359_s18 = sshll.u32 %s6682_s26, 4  ;;  %s6360_s18 = int_to_ptr.vmem [resolvable:$false] %s6359_s18 }
  0x62   : > { %s6361_s10 = scalar_lea.vmem %s6360_s18, 8192  ;;  %p6362_p0 = scmp.lt.s32.totalorder %s6914_s17, %s6360_s18 }
  0x63   : > { %p6357_p6 = pnand %p6355_p3, %p6921_p12  ;;  %p6363_p11 = scmp.lt.s32.totalorder %s6361_s10, %s6354_s3 }
  0x65   : > { %p6358_p1 = pneg %p6357_p6  ;;  %p6364_p4 = por %p6363_p11, %p6362_p0 }
  0x67   : > { %p6365_p5 = pnand %p6364_p4, %p6358_p1 }
  0x69   : > { %6368 = shalt.err (!%p6365_p5)
}
  0x6a   : > { %s8050_s29 = smov 128   ;;  %s6684_s19 = smov 8  }
  0x6b   : > { %s8098_s22 = scalar_lea.sflag [#allocation7], %s6887_s14  ;;  %s5141_s3 = sshll.u32 %s6890_s23, 1 }
  0x6c   : > { %5734 = dma.hbm_to_vmem [thread:$0]  (!%p8096_p8), %s6906_s16, 4096, %s6914_s17, %s8098_s22, %s8050_s29, %s8050_s29, %s6684_s19  }
  0x6d   : > { %s5481_s26 = sshll.u32 %s6673_s1, 5  ;;  %s8099_s4 = sld [smem:[#allocation39_spill]] }
  0x6e   : > { %s669_s20 = scalar_lea.vmem [#allocation9], %s5141_s3  ;;  %s8045_s6 = scalar_lea.sflag [#allocation10], %s6887_s14 }
  0x6f   : > { %s677_s8 = sshll.u32 %s669_s20, 4  ;;  %s678_s8 = int_to_ptr.vmem [resolvable:$true] %s677_s8 }
  0x73   : > { %s6954_s15 = scalar_lea.hbm %s8099_s4, %s5481_s26  ;;  %s6374_s22 = scalar_lea.hbm %s8099_s4, 64 }
  0x74   : > { %s6369_s21 = scalar_lea.hbm %s6954_s15, 32  ;;  %p6375_p7 = scmp.lt.u32.totalorder %s6954_s15, %s8099_s4 }
  0x75   : > { %p6370_p11 = scmp.ne.s32.totalorder %s6954_s15, %s6369_s21  ;;  %p6376_p9 = scmp.lt.u32.totalorder %s6374_s22, %s6369_s21 }
  0x76   : > { %p6378_p13 = scmp.lt.u32.totalorder %s6369_s21, %s6954_s15 }
  0x77   : > { %p6372_p0 = pnand %p6370_p11, %p6921_p12  ;;  %p6377_p10 = por %p6376_p9, %p6375_p7 }
  0x79   : > { %p6373_p2 = pneg %p6372_p0  ;;  %p6379_p3 = por %p6378_p13, %p6377_p10 }
  0x7b   : > { %p6380_p6 = pnand %p6379_p3, %p6373_p2 }
  0x7d   : > { %6383 = shalt.err (!%p6380_p6)
}
  0x7e   : > { %s6384_s20 = scalar_lea.vmem %s678_s8, 32  ;;  %s6685_s3 = smov [#allocation9]  }
  0x7f   : > { %p6385_p1 = scmp.ne.s32.totalorder %s678_s8, %s6384_s20  ;;  %s6389_s10 = sshll.u32 %s6685_s3, 4  ;;  %s6390_s10 = int_to_ptr.vmem [resolvable:$false] %s6389_s10 }
  0x80   : > { %s6391_s17 = scalar_lea.vmem %s6390_s10, 64  ;;  %p6392_p11 = scmp.lt.s32.totalorder %s678_s8, %s6390_s10 }
  0x81   : > { %p6387_p4 = pnand %p6385_p1, %p6921_p12  ;;  %p6393_p0 = scmp.lt.s32.totalorder %s6391_s17, %s6384_s20 }
  0x83   : > { %p6388_p5 = pneg %p6387_p4  ;;  %p6394_p8 = por %p6393_p0, %p6392_p11 }
  0x85   : > { %p6395_p7 = pnand %p6394_p8, %p6388_p5 }
  0x87   : > { %6398 = shalt.err (!%p6395_p7)
}
  0x88   : > { %p8100_p9 = scmp.ne.s32.totalorder %s8090_s28, 0  ;;  %s8101_s7 = sld [smem:[#allocation42_spill]] }
  0x89   : > { %s716_s18 = scalar_lea.vmem [#allocation12], %s6895_s0  ;;  %s8049_s20 = scalar_lea.sflag [#allocation13], %s6887_s14 }
  0x8a   : > { %5740 = dma.hbm_to_vmem [thread:$0]  (!%p8100_p9), %s6954_s15, 32, %s678_s8, %s8045_s6  }
  0x8b   : > { %s723_s26 = sshll.u32 %s716_s18, 4  ;;  %s6983_s26 = int_to_ptr.vmem [resolvable:$true] %s723_s26 }
  0x8e   : > { %s6980_s22 = scalar_lea.hbm %s8101_s7, %s6900_s12  ;;  %s6404_s10 = scalar_lea.hbm %s8101_s7, 8192 }
  0x8f   : > { %s6399_s3 = scalar_lea.hbm %s6980_s22, 4096  ;;  %p6405_p13 = scmp.lt.u32.totalorder %s6980_s22, %s8101_s7 }
  0x90   : > { %p6400_p8 = scmp.ne.s32.totalorder %s6980_s22, %s6399_s3  ;;  %p6406_p3 = scmp.lt.u32.totalorder %s6404_s10, %s6399_s3 }
  0x91   : > { %p6408_p1 = scmp.lt.u32.totalorder %s6399_s3, %s6980_s22 }
  0x92   : > { %p6402_p2 = pnand %p6400_p8, %p6921_p12  ;;  %p6407_p6 = por %p6406_p3, %p6405_p13 }
  0x94   : > { %p6403_p10 = pneg %p6402_p2  ;;  %p6409_p4 = por %p6408_p1, %p6407_p6 }
  0x96   : > { %p6410_p5 = pnand %p6409_p4, %p6403_p10 }
  0x98   : > { %6413 = shalt.err (!%p6410_p5)
}
  0x99   : > { %s6414_s16 = scalar_lea.vmem %s6983_s26, 4096  ;;  %s6686_s18 = smov [#allocation12]  }
  0x9a   : > { %p6415_p11 = scmp.ne.s32.totalorder %s6983_s26, %s6414_s16  ;;  %s6419_s8 = sshll.u32 %s6686_s18, 4  ;;  %s6420_s8 = int_to_ptr.vmem [resolvable:$false] %s6419_s8 }
  0x9b   : > { %s6421_s15 = scalar_lea.vmem %s6420_s8, 8192  ;;  %p6422_p8 = scmp.lt.s32.totalorder %s6983_s26, %s6420_s8 }
  0x9c   : > { %p6417_p0 = pnand %p6415_p11, %p6921_p12  ;;  %p6423_p2 = scmp.lt.s32.totalorder %s6421_s15, %s6414_s16 }
  0x9e   : > { %p6418_p7 = pneg %p6417_p0  ;;  %p6424_p13 = por %p6423_p2, %p6422_p8 }
  0xa0   : > { %p6425_p3 = pnand %p6424_p13, %p6418_p7 }
  0xa2   : > { %6428 = shalt.err (!%p6425_p3)
}
  0xa3   : > { %5746 = dma.hbm_to_vmem [thread:$0]  (!%p8100_p9), %s6980_s22, 4096, %s6983_s26, %s8049_s20, %s8050_s29, %s8050_s29, %s6684_s19  }
  0xa4   : > { %s6687_s3 = smov [#allocation3]   ;;  %s8102_s16 = sld [smem:[#allocation35_spill]] }
  0xa5   : > { %s586_s10 = sshll.u32 %s6687_s3, 4  ;;  %p8103_p6 = scmp.ne.s32.totalorder %s8089_s27, 0  ;;  %s587_s10 = int_to_ptr.vmem [resolvable:$true] %s586_s10 }
  0xa7   : > { %p8104_p1 = pneg %p8103_p6 }
  0xaa   : > { %s6429_s18 = scalar_lea.hbm %s8102_s16, 1024 }
  0xab   : > { %p6430_p10 = scmp.ne.s32.totalorder %s8102_s16, %s6429_s18  ;;  %p6436_p11 = scmp.lt.u32.totalorder %s6429_s18, %s8102_s16 }
  0xad   : > { %p6432_p4 = pnand %p6430_p10, %p8104_p1 }
  0xaf   : > { %p6433_p5 = pneg %p6432_p4 }
  0xb1   : > { %p6438_p0 = pnand %p6436_p11, %p6433_p5 }
  0xb3   : > { %6441 = shalt.err (!%p6438_p0)
}
  0xb4   : > { %s6442_s22 = scalar_lea.vmem %s587_s10, 1024  ;;  %p8105_p8 = pmov %p8104_p1 }
  0xb5   : > { %p6443_p7 = scmp.ne.s32.totalorder %s587_s10, %s6442_s22  ;;  %p6450_p3 = scmp.lt.s32.totalorder %s587_s10, %s587_s10 }
  0xb6   : > { %p6451_p9 = scmp.lt.s32.totalorder %s6442_s22, %s6442_s22 }
  0xb7   : > { %p6445_p2 = pnand %p6443_p7, %p8105_p8 }
  0xb8   : > { %p6452_p12 = por %p6451_p9, %p6450_p3 }
  0xb9   : > { %p6446_p13 = pneg %p6445_p2 }
  0xbb   : > { %p6453_p1 = pnand %p6452_p12, %p6446_p13 }
  0xbd   : > { %6456 = shalt.err (!%p6453_p1)
}
  0xbe   : > { %s8052_s26 = smov 256   ;;  %s8053_s4 = smov 16  }
  0xbf   : > { %5727 = dma.hbm_to_vmem [thread:$0]  (!%p8103_p6), %s8102_s16, 1024, %s587_s10, [#allocation4], %s8052_s26, %s8052_s26, %s8053_s4  }
  0xc0   : > { %s8106_s18 = sld [smem:[#allocation38_spill]]  ;;  %s648_s15 = scalar_lea.vmem [#allocation8], %s6895_s0 }
  0xc1   : > { %s655_s22 = sshll.u32 %s648_s15, 4  ;;  %s8107_s5 = sld [smem:[#allocation40_spill]]  ;;  %s7042_s22 = int_to_ptr.vmem [resolvable:$true] %s655_s22 }
  0xc2   : > { %p8108_p9 = scmp.ne.s32.totalorder %s8097_s9, 0 }
  0xc6   : > { %s7039_s8 = scalar_lea.hbm %s8106_s18, %s6900_s12  ;;  %s6462_s17 = scalar_lea.hbm %s8106_s18, 8192 }
  0xc7   : > { %s7048_s29 = scalar_lea.hbm %s8107_s5, %s6900_s12  ;;  %s6457_s6 = scalar_lea.hbm %s7039_s8, 4096 }
  0xc8   : > { %p6458_p12 = scmp.ne.s32.totalorder %s7039_s8, %s6457_s6  ;;  %p6463_p4 = scmp.lt.u32.totalorder %s7039_s8, %s8106_s18 }
  0xc9   : > { %p6464_p5 = scmp.lt.u32.totalorder %s6462_s17, %s6457_s6  ;;  %p6466_p0 = scmp.lt.u32.totalorder %s6457_s6, %s7039_s8 }
  0xca   : > { %p6460_p10 = pnand %p6458_p12, %p8108_p9 }
  0xcb   : > { %p6465_p11 = por %p6464_p5, %p6463_p4 }
  0xcc   : > { %p6461_p6 = pneg %p6460_p10 }
  0xcd   : > { %p6467_p7 = por %p6466_p0, %p6465_p11 }
  0xcf   : > { %p6468_p8 = pnand %p6467_p7, %p6461_p6 }
  0xd1   : > { %6471 = shalt.err (!%p6468_p8)
}
  0xd2   : > { %s6472_s12 = scalar_lea.vmem %s7042_s22, 4096  ;;  %s6690_s20 = smov [#allocation8]  }
  0xd3   : > { %p6473_p2 = scmp.ne.s32.totalorder %s7042_s22, %s6472_s12  ;;  %s6477_s15 = sshll.u32 %s6690_s20, 4  ;;  %s6478_s15 = int_to_ptr.vmem [resolvable:$false] %s6477_s15 }
  0xd4   : > { %s6479_s26 = scalar_lea.vmem %s6478_s15, 8192  ;;  %p6480_p1 = scmp.lt.s32.totalorder %s7042_s22, %s6478_s15 }
  0xd5   : > { %p6475_p13 = pnand %p6473_p2, %p8108_p9  ;;  %p6481_p12 = scmp.lt.s32.totalorder %s6479_s26, %s6472_s12 }
  0xd7   : > { %p6476_p3 = pneg %p6475_p13  ;;  %p6482_p10 = por %p6481_p12, %p6480_p1 }
  0xd9   : > { %p6483_p4 = pnand %p6482_p10, %p6476_p3 }
  0xdb   : > { %6486 = shalt.err (!%p6483_p4)
}
  0xdc   : > { %p8109_p6 = scmp.ne.s32.totalorder %s8090_s28, 0  ;;  %s8110_s27 = smov 128  }
  0xdd   : > { %s8111_s6 = scalar_lea.sflag [#allocation7], %s6887_s14  ;;  %s688_s10 = scalar_lea.vmem [#allocation11], %s6895_s0 }
  0xde   : > { %5737 = dma.hbm_to_vmem [thread:$0]  (!%p8109_p6), %s7039_s8, 4096, %s7042_s22, %s8111_s6, %s8110_s27, %s8110_s27, %s6684_s19  }
  0xdf   : > { %s695_s3 = sshll.u32 %s688_s10, 4  ;;  %s5150_s17 = sshll.u32 %s6890_s23, 9  ;;  %s7078_s3 = int_to_ptr.vmem [resolvable:$true] %s695_s3 }
  0xe0   : > { %s6487_s21 = scalar_lea.hbm %s7048_s29, 4096  ;;  %s6492_s15 = scalar_lea.hbm %s8107_s5, 8192 }
  0xe1   : > { %p6488_p5 = scmp.ne.s32.totalorder %s7048_s29, %s6487_s21  ;;  %p6493_p7 = scmp.lt.u32.totalorder %s7048_s29, %s8107_s5 }
  0xe2   : > { %p6494_p8 = scmp.lt.u32.totalorder %s6492_s15, %s6487_s21  ;;  %p6496_p13 = scmp.lt.u32.totalorder %s6487_s21, %s7048_s29 }
  0xe3   : > { %p6490_p11 = pnand %p6488_p5, %p8108_p9 }
  0xe4   : > { %p6495_p2 = por %p6494_p8, %p6493_p7 }
  0xe5   : > { %p6491_p0 = pneg %p6490_p11 }
  0xe6   : > { %p6497_p3 = por %p6496_p13, %p6495_p2 }
  0xe8   : > { %p6498_p1 = pnand %p6497_p3, %p6491_p0 }
  0xea   : > { %6501 = shalt.err (!%p6498_p1)
}
  0xeb   : > { %s6502_s0 = scalar_lea.vmem %s7078_s3, 4096  ;;  %s6691_s8 = smov [#allocation11]  }
  0xec   : > { %p6503_p12 = scmp.ne.s32.totalorder %s7078_s3, %s6502_s0  ;;  %s6507_s22 = sshll.u32 %s6691_s8, 4  ;;  %s6508_s22 = int_to_ptr.vmem [resolvable:$false] %s6507_s22 }
  0xed   : > { %s6509_s4 = scalar_lea.vmem %s6508_s22, 8192  ;;  %p6510_p5 = scmp.lt.s32.totalorder %s7078_s3, %s6508_s22 }
  0xee   : > { %p6505_p10 = pnand %p6503_p12, %p8108_p9  ;;  %p6511_p11 = scmp.lt.s32.totalorder %s6509_s4, %s6502_s0 }
  0xf0   : > { %p6506_p4 = pneg %p6505_p10  ;;  %p6512_p7 = por %p6511_p11, %p6510_p5 }
  0xf2   : > { %p6513_p8 = pnand %p6512_p7, %p6506_p4 }
  0xf4   : > { %6516 = shalt.err (!%p6513_p8)
}
  0xf5   : > { %s8112_s6 = scalar_lea.sflag [#allocation10], %s6887_s14  ;;  %s5484_s10 = sshll.u32 %s6673_s1, 13 }
  0xf6   : > { %5743 = dma.hbm_to_vmem [thread:$0]  (!%p8109_p6), %s7048_s29, 4096, %s7078_s3, %s8112_s6, %s8110_s27, %s8110_s27, %s6684_s19  }
  0xf7   : > { %s758_s21 = scalar_lea.vmem [#allocation14], %s5150_s17  ;;  %s8113_s11 = sld [smem:[#allocation46_spill]] }
  0xf8   : > { %s765_s12 = sshll.u32 %s758_s21, 4  ;;  %s7116_s12 = int_to_ptr.vmem [resolvable:$true] %s765_s12 }
  0xfd   : > { %s7114_s26 = scalar_lea.hbm %s8113_s11, %s5484_s10  ;;  %s6522_s8 = scalar_lea.hbm %s8113_s11, 16384 }
  0xfe   : > { %s6517_s0 = scalar_lea.hbm %s7114_s26, 8192  ;;  %p6523_p3 = scmp.lt.u32.totalorder %s7114_s26, %s8113_s11 }
  0xff   : > { %p6518_p0 = scmp.ne.s32.totalorder %s7114_s26, %s6517_s0  ;;  %p6524_p1 = scmp.lt.u32.totalorder %s6522_s8, %s6517_s0 }
 0x100   : > { %p6526_p10 = scmp.lt.u32.totalorder %s6517_s0, %s7114_s26 }
 0x101   : > { %p6520_p2 = pnand %p6518_p0, %p8108_p9  ;;  %p6525_p12 = por %p6524_p1, %p6523_p3 }
 0x103   : > { %p6521_p13 = pneg %p6520_p2  ;;  %p6527_p4 = por %p6526_p10, %p6525_p12 }
 0x105   : > { %p6528_p5 = pnand %p6527_p4, %p6521_p13 }
 0x107   : > { %6531 = shalt.err (!%p6528_p5)
}
 0x108   : > { %s6532_s6 = scalar_lea.vmem %s7116_s12, 8192  ;;  %s6692_s21 = smov [#allocation14]  }
 0x109   : > { %p6533_p11 = scmp.ne.s32.totalorder %s7116_s12, %s6532_s6  ;;  %s6537_s20 = sshll.u32 %s6692_s21, 4  ;;  %s6538_s20 = int_to_ptr.vmem [resolvable:$false] %s6537_s20 }
 0x10a   : > { %s6539_s15 = scalar_lea.vmem %s6538_s20, 16384  ;;  %p6540_p0 = scmp.lt.s32.totalorder %s7116_s12, %s6538_s20 }
 0x10b   : > { %p6535_p7 = pnand %p6533_p11, %p8108_p9  ;;  %p6541_p2 = scmp.lt.s32.totalorder %s6539_s15, %s6532_s6 }
 0x10d   : > { %p6536_p8 = pneg %p6535_p7  ;;  %p6542_p3 = por %p6541_p2, %p6540_p0 }
 0x10f   : > { %p6543_p1 = pnand %p6542_p3, %p6536_p8 }
 0x111   : > { %6546 = shalt.err (!%p6543_p1)
}
 0x112   : > { %s8114_s0 = smov 16   ;;  %s8115_s29 = smov 256  }
 0x113   : > { %s8116_s3 = scalar_lea.sflag [#allocation13], %s6887_s14  ;;  %s8117_s13 = sld [smem:[#allocation48_spill]] }
 0x114   : > { %5749 = dma.hbm_to_vmem [thread:$0]  (!%p8109_p6), %s7114_s26, 8192, %s7116_s12, %s8116_s3, %s8115_s29, %s8115_s29, %s8114_s0  }
 0x115   : > { %s786_s6 = scalar_lea.vmem [#allocation15], %s5150_s17  ;;  %s783_s20 = scalar_lea.sflag [#allocation16], %s6887_s14 }
 0x116   : > { %s793_s21 = sshll.u32 %s786_s6, 4  ;;  %s7153_s21 = int_to_ptr.vmem [resolvable:$true] %s793_s21 }
 0x119   : > { %s7149_s4 = scalar_lea.hbm %s8117_s13, %s5484_s10  ;;  %s6552_s10 = scalar_lea.hbm %s8117_s13, 16384 }
 0x11a   : > { %s6547_s15 = scalar_lea.hbm %s7149_s4, 8192  ;;  %p6553_p4 = scmp.lt.u32.totalorder %s7149_s4, %s8117_s13 }
 0x11b   : > { %p6548_p13 = scmp.ne.s32.totalorder %s7149_s4, %s6547_s15  ;;  %p6554_p5 = scmp.lt.u32.totalorder %s6552_s10, %s6547_s15 }
 0x11c   : > { %p6556_p7 = scmp.lt.u32.totalorder %s6547_s15, %s7149_s4 }
 0x11d   : > { %p6550_p12 = pnand %p6548_p13, %p8108_p9  ;;  %p6555_p11 = por %p6554_p5, %p6553_p4 }
 0x11f   : > { %p6551_p10 = pneg %p6550_p12  ;;  %p6557_p8 = por %p6556_p7, %p6555_p11 }
 0x121   : > { %p6558_p0 = pnand %p6557_p8, %p6551_p10 }
 0x123   : > { %6561 = shalt.err (!%p6558_p0)
}
 0x124   : > { %s6562_s17 = scalar_lea.vmem %s7153_s21, 8192  ;;  %s6693_s29 = smov [#allocation15]  }
 0x125   : > { %p6563_p2 = scmp.ne.s32.totalorder %s7153_s21, %s6562_s17  ;;  %s6567_s3 = sshll.u32 %s6693_s29, 4  ;;  %s6568_s3 = int_to_ptr.vmem [resolvable:$false] %s6567_s3 }
 0x126   : > { %s6569_s8 = scalar_lea.vmem %s6568_s3, 16384  ;;  %p6570_p13 = scmp.lt.s32.totalorder %s7153_s21, %s6568_s3 }
 0x127   : > { %p6565_p3 = pnand %p6563_p2, %p8108_p9  ;;  %p6571_p12 = scmp.lt.s32.totalorder %s6569_s8, %s6562_s17 }
 0x129   : > { %p6566_p1 = pneg %p6565_p3  ;;  %p6572_p4 = por %p6571_p12, %p6570_p13 }
 0x12b   : > { %p6573_p5 = pnand %p6572_p4, %p6566_p1 }
 0x12d   : > { %6576 = shalt.err (!%p6573_p5)
}
 0x12e   : > { %5752 = dma.hbm_to_vmem [thread:$0]  (!%p8109_p6), %s7149_s4, 8192, %s7153_s21, %s783_s20, %s8110_s27, %s8110_s27, %s6684_s19  }
 0x12f   : > { %p8118_p9 = scmp.ne.s32.totalorder %s8088_s25, 0 }
 0x131   : > { %826 = sbr.rel (%p8118_p9) target bundleno = 4474 (0x117a), region = 96 }
 0x138   : > { %p8119_p10 = scmp.eq.s32.totalorder %s6830_s2, 0 }
 0x13a   : > { %6628 = dma.done.wait (%p8119_p10), [#allocation4], 1024   ;;  %p8120_p11 = pmov %p8119_p10 }
 0x13b   : > { %s832_s9 = sand.u32 1, %s6830_s2   ;;  %s834_s28 = sand.u32 1, %s6661_s30  }
 0x13c   : > { %6630 = vsyncadd (%p8120_p11), [#allocation4], 4294966272  ;;  %s5158_s22 = sshll.u32 %s834_s28, 8  ;;  %s833_s6 = scalar_lea.sflag [#allocation7], %s832_s9 }
 0x13d   : > { %s7190_s14 = scalar_lea.vmem [#allocation6], %s5158_s22  ;;  %p8121_p7 = scmp.ne.s32.totalorder %s8087_s24, 0 }
 0x13f   : > { %6632 = dma.done.wait (%p8121_p7), %s833_s6, 8192  }
 0x140   : > { %6634 = vsyncadd (%p8121_p7), %s833_s6, 4294959104  ;;  %s5160_s25 = sshll.u32 %s834_s28, 1  ;;  %s7196_s19 = scalar_lea.vmem [#allocation8], %s5158_s22 }
 0x141   : > { %s851_s27 = scalar_lea.sflag [#allocation10], %s832_s9  ;;  %s7198_s4 = scalar_lea.vmem [#allocation9], %s5160_s25 }
 0x142   : > { %6636 = dma.done.wait (%p8121_p7), %s851_s27, 4128  }
 0x143   : > { %6638 = vsyncadd (%p8121_p7), %s851_s27, 4294963168  ;;  %s7204_s21 = scalar_lea.vmem [#allocation11], %s5158_s22  ;;  %s869_s20 = scalar_lea.sflag [#allocation13], %s832_s9 }
 0x144   : > { %s7206_s15 = scalar_lea.vmem [#allocation12], %s5158_s22 }
 0x145   : > { %6640 = dma.done.wait (%p8121_p7), %s869_s20, 12288  }
 0x146   : > { %6642 = vsyncadd (%p8121_p7), %s869_s20, 4294955008  ;;  %s5163_s12 = sshll.u32 %s834_s28, 9  ;;  %s887_s10 = scalar_lea.sflag [#allocation16], %s832_s9 }
 0x147   : > { %s7212_s26 = scalar_lea.vmem [#allocation14], %s5163_s12  ;;  %s7214_s0 = scalar_lea.vmem [#allocation15], %s5163_s12 }
 0x148   : > { %8122 = sst [smem:[#allocation34_spill]] %s7214_s0 }
 0x149   : > { %6644 = dma.done.wait (%p8121_p7), %s887_s10, 8192  }
 0x14a   : > { %6646 = vsyncadd (%p8121_p7), %s887_s10, 4294959104  ;;  %p8123_p6 = pmov %p8119_p10 }
 0x14c   : > { %6648 = dma.done.wait (%p8123_p6), [#allocation16], 2048   ;;  %p8124_p8 = pmov %p8123_p6 }
 0x14d   : > { %s8125_s23 = sld [smem:[#allocation28_spill]]  ;;  %s8129_s13 = sld [smem:[#allocation44_spill]] }
 0x14e   : > { %6650 = vsyncadd (%p8124_p8), [#allocation16], 4294965248  ;;  %s8126_s9 = sld [smem:[#allocation37_spill]]  ;;  %s8131_s3 = sld [smem:[#allocation47_spill]] }
 0x14f   : > { %s8130_s30 = sld [smem:[#allocation45_spill]]  ;;  %s8132_s6 = sld [smem:[#allocation49_spill]] }
 0x150   : > { %s8133_s12 = sld [smem:[#allocation50_spill]]  ;;  %s8134_s11 = sld [smem:[#allocation51_spill]] }
 0x153   : > { %p1011_p0 = scmp.lt.s32.totalorder %s8125_s23, 1  ;;  %p5175_p2 = scmp.ne.s32.totalorder %s8125_s23, 0 }
 0x154   : > { %v1053_v0 = vld [vmem:[#allocation3] sm:$0xff] (!%p5175_p2)  ;;  %v1054_v1 = vld [vmem:[#allocation3 + $0x8] sm:$0xff] (!%p5175_p2)  ;;  %v1055_v2 = vld [vmem:[#allocation3 + $0x10] sm:$0xff] (!%p5175_p2) }
 0x155   : > { %s1012_s17 = scalar_select %p1011_p0, %s8125_s23, 1 }
 0x156   : > { %1052 = sbr.rel (%p5175_p2) target bundleno = 349 (0x15d), region = 136  ;;  %1061 = vst [vmem:[#allocation2] sm:$0xff] (!%p5175_p2), %v1053_v0  ;;  %1062 = vst [vmem:[#allocation2 + $0x8] sm:$0xff] (!%p5175_p2), %v1054_v1  ;;  %v1056_v3 = vld [vmem:[#allocation3 + $0x18] sm:$0xff] (!%p5175_p2)  ;;  %v1057_v4 = vld [vmem:[#allocation3 + $0x20] sm:$0xff] (!%p5175_p2) }
 0x157   : > { %s7226_s29 = sshll.u32 %s1012_s17, 1  ;;  %s5171_s24 = sshll.u32 %s1012_s17, 2  ;;  %1063 = vst [vmem:[#allocation2 + $0x10] sm:$0xff] (!%p5175_p2), %v1055_v2  ;;  %v1058_v5 = vld [vmem:[#allocation3 + $0x28] sm:$0xff] (!%p5175_p2)  ;;  %1064 = vst [vmem:[#allocation2 + $0x18] sm:$0xff] (!%p5175_p2), %v1056_v3  ;;  %v1059_v6 = vld [vmem:[#allocation3 + $0x30] sm:$0xff] (!%p5175_p2) }
 0x158   : > { %s1014_s28 = scalar_lea.vmem %s8126_s9, %s7226_s29  ;;  %s1026_s16 = scalar_lea.vmem %s8129_s13, %s7226_s29  ;;  %1065 = vst [vmem:[#allocation2 + $0x20] sm:$0xff] (!%p5175_p2), %v1057_v4  ;;  %1066 = vst [vmem:[#allocation2 + $0x28] sm:$0xff] (!%p5175_p2), %v1058_v5  ;;  %v1060_v7 = vld [vmem:[#allocation3 + $0x38] sm:$0xff] (!%p5175_p2) }
 0x159   : > { %s1030_s17 = scalar_lea.vmem %s8130_s30, %s7226_s29  ;;  %s7251_s8 = scalar_lea.vmem %s8131_s3, %s5171_s24  ;;  %1067 = vst [vmem:[#allocation2 + $0x30] sm:$0xff] (!%p5175_p2), %v1059_v6  ;;  %1068 = vst [vmem:[#allocation2 + $0x38] sm:$0xff] (!%p5175_p2), %v1060_v7 }
 0x15a   : > { %s1038_s25 = scalar_lea.vmem %s8132_s6, %s7226_s29  ;;  %s1042_s10 = scalar_lea.vmem %s8133_s12, %s7226_s29 }
 0x15b   : > { %s1046_s13 = scalar_lea.vmem %s8134_s11, %s7226_s29 }
 0x15d PF: > { %v5823_v8 = vld [vmem:[%s7190_s14 + $0x4] ss:$8 sps:$4 sm:$0xff]   ;;  %v5825_v9 = vld [vmem:[%s7190_s14] ss:$8 sps:$4 sm:$0xff]   ;;  %v5826_v10 = vld [vmem:[%s7190_s14 + $0x14] ss:$8 sps:$4 sm:$0xff]  }
 0x15e   : > { %1285 = vmatprep.subr.bf16.mxu0 %v5823_v8  ;;  %v5828_v11 = vld [vmem:[%s7190_s14 + $0x10] ss:$8 sps:$4 sm:$0xff]   ;;  %v5829_v12 = vld [vmem:[%s7190_s14 + $0x24] ss:$8 sps:$4 sm:$0xff]   ;;  %v5831_v13 = vld [vmem:[%s7190_s14 + $0x20] ss:$8 sps:$4 sm:$0xff]  }
 0x15f   : > { %1286 = vmatpush1.bf16.msra.mxu0 %v5825_v9  ;;  %v5832_v14 = vld [vmem:[%s7190_s14 + $0x34] ss:$8 sps:$4 sm:$0xff]   ;;  %v5834_v15 = vld [vmem:[%s7190_s14 + $0x30] ss:$8 sps:$4 sm:$0xff]   ;;  %v5835_v16 = vld [vmem:[%s7190_s14 + $0x44] ss:$8 sps:$4 sm:$0xff]  }
 0x160   : > { %1287 = vmatprep.subr.bf16.mxu0 %v5826_v10  ;;  %v5837_v17 = vld [vmem:[%s7190_s14 + $0x40] ss:$8 sps:$4 sm:$0xff]   ;;  %v5838_v18 = vld [vmem:[%s7190_s14 + $0x54] ss:$8 sps:$4 sm:$0xff]   ;;  %v5840_v19 = vld [vmem:[%s7190_s14 + $0x50] ss:$8 sps:$4 sm:$0xff]  }
 0x161   : > { %v5841_v20 = vld [vmem:[%s7190_s14 + $0x64] ss:$8 sps:$4 sm:$0xff]   ;;  %v1072_v22 = vld [vmem:[#allocation2 + $0x18] sm:$0xff]  ;;  %v5843_v24 = vld [vmem:[%s7190_s14 + $0x60] ss:$8 sps:$4 sm:$0xff]   ;;  %vm6695_vm0 = vmmov 0  }
 0x162   : > { %v1070_v21 = vld [vmem:[#allocation2 + $0x8] sm:$0xff]  ;;  %v5844_v25 = vld [vmem:[%s7190_s14 + $0x74] ss:$8 sps:$4 sm:$0xff]   ;;  %v5846_v26 = vld [vmem:[%s7190_s14 + $0x70] ss:$8 sps:$4 sm:$0xff]   ;;  %vm1904_vm1 = vcmask 523264  }
 0x163   : > { %1288 = vmatpush1.bf16.msra.mxu0 %v5828_v11  ;;  %v7279_v23 = vpack.c.bf16 %v1072_v22, %v1070_v21  ;;  %v5847_v27 = vld [vmem:[%s7190_s14 + $0x84] ss:$8 sps:$4 sm:$0xff]   ;;  %v5849_v28 = vld [vmem:[%s7190_s14 + $0x80] ss:$8 sps:$4 sm:$0xff]   ;;  %v5850_v29 = vld [vmem:[%s7190_s14 + $0x94] ss:$8 sps:$4 sm:$0xff]   ;;  %v1115_v21 = vlaneseq }
 0x164   : > { %1289 = vmatprep.subr.bf16.mxu0 %v5829_v12  ;;  %v5852_v30 = vld [vmem:[%s7190_s14 + $0x90] ss:$8 sps:$4 sm:$0xff]   ;;  %v5853_v31 = vld [vmem:[%s7190_s14 + $0xa4] ss:$8 sps:$4 sm:$0xff]   ;;  %v5855_v32 = vld [vmem:[%s7190_s14 + $0xa0] ss:$8 sps:$4 sm:$0xff]  }
 0x165   : > { %1317 = vmatprep.mubr.bf16.mxu0 %v7279_v23  ;;  %v5856_v33 = vld [vmem:[%s7190_s14 + $0xb4] ss:$8 sps:$4 sm:$0xff]   ;;  %v5858_v34 = vld [vmem:[%s7190_s14 + $0xb0] ss:$8 sps:$4 sm:$0xff]   ;;  %v5859_v35 = vld [vmem:[%s7190_s14 + $0xc4] ss:$8 sps:$4 sm:$0xff]  }
 0x166   : > { %v5861_v36 = vld [vmem:[%s7190_s14 + $0xc0] ss:$8 sps:$4 sm:$0xff]   ;;  %v5862_v37 = vld [vmem:[%s7190_s14 + $0xd4] ss:$8 sps:$4 sm:$0xff]   ;;  %v5864_v38 = vld [vmem:[%s7190_s14 + $0xd0] ss:$8 sps:$4 sm:$0xff]  }
 0x167   : > { %1290 = vmatpush1.bf16.msra.mxu0 %v5831_v13  ;;  %v5865_v39 = vld [vmem:[%s7190_s14 + $0xe4] ss:$8 sps:$4 sm:$0xff]   ;;  %v5867_v40 = vld [vmem:[%s7190_s14 + $0xe0] ss:$8 sps:$4 sm:$0xff]   ;;  %v5868_v41 = vld [vmem:[%s7190_s14 + $0xf4] ss:$8 sps:$4 sm:$0xff]  }
 0x168   : > { %1291 = vmatprep.subr.bf16.mxu0 %v5832_v14  ;;  %v5870_v42 = vld [vmem:[%s7190_s14 + $0xf0] ss:$8 sps:$4 sm:$0xff]   ;;  %v1069_v43 = vld [vmem:[#allocation2] sm:$0xff]  ;;  %v1074_v46 = vld [vmem:[#allocation2 + $0x28] sm:$0xff]  ;;  %v7350_v22 = vshrl.u32 %v1115_v21, 7  ;;  %vm1999_vm2 = vcmask 130048  }
 0x169   : > { %v1071_v44 = vld [vmem:[#allocation2 + $0x10] sm:$0xff]  ;;  %v5873_v45 = vld [vmem:[%s7196_s19 + $0x4] ss:$8 sps:$4 sm:$0xff]   ;;  %v1076_v47 = vld [vmem:[#allocation2 + $0x38] sm:$0xff]  ;;  %s8136_s14 = sld [smem:[#allocation41_spill]]  ;;  %s8138_s0 = sld [smem:[#allocation43_spill]] }
 0x16a   : > { %v5871_v48 = vld [vmem:[%s7196_s19] ss:$8 sps:$4 sm:$0xff]   ;;  %v7303_v49 = vpack.c.bf16 %v1071_v44, %v1069_v43  ;;  %v5876_v50 = vld [vmem:[%s7196_s19 + $0x14] ss:$8 sps:$4 sm:$0xff]   ;;  %v7306_v51 = vpack.c.bf16 %v1076_v47, %v1074_v46  ;;  %v5874_v52 = vld [vmem:[%s7196_s19 + $0x10] ss:$8 sps:$4 sm:$0xff]  }
 0x16b   : > { %1292 = vmatpush1.bf16.msra.mxu0 %v5834_v15  ;;  %v1073_v53 = vld [vmem:[#allocation2 + $0x20] sm:$0xff]  ;;  %v1075_v54 = vld [vmem:[#allocation2 + $0x30] sm:$0xff]  ;;  %s8140_s24 = sld [smem:[#allocation34_spill]] }
 0x16c   : > { %1293 = vmatprep.subr.bf16.mxu0 %v5835_v16  ;;  %v5879_v55 = vld [vmem:[%s7196_s19 + $0x24] ss:$8 sps:$4 sm:$0xff]   ;;  %v5877_v56 = vld [vmem:[%s7196_s19 + $0x20] ss:$8 sps:$4 sm:$0xff]   ;;  %v5882_v57 = vld [vmem:[%s7196_s19 + $0x34] ss:$8 sps:$4 sm:$0xff]   ;;  %v7314_v58 = vpack.c.bf16 %v1075_v54, %v1073_v53 }
 0x16d   : > { %v5880_v59 = vld [vmem:[%s7196_s19 + $0x30] ss:$8 sps:$4 sm:$0xff]   ;;  %v5885_v60 = vld [vmem:[%s7196_s19 + $0x44] ss:$8 sps:$4 sm:$0xff]   ;;  %v5883_v61 = vld [vmem:[%s7196_s19 + $0x40] ss:$8 sps:$4 sm:$0xff]  }
 0x16e   : > { %v5888_v62 = vld [vmem:[%s7196_s19 + $0x54] ss:$8 sps:$4 sm:$0xff]   ;;  %v5886_v63 = vld [vmem:[%s7196_s19 + $0x50] ss:$8 sps:$4 sm:$0xff]   ;;  %v5891_v0 = vld [vmem:[%s7196_s19 + $0x64] ss:$8 sps:$4 sm:$0xff]  }
 0x16f   : > { %1294 = vmatpush1.bf16.msra.mxu0 %v5837_v17  ;;  %v5889_v1 = vld [vmem:[%s7196_s19 + $0x60] ss:$8 sps:$4 sm:$0xff]   ;;  %v5894_v2 = vld [vmem:[%s7196_s19 + $0x74] ss:$8 sps:$4 sm:$0xff]   ;;  %v5892_v3 = vld [vmem:[%s7196_s19 + $0x70] ss:$8 sps:$4 sm:$0xff]   ;;  %s8139_s23 = scalar_lea.vmem %s8138_s0, %s7226_s29 }
 0x170   : > { %1295 = vmatprep.subr.bf16.mxu0 %v5838_v18  ;;  %v5897_v4 = vld [vmem:[%s7196_s19 + $0x84] ss:$8 sps:$4 sm:$0xff]   ;;  %v5895_v5 = vld [vmem:[%s7196_s19 + $0x80] ss:$8 sps:$4 sm:$0xff]   ;;  %v5900_v6 = vld [vmem:[%s7196_s19 + $0x94] ss:$8 sps:$4 sm:$0xff]  }
 0x171   : > { %v5898_v7 = vld [vmem:[%s7196_s19 + $0x90] ss:$8 sps:$4 sm:$0xff]   ;;  %v5903_v8 = vld [vmem:[%s7196_s19 + $0xa4] ss:$8 sps:$4 sm:$0xff]   ;;  %v5901_v9 = vld [vmem:[%s7196_s19 + $0xa0] ss:$8 sps:$4 sm:$0xff]  }
 0x172   : > { %v5906_v10 = vld [vmem:[%s7196_s19 + $0xb4] ss:$8 sps:$4 sm:$0xff]   ;;  %v5904_v11 = vld [vmem:[%s7196_s19 + $0xb0] ss:$8 sps:$4 sm:$0xff]   ;;  %v5909_v12 = vld [vmem:[%s7196_s19 + $0xc4] ss:$8 sps:$4 sm:$0xff]  }
 0x173   : > { %1296 = vmatpush1.bf16.msra.mxu0 %v5840_v19  ;;  %v5907_v13 = vld [vmem:[%s7196_s19 + $0xc0] ss:$8 sps:$4 sm:$0xff]   ;;  %v5912_v14 = vld [vmem:[%s7196_s19 + $0xd4] ss:$8 sps:$4 sm:$0xff]   ;;  %v5910_v15 = vld [vmem:[%s7196_s19 + $0xd0] ss:$8 sps:$4 sm:$0xff]  }
 0x174   : > { %1297 = vmatprep.subr.bf16.mxu0 %v5841_v20  ;;  %v5915_v16 = vld [vmem:[%s7196_s19 + $0xe4] ss:$8 sps:$4 sm:$0xff]   ;;  %v5913_v17 = vld [vmem:[%s7196_s19 + $0xe0] ss:$8 sps:$4 sm:$0xff]   ;;  %v5918_v18 = vld [vmem:[%s7196_s19 + $0xf4] ss:$8 sps:$4 sm:$0xff]  }
 0x175   : > { %v5916_v19 = vld [vmem:[%s7196_s19 + $0xf0] ss:$8 sps:$4 sm:$0xff]   ;;  %v6694_v20 = vmov 0.0   ;;  %v5919_v21 = vld [vmem:[%s7204_s21] ss:$8 sps:$4 sm:$0xff]   ;;  %s8137_s19 = scalar_lea.vmem %s8136_s14, %s7226_s29  ;;  %s8146_s29 = sld [smem:[#allocation28_spill]] }
 0x176   : > { %5546 = vmatprep.subr.bf16.mxu1 %v6694_v20  ;;  %5548 = vmatprep.mubr.msk.bf16.mxu1 %vm6695_vm0, %v6694_v20 }
 0x177   : > { %1298 = vmatpush1.bf16.msra.mxu0 %v5843_v24  ;;  %v7353_v24 = vsub.s32 0, %v7350_v22 }
 0x178   : > { %1299 = vmatprep.subr.bf16.mxu0 %v5844_v25  ;;  %v1113_v25 = vld [vmem:[%s1014_s28] sm:$0x3] }
 0x17b   : > { %1300 = vmatpush1.bf16.msra.mxu0 %v5846_v26  ;;  %v1118_v26 = vrot.slane %v1113_v25, %v7353_v24  ;;  %p5456_p3 = scmp.ge.s32.totalorder %s8146_s29, 1 }
 0x17c   : > { %1301 = vmatprep.subr.bf16.mxu0 %v5847_v27 }
 0x17f   : > { %1302 = vmatpush1.bf16.msra.mxu0 %v5849_v28 }
 0x180   : > { %1303 = vmatprep.subr.bf16.mxu0 %v5850_v29 }
 0x183   : > { %1304 = vmatpush1.bf16.msra.mxu0 %v5852_v30 }
 0x184   : > { %1305 = vmatprep.subr.bf16.mxu0 %v5853_v31 }
 0x187   : > { %1306 = vmatpush1.bf16.msra.mxu0 %v5855_v32 }
 0x188   : > { %1307 = vmatprep.subr.bf16.mxu0 %v5856_v33 }
 0x18b   : > { %1308 = vmatpush1.bf16.msra.mxu0 %v5858_v34 }
 0x18c   : > { %1309 = vmatprep.subr.bf16.mxu0 %v5859_v35 }
 0x18f   : > { %1310 = vmatpush1.bf16.msra.mxu0 %v5861_v36 }
 0x190   : > { %1311 = vmatprep.subr.bf16.mxu0 %v5862_v37 }
 0x193   : > { %1312 = vmatpush1.bf16.msra.mxu0 %v5864_v38 }
 0x194   : > { %1313 = vmatprep.subr.bf16.mxu0 %v5865_v39 }
 0x197   : > { %1314 = vmatpush1.bf16.msra.mxu0 %v5867_v40 }
 0x198   : > { %1315 = vmatprep.subr.bf16.mxu0 %v5868_v41 }
 0x19b   : > { %1316 = vmatpush1.bf16.msra.mxu0 %v5870_v42 }
 0x19c   : > { %1542 = vmatprep.subr.bf16.mxu0 %v5873_v45 }
 0x19e   : > { %1318 = vmatmul.mubr.bf16.vlgmr.msra.gmra.mrb[0].mxu0 %v7303_v49 }
 0x19f   : > { %1543 = vmatpush1.bf16.msra.mxu0 %v5871_v48  ;;  %1327 = vmatprep.mubr.bf16.mxu0 %v7306_v51 }
 0x1a0   : > { %1544 = vmatprep.subr.bf16.mxu0 %v5876_v50 }
 0x1a3   : > { %1545 = vmatpush1.bf16.msra.mxu0 %v5874_v52 }
 0x1a4   : > { %1546 = vmatprep.subr.bf16.mxu0 %v5879_v55 }
 0x1a6   : > { %1328 = vmatmul.mubr.bf16.gmra.mrb[4].mxu0 %v7314_v58 }
 0x1a7   : > { %1547 = vmatpush1.bf16.msra.mxu0 %v5877_v56  ;;  %1574 = vmatprep.mubr.bf16.mxu0 %v7279_v23 }
 0x1a8   : > { %1548 = vmatprep.subr.bf16.mxu0 %v5882_v57 }
 0x1ab   : > { %1549 = vmatpush1.bf16.msra.mxu0 %v5880_v59  ;;  %v1370_v59 = vld [vmem:[%s7198_s4] sm:$0x3]  ;;  %s6696_s4 = smov 64  }
 0x1ac   : > { %1550 = vmatprep.subr.bf16.mxu0 %v5885_v60 }
 0x1af   : > { %1551 = vmatpush1.bf16.msra.mxu0 %v5883_v61  ;;  %v1375_v61 = vrot.slane %v1370_v59, %v7353_v24 }
 0x1b0   : > { %1552 = vmatprep.subr.bf16.mxu0 %v5888_v62 }
 0x1b3   : > { %1553 = vmatpush1.bf16.msra.mxu0 %v5886_v63 }
 0x1b4   : > { %1554 = vmatprep.subr.bf16.mxu0 %v5891_v0 }
 0x1b7   : > { %1555 = vmatpush1.bf16.msra.mxu0 %v5889_v1 }
 0x1b8   : > { %1556 = vmatprep.subr.bf16.mxu0 %v5894_v2 }
 0x1bb   : > { %1557 = vmatpush1.bf16.msra.mxu0 %v5892_v3 }
 0x1bc   : > { %1558 = vmatprep.subr.bf16.mxu0 %v5897_v4 }
 0x1bf   : > { %1559 = vmatpush1.bf16.msra.mxu0 %v5895_v5 }
 0x1c0   : > { %1560 = vmatprep.subr.bf16.mxu0 %v5900_v6 }
 0x1c3   : > { %1561 = vmatpush1.bf16.msra.mxu0 %v5898_v7 }
 0x1c4   : > { %1562 = vmatprep.subr.bf16.mxu0 %v5903_v8 }
 0x1c7   : > { %1563 = vmatpush1.bf16.msra.mxu0 %v5901_v9 }
 0x1c8   : > { %1564 = vmatprep.subr.bf16.mxu0 %v5906_v10 }
 0x1cb   : > { %1565 = vmatpush1.bf16.msra.mxu0 %v5904_v11 }
 0x1cc   : > { %1566 = vmatprep.subr.bf16.mxu0 %v5909_v12 }
 0x1cf   : > { %1567 = vmatpush1.bf16.msra.mxu0 %v5907_v13 }
 0x1d0   : > { %1568 = vmatprep.subr.bf16.mxu0 %v5912_v14 }
 0x1d3   : > { %1569 = vmatpush1.bf16.msra.mxu0 %v5910_v15 }
 0x1d4   : > { %1570 = vmatprep.subr.bf16.mxu0 %v5915_v16 }
 0x1d7   : > { %1571 = vmatpush1.bf16.msra.mxu0 %v5913_v17 }
 0x1d8   : > { %1572 = vmatprep.subr.bf16.mxu0 %v5918_v18 }
 0x1db   : > { %1573 = vmatpush1.bf16.msra.mxu0 %v5916_v19 }
 0x1de   : > { %1575 = vmatmul.mubr.bf16.vlgmr.msra.gmra.mrb[8].mxu0 %v7303_v49 }
 0x1df   : > { %1584 = vmatprep.mubr.bf16.mxu0 %v7306_v51 }
 0x1e6   : > { %1585 = vmatmul.mubr.bf16.gmra.mrb[12].mxu0 %v7314_v58 }
 0x1e7   : > { %1831 = vmatprep.mubr.bf16.mxu0 %v7279_v23  ;;  %v7361_v23 = vsub.s32 1, %v7350_v22 }
 0x1e9   : > { %v1122_v27 = vrot.slane %v1113_v25, %v7361_v23  ;;  %v1379_v60 = vrot.slane %v1370_v59, %v7361_v23  ;;  %v5921_v25 = vld [vmem:[%s7204_s21 + $0x4] ss:$8 sps:$4 sm:$0xff]  }
 0x1ea   : > { %1799 = vmatprep.subr.bf16.mxu0 %v5921_v25  ;;  %v5963_v59 = vld [vmem:[%s7204_s21 + $0xe4] ss:$8 sps:$4 sm:$0xff]  }
 0x1eb   : > { %1800 = vmatpush1.bf16.msra.mxu0 %v5919_v21 }
 0x271   : > { %v1319_v28 = vpop.f32.mrb[0].mxu0 }
 0x272   : > { %v1320_v29 = vadd.f32 %v1319_v28, %v1118_v26  ;;  %v1321_v30 = vpop.f32.mrb[1].mxu0  ;;  %v5927_v28 = vld [vmem:[%s7204_s21 + $0x24] ss:$8 sps:$4 sm:$0xff]  }
 0x273   : > { %v1322_v31 = vadd.f32 %v1321_v30, %v1122_v27  ;;  %v1323_v32 = vpop.f32.mrb[2].mxu0  ;;  %v5930_v30 = vld [vmem:[%s7204_s21 + $0x34] ss:$8 sps:$4 sm:$0xff]  }
 0x274   : > { %v1852_v33 = vmul.f32 0.125, %v1320_v29  ;;  %v1324_v34 = vadd.f32 %v1323_v32, %v1118_v26  ;;  %v1325_v35 = vpop.f32.mrb[3].mxu0  ;;  %v5925_v29 = vld [vmem:[%s7204_s21 + $0x20] ss:$8 sps:$4 sm:$0xff]   ;;  %v5933_v32 = vld [vmem:[%s7204_s21 + $0x44] ss:$8 sps:$4 sm:$0xff]  }
 0x275   : > { %v1326_v36 = vadd.f32 %v1325_v35, %v1122_v27  ;;  %v1853_v38 = vmul.f32 0.125, %v1322_v31  ;;  %v5928_v31 = vld [vmem:[%s7204_s21 + $0x30] ss:$8 sps:$4 sm:$0xff]  }
 0x276   : > { %v1854_v37 = vmul.f32 0.125, %v1324_v34  ;;  %v5936_v34 = vld [vmem:[%s7204_s21 + $0x54] ss:$8 sps:$4 sm:$0xff]   ;;  %v5934_v35 = vld [vmem:[%s7204_s21 + $0x50] ss:$8 sps:$4 sm:$0xff]  }
 0x277   : > { %v1855_v39 = vmul.f32 0.125, %v1326_v36  ;;  %v5939_v36 = vld [vmem:[%s7204_s21 + $0x64] ss:$8 sps:$4 sm:$0xff]  }
 0x278   : > { %v7365_v40 = vpack.c.bf16 %v1854_v37, %v1852_v33  ;;  %v5931_v33 = vld [vmem:[%s7204_s21 + $0x40] ss:$8 sps:$4 sm:$0xff]  }
 0x279   : > { %v7367_v41 = vpack.c.bf16 %v1855_v39, %v1853_v38  ;;  %v1329_v42 = vpop.f32.mrb[4].mxu0  ;;  %v5937_v37 = vld [vmem:[%s7204_s21 + $0x60] ss:$8 sps:$4 sm:$0xff]   ;;  %v5942_v38 = vld [vmem:[%s7204_s21 + $0x74] ss:$8 sps:$4 sm:$0xff]  }
 0x27a   : > { %v1330_v43 = vadd.f32 %v1329_v42, %v1118_v26  ;;  %v1331_v44 = vpop.f32.mrb[5].mxu0  ;;  %v5940_v39 = vld [vmem:[%s7204_s21 + $0x70] ss:$8 sps:$4 sm:$0xff]   ;;  %v5945_v42 = vld [vmem:[%s7204_s21 + $0x84] ss:$8 sps:$4 sm:$0xff]  }
 0x27b   : > { %v1332_v45 = vadd.f32 %v1331_v44, %v1122_v27  ;;  %v1333_v46 = vpop.f32.mrb[6].mxu0  ;;  %v5948_v44 = vld [vmem:[%s7204_s21 + $0x94] ss:$8 sps:$4 sm:$0xff]  }
 0x27c   : > { %v1856_v47 = vmul.f32 0.125, %v1330_v43  ;;  %v1334_v48 = vadd.f32 %v1333_v46, %v1118_v26  ;;  %v1335_v50 = vpop.f32.mrb[7].mxu0  ;;  %v5924_v26 = vld [vmem:[%s7204_s21 + $0x14] ss:$8 sps:$4 sm:$0xff]   ;;  %v5943_v43 = vld [vmem:[%s7204_s21 + $0x80] ss:$8 sps:$4 sm:$0xff]  }
 0x27d   : > { %v1857_v52 = vmul.f32 0.125, %v1332_v45  ;;  %v1336_v53 = vadd.f32 %v1335_v50, %v1122_v27  ;;  %v5922_v27 = vld [vmem:[%s7204_s21 + $0x10] ss:$8 sps:$4 sm:$0xff]   ;;  %1801 = vmatprep.subr.bf16.mxu0 %v5924_v26  ;;  %v5951_v46 = vld [vmem:[%s7204_s21 + $0xa4] ss:$8 sps:$4 sm:$0xff]  }
 0x27e   : > { %v1858_v54 = vmul.f32 0.125, %v1334_v48  ;;  %1802 = vmatpush1.bf16.msra.mxu0 %v5922_v27  ;;  %v5946_v45 = vld [vmem:[%s7204_s21 + $0x90] ss:$8 sps:$4 sm:$0xff]   ;;  %v5954_v48 = vld [vmem:[%s7204_s21 + $0xb4] ss:$8 sps:$4 sm:$0xff]  }
 0x27f   : > { %v1859_v55 = vmul.f32 0.125, %v1336_v53  ;;  %1803 = vmatprep.subr.bf16.mxu0 %v5927_v28  ;;  %v5952_v50 = vld [vmem:[%s7204_s21 + $0xb0] ss:$8 sps:$4 sm:$0xff]   ;;  %v5955_v53 = vld [vmem:[%s7204_s21 + $0xc0] ss:$8 sps:$4 sm:$0xff]  }
 0x280   : > { %v7369_v56 = vpack.c.bf16 %v1858_v54, %v1856_v47  ;;  %v5949_v47 = vld [vmem:[%s7204_s21 + $0xa0] ss:$8 sps:$4 sm:$0xff]   ;;  %v5960_v54 = vld [vmem:[%s7204_s21 + $0xd4] ss:$8 sps:$4 sm:$0xff]  }
 0x281   : > { %v7371_v57 = vpack.c.bf16 %v1859_v55, %v1857_v52  ;;  %v5957_v52 = vld [vmem:[%s7204_s21 + $0xc4] ss:$8 sps:$4 sm:$0xff]   ;;  %v5958_v55 = vld [vmem:[%s7204_s21 + $0xd0] ss:$8 sps:$4 sm:$0xff]  }
 0x282   : > { %1804 = vmatpush1.bf16.msra.mxu0 %v5925_v29 }
 0x283   : > { %1805 = vmatprep.subr.bf16.mxu0 %v5930_v30 }
 0x286   : > { %1806 = vmatpush1.bf16.msra.mxu0 %v5928_v31 }
 0x287   : > { %1807 = vmatprep.subr.bf16.mxu0 %v5933_v32 }
 0x28a   : > { %1808 = vmatpush1.bf16.msra.mxu0 %v5931_v33 }
 0x28b   : > { %1809 = vmatprep.subr.bf16.mxu0 %v5936_v34 }
 0x28e   : > { %1810 = vmatpush1.bf16.msra.mxu0 %v5934_v35 }
 0x28f   : > { %1811 = vmatprep.subr.bf16.mxu0 %v5939_v36 }
 0x292   : > { %1812 = vmatpush1.bf16.msra.mxu0 %v5937_v37  ;;  %v1627_v37 = vld [vmem:[%s8137_s19] sm:$0x3] }
 0x293   : > { %1813 = vmatprep.subr.bf16.mxu0 %v5942_v38 }
 0x296   : > { %1814 = vmatpush1.bf16.msra.mxu0 %v5940_v39  ;;  %v1632_v39 = vrot.slane %v1627_v37, %v7353_v24 }
 0x297   : > { %1815 = vmatprep.subr.bf16.mxu0 %v5945_v42  ;;  %v1636_v42 = vrot.slane %v1627_v37, %v7361_v23 }
 0x29a   : > { %1816 = vmatpush1.bf16.msra.mxu0 %v5943_v43 }
 0x29b   : > { %1817 = vmatprep.subr.bf16.mxu0 %v5948_v44 }
 0x29e   : > { %1818 = vmatpush1.bf16.msra.mxu0 %v5946_v45 }
 0x29f   : > { %1819 = vmatprep.subr.bf16.mxu0 %v5951_v46 }
 0x2a2   : > { %1820 = vmatpush1.bf16.msra.mxu0 %v5949_v47 }
 0x2a3   : > { %1821 = vmatprep.subr.bf16.mxu0 %v5954_v48 }
 0x2a6   : > { %1822 = vmatpush1.bf16.msra.mxu0 %v5952_v50 }
 0x2a7   : > { %1823 = vmatprep.subr.bf16.mxu0 %v5957_v52 }
 0x2aa   : > { %1824 = vmatpush1.bf16.msra.mxu0 %v5955_v53 }
 0x2ab   : > { %1825 = vmatprep.subr.bf16.mxu0 %v5960_v54 }
 0x2ae   : > { %1826 = vmatpush1.bf16.msra.mxu0 %v5958_v55 }
 0x2af   : > { %1827 = vmatprep.subr.bf16.mxu0 %v5963_v59 }
 0x2b1   : > { %v1576_v62 = vpop.f32.mrb[8].mxu0 }
 0x2b2   : > { %v1578_v63 = vpop.f32.mrb[9].mxu0  ;;  %v1577_v2 = vadd.f32 %v1576_v62, %v1375_v61  ;;  %v5964_v62 = vld [vmem:[%s7204_s21 + $0xf0] ss:$8 sps:$4 sm:$0xff]  }
 0x2b3   : > { %v1579_v0 = vadd.f32 %v1578_v63, %v1379_v60  ;;  %v1580_v1 = vpop.f32.mrb[10].mxu0 }
 0x2b4   : > { %v1581_v3 = vadd.f32 %v1580_v1, %v1375_v61  ;;  %v1582_v4 = vpop.f32.mrb[11].mxu0 }
 0x2b5   : > { %v1583_v5 = vadd.f32 %v1582_v4, %v1379_v60 }
 0x2b6   : > { %v7376_v6 = vpack.c.bf16 %v1581_v3, %v1577_v2 }
 0x2b7   : > { %v7378_v7 = vpack.c.bf16 %v1583_v5, %v1579_v0 }
 0x2b8   : > { %v1909_v8 = vsel %vm1904_vm1, %v7376_v6, 0 }
 0x2b9   : > { %v1586_v9 = vpop.f32.mrb[12].mxu0  ;;  %5547 = vmatpush3.bf16.xpose.msra.mxu1 %v1909_v8 }
 0x2ba   : > { %v1588_v10 = vpop.f32.mrb[13].mxu0  ;;  %5552 = vmatprep.subr.bf16.mxu1 %v6694_v20  ;;  %v1587_v13 = vadd.f32 %v1586_v9, %v1375_v61 }
 0x2bb   : > { %v1589_v11 = vadd.f32 %v1588_v10, %v1379_v60  ;;  %v1590_v12 = vpop.f32.mrb[14].mxu0 }
 0x2bc   : > { %v1591_v14 = vadd.f32 %v1590_v12, %v1375_v61  ;;  %v1592_v15 = vpop.f32.mrb[15].mxu0  ;;  %v5966_v61 = vld [vmem:[%s7204_s21 + $0xf4] ss:$8 sps:$4 sm:$0xff]  }
 0x2bd   : > { %v1593_v16 = vadd.f32 %v1592_v15, %v1379_v60  ;;  %v5961_v60 = vld [vmem:[%s7204_s21 + $0xe0] ss:$8 sps:$4 sm:$0xff]  }
 0x2be   : > { %v7383_v17 = vpack.c.bf16 %v1591_v14, %v1587_v13  ;;  %1828 = vmatpush1.bf16.msra.mxu0 %v5961_v60 }
 0x2bf   : > { %v7385_v18 = vpack.c.bf16 %v1593_v16, %v1589_v11  ;;  %1829 = vmatprep.subr.bf16.mxu0 %v5966_v61 }
 0x2c0   : > { %5549 = vmatmul.mubr.msk.bf16.vlgmr.msra.gmra.mrb[0].mxu1 %vm1904_vm1, %v7365_v40  ;;  %v1956_v19 = vsel %vm1904_vm1, %v7383_v17, 0 }
 0x2c1   : > { %5553 = vmatpush3.bf16.xpose.msra.mxu1 %v1956_v19  ;;  %5554 = vmatprep.mubr.msk.bf16.mxu1 %vm6695_vm0, %v6694_v20 }
 0x2c2   : > { %5558 = vmatprep.subr.bf16.mxu1 %v6694_v20  ;;  %1830 = vmatpush1.bf16.msra.mxu0 %v5964_v62 }
 0x2c5   : > { %1832 = vmatmul.mubr.bf16.vlgmr.msra.gmra.mrb[16].mxu0 %v7303_v49 }
 0x2c6   : > { %1841 = vmatprep.mubr.bf16.mxu0 %v7306_v51 }
 0x2c8   : > { %5555 = vmatmul.mubr.msk.bf16.vlgmr.msra.gmra.mrb[4].mxu1 %vm1904_vm1, %v7369_v56 }
 0x2c9   : > { %5560 = vmatprep.mubr.msk.bf16.mxu1 %vm6695_vm0, %v6694_v20 }
 0x2cd   : > { %1842 = vmatmul.mubr.bf16.gmra.mrb[20].mxu0 %v7314_v58 }
 0x393   : > { %v1945_v63 = vpop.f32.mrb[0].mxu1 }
 0x394   : > { %v5550_v0 = vpop.f32.mrb[1].mxu1  ;;  %v2000_v1 = vsel %vm1999_vm2, %v1945_v63, -inf }
 0x395   : > { %2001 = vmax.xlane.f32.xlu0 %v2000_v1  ;;  %v1948_v2 = vpop.f32.mrb[2].mxu1 }
 0x396   : > { %v5551_v3 = vpop.f32.mrb[3].mxu1  ;;  %v2003_v4 = vsel %vm1999_vm2, %v1948_v2, -inf }
 0x398   : > { %v1833_v36 = vpop.f32.mrb[16].mxu0 }
 0x399   : > { %2004 = vmax.xlane.f32.xlu0 %v2003_v4  ;;  %v1835_v38 = vpop.f32.mrb[17].mxu0  ;;  %v1834_v45 = vadd.f32 %v1833_v36, %v1632_v39 }
 0x39a   : > { %v1837_v43 = vpop.f32.mrb[18].mxu0  ;;  %v1836_v46 = vadd.f32 %v1835_v38, %v1636_v42 }
 0x39b   : > { %v1992_v5 = vpop.f32.mrb[4].mxu1  ;;  %v1839_v44 = vpop.f32.mrb[19].mxu0  ;;  %v1838_v47 = vadd.f32 %v1837_v43, %v1632_v39 }
 0x39c   : > { %v5556_v8 = vpop.f32.mrb[5].mxu1  ;;  %v2006_v9 = vsel %vm1999_vm2, %v1992_v5, -inf  ;;  %v1840_v48 = vadd.f32 %v1839_v44, %v1636_v42 }
 0x39d   : > { %2007 = vmax.xlane.f32.xlu1 %v2006_v9  ;;  %v1995_v49 = vpop.f32.mrb[6].mxu1  ;;  %v7448_v50 = vpack.c.bf16 %v1838_v47, %v1834_v45 }
 0x39e   : > { %v5557_v51 = vpop.f32.mrb[7].mxu1  ;;  %v2009_v58 = vsel %vm1999_vm2, %v1995_v49, -inf  ;;  %v7450_v52 = vpack.c.bf16 %v1840_v48, %v1836_v46 }
 0x39f   : > { %5559 = vmatpush3.bf16.msra.mxu1 %v7448_v50 }
 0x3a0   : > { %v1843_v53 = vpop.f32.mrb[20].mxu0  ;;  %5564 = vmatprep.subr.bf16.mxu1 %v6694_v20 }
 0x3a1   : > { %2010 = vmax.xlane.f32.xlu1 %v2009_v58  ;;  %v1845_v54 = vpop.f32.mrb[21].mxu0  ;;  %v1844_v60 = vadd.f32 %v1843_v53, %v1632_v39 }
 0x3a2   : > { %v1847_v55 = vpop.f32.mrb[22].mxu0  ;;  %v1846_v61 = vadd.f32 %v1845_v54, %v1636_v42 }
 0x3a3   : > { %v1849_v59 = vpop.f32.mrb[23].mxu0  ;;  %v1848_v62 = vadd.f32 %v1847_v55, %v1632_v39 }
 0x3a5   : > { %v7456_v0 = vpack.c.bf16 %v1848_v62, %v1844_v60 }
 0x422   : > { %v2002_v10 = vpop.xlane.xlu0 %2001 }
 0x423   : > { %v2012_v11 = vsub.f32 %v1945_v63, %v2002_v10  ;;  %v1850_v63 = vadd.f32 %v1849_v59, %v1636_v42 }
 0x425   : > { %v2016_v12 = vmul.f32 1.442695, %v2012_v11  ;;  %v7458_v1 = vpack.c.bf16 %v1850_v63, %v1846_v61 }
 0x426   : > { %v2005_v13 = vpop.xlane.xlu0 %2004 }
 0x427   : > { %6207 = vpow2.f32 %v2016_v12  ;;  %v2013_v14 = vsub.f32 %v1948_v2, %v2005_v13 }
 0x429   : > { %v2018_v15 = vmul.f32 1.442695, %v2013_v14 }
 0x42a   : > { %v2008_v16 = vpop.xlane.xlu1 %2007 }
 0x42b   : > { %6209 = vpow2.f32 %v2018_v15  ;;  %v2014_v19 = vsub.f32 %v1992_v5, %v2008_v16 }
 0x42d   : > { %v2020_v21 = vmul.f32 1.442695, %v2014_v19 }
 0x42e   : > { %v2011_v25 = vpop.xlane.xlu1 %2010 }
 0x42f   : > { %6211 = vpow2.f32 %v2020_v21  ;;  %v2015_v26 = vsub.f32 %v1995_v49, %v2011_v25 }
 0x431   : > { %v6208_v27 = vpop.eup %6207  ;;  %v2022_v28 = vmul.f32 1.442695, %v2015_v26 }
 0x432   : > { %v2024_v29 = vsel %vm1999_vm2, %v6208_v27, 0.0 }
 0x433   : > { %6213 = vpow2.f32 %v2022_v28  ;;  %2025 = vadd.xlane.f32.xlu0 %v2024_v29 }
 0x435   : > { %v6210_v30 = vpop.eup %6209 }
 0x436   : > { %v2027_v31 = vsel %vm1999_vm2, %v6210_v30, 0.0 }
 0x437   : > { %2028 = vadd.xlane.f32.xlu1 %v2027_v31 }
 0x439   : > { %v6212_v32 = vpop.eup %6211 }
 0x43a   : > { %v2030_v33 = vsel %vm1999_vm2, %v6212_v32, 0.0 }
 0x43b   : > { %2031 = vadd.xlane.f32.xlu0 %v2030_v33 }
 0x43d   : > { %v6214_v34 = vpop.eup %6213 }
 0x43e   : > { %v2033_v35 = vsel %vm1999_vm2, %v6214_v34, 0.0 }
 0x43f   : > { %2034 = vadd.xlane.f32.xlu1 %v2033_v35 }
 0x450   : > { %2137 = vrot.lane.b32.xlu1 %v7365_v40, %s6696_s4 }
 0x451   : > { %2140 = vrot.lane.b32.xlu0 %v7376_v6, %s6696_s4 }
 0x454   : > { %2193 = vrot.lane.b32.xlu1 %v7383_v17, %s6696_s4 }
 0x458   : > { %2190 = vrot.lane.b32.xlu1 %v7369_v56, %s6696_s4 }
 0x4c0   : > { %v2026_v2 = vpop.xlane.xlu0 %2025 }
 0x4c1   : > { %6215 = vrcp.f32 %v2026_v2 }
 0x4c4   : > { %v2029_v3 = vpop.xlane.xlu1 %2028 }
 0x4c5   : > { %6217 = vrcp.f32 %v2029_v3 }
 0x4c8   : > { %v2032_v4 = vpop.xlane.xlu0 %2031 }
 0x4c9   : > { %6219 = vrcp.f32 %v2032_v4 }
 0x4cb   : > { %v6216_v5 = vpop.eup %6215 }
 0x4cc   : > { %v2035_v40 = vpop.xlane.xlu1 %2034  ;;  %v2040_v9 = vmul.f32 %v6216_v5, %v6208_v27  ;;  %v2141_v10 = vpop.permute.xlu0 %2140 }
 0x4cd   : > { %6221 = vrcp.f32 %v2035_v40  ;;  %v2146_v13 = vsel %vm1904_vm1, %v2141_v10, 0  ;;  %v5970_v10 = vld [vmem:[%s7206_s15 + $0x50] ss:$8 sps:$4 sm:$0xff]  }
 0x4cf   : > { %v6218_v8 = vpop.eup %6217 }
 0x4d0   : > { %v2041_v49 = vmul.f32 %v6218_v8, %v6210_v30  ;;  %v2138_v12 = vpop.permute.xlu1 %2137 }
 0x4d2   : > { %v2044_v51 = vpack.c.bf16 %v2041_v49, %v2040_v9 }
 0x4d3   : > { %v6220_v6 = vpop.eup %6219 }
 0x4d4   : > { %5561 = vmatmul.mubr.msk.bf16.vlgmr.msra.gmra.mrb[8].mxu1 %vm1999_vm2, %v2044_v51  ;;  %v2042_v17 = vmul.f32 %v6220_v6, %v6212_v32  ;;  %v2194_v14 = vpop.permute.xlu1 %2193 }
 0x4d5   : > { %5565 = vmatpush3.bf16.msra.mxu1 %v7456_v0  ;;  %5566 = vmatprep.mubr.msk.bf16.mxu1 %vm6695_vm0, %v6694_v20  ;;  %v2199_v15 = vsel %vm1904_vm1, %v2194_v14, 0 }
 0x4d6   : > { %5570 = vmatprep.subr.bf16.mxu1 %v6694_v20 }
 0x4d7   : > { %v6222_v56 = vpop.eup %6221 }
 0x4d8   : > { %v2043_v58 = vmul.f32 %v6222_v56, %v6214_v34  ;;  %v2191_v16 = vpop.permute.xlu1 %2190  ;;  %v5967_v56 = vld [vmem:[%s7206_s15 + $0x40] ss:$8 sps:$4 sm:$0xff]  }
 0x4da   : > { %v2045_v11 = vpack.c.bf16 %v2043_v58, %v2042_v17  ;;  %v5969_v17 = vld [vmem:[%s7206_s15 + $0x44] ss:$8 sps:$4 sm:$0xff]   ;;  %v5972_v58 = vld [vmem:[%s7206_s15 + $0x54] ss:$8 sps:$4 sm:$0xff]  }
 0x4db   : > { %2432 = vmatprep.subr.bf16.mxu0 %v5969_v17 }
 0x4dc   : > { %5567 = vmatmul.mubr.msk.bf16.vlgmr.msra.gmra.mrb[12].mxu1 %vm1999_vm2, %v2045_v11  ;;  %2433 = vmatpush1.bf16.msra.mxu0 %v5967_v56  ;;  %v5975_v11 = vld [vmem:[%s7206_s15 + $0x64] ss:$8 sps:$4 sm:$0xff]  }
 0x4dd   : > { %5572 = vmatprep.mubr.msk.bf16.mxu1 %vm6695_vm0, %v6694_v20  ;;  %2434 = vmatprep.subr.bf16.mxu0 %v5972_v58 }
 0x4de   : > { %5571 = vmatpush3.bf16.xpose.msra.mxu1 %v2146_v13 }
 0x4df   : > { %5576 = vmatprep.subr.bf16.mxu1 %v6694_v20 }
 0x4e0   : > { %2435 = vmatpush1.bf16.msra.mxu0 %v5970_v10 }
 0x4e1   : > { %2436 = vmatprep.subr.bf16.mxu0 %v5975_v11 }
 0x4e5   : > { %5573 = vmatmul.mubr.msk.bf16.vlgmr.msra.gmra.mrb[16].mxu1 %vm1904_vm1, %v2138_v12  ;;  %v5973_v12 = vld [vmem:[%s7206_s15 + $0x60] ss:$8 sps:$4 sm:$0xff]  }
 0x4e6   : > { %5577 = vmatpush3.bf16.xpose.msra.mxu1 %v2199_v15  ;;  %5578 = vmatprep.mubr.msk.bf16.mxu1 %vm6695_vm0, %v6694_v20 }
 0x4e7   : > { %5582 = vmatprep.subr.bf16.mxu1 %v6694_v20  ;;  %2437 = vmatpush1.bf16.msra.mxu0 %v5973_v12 }
 0x4ed   : > { %5579 = vmatmul.mubr.msk.bf16.vlgmr.msra.gmra.mrb[20].mxu1 %vm1904_vm1, %v2191_v16 }
 0x4ee   : > { %5584 = vmatprep.mubr.msk.bf16.mxu1 %vm6695_vm0, %v6694_v20 }
 0x5a7   : > { %v7484_v19 = vpop.f32.mrb[8].mxu1 }
 0x5a8   : > { %v5562_v21 = vpop.f32.mrb[9].mxu1 }
 0x5a9   : > { %v7486_v25 = vpop.f32.mrb[10].mxu1 }
 0x5aa   : > { %v2134_v26 = vpack.c.bf16 %v7486_v25, %v7484_v19  ;;  %v5563_v27 = vpop.f32.mrb[11].mxu1 }
 0x5af   : > { %v7490_v28 = vpop.f32.mrb[12].mxu1 }
 0x5b0   : > { %v5568_v29 = vpop.f32.mrb[13].mxu1 }
 0x5b1   : > { %v7492_v30 = vpop.f32.mrb[14].mxu1 }
 0x5b2   : > { %v2135_v31 = vpack.c.bf16 %v7492_v30, %v7490_v28  ;;  %v5569_v32 = vpop.f32.mrb[15].mxu1 }
 0x5b8   : > { %v2182_v33 = vpop.f32.mrb[16].mxu1 }
 0x5b9   : > { %v5574_v34 = vpop.f32.mrb[17].mxu1  ;;  %v2242_v35 = vsel %vm1999_vm2, %v2182_v33, -inf }
 0x5ba   : > { %2243 = vmax.xlane.f32.xlu0 %v2242_v35  ;;  %v2185_v36 = vpop.f32.mrb[18].mxu1 }
 0x5bb   : > { %v5575_v37 = vpop.f32.mrb[19].mxu1  ;;  %v2245_v38 = vsel %vm1999_vm2, %v2185_v36, -inf }
 0x5bc   : > { %2246 = vmax.xlane.f32.xlu1 %v2245_v38 }
 0x5c0   : > { %v2235_v39 = vpop.f32.mrb[20].mxu1 }
 0x5c1   : > { %v5580_v42 = vpop.f32.mrb[21].mxu1  ;;  %v2248_v43 = vsel %vm1999_vm2, %v2235_v39, -inf }
 0x5c2   : > { %2249 = vmax.xlane.f32.xlu0 %v2248_v43  ;;  %v2238_v44 = vpop.f32.mrb[22].mxu1  ;;  %v2635_v42 = vsel %vm1904_vm1, %v7385_v18, 0  ;;  %v5978_v43 = vld [vmem:[%s7206_s15 + $0x74] ss:$8 sps:$4 sm:$0xff]  }
 0x5c3   : > { %v5581_v45 = vpop.f32.mrb[23].mxu1  ;;  %v2251_v46 = vsel %vm1999_vm2, %v2238_v44, -inf  ;;  %2438 = vmatprep.subr.bf16.mxu0 %v5978_v43  ;;  %v5993_v43 = vld [vmem:[%s7206_s15 + $0x84] ss:$8 sps:$4 sm:$0xff]  }
 0x5c4   : > { %v6697_v45 = vmov 0  }
 0x5c5   : > { %2464 = vmatprep.mubr.bf16.mxu0 %v6697_v45 }
 0x5c6   : > { %2252 = vmax.xlane.f32.xlu0 %v2251_v46  ;;  %v5981_v46 = vld [vmem:[%s7206_s15 + $0x4] ss:$8 sps:$4 sm:$0xff]  }
 0x647   : > { %v2244_v47 = vpop.xlane.xlu0 %2243 }
 0x648   : > { %v2254_v48 = vsub.f32 %v2182_v33, %v2244_v47 }
 0x649   : > { %v2247_v53 = vpop.xlane.xlu1 %2246 }
 0x64a   : > { %v2258_v54 = vmul.f32 1.442695, %v2254_v48  ;;  %v2255_v55 = vsub.f32 %v2185_v36, %v2247_v53 }
 0x64c   : > { %6223 = vpow2.f32 %v2258_v54  ;;  %v2260_v59 = vmul.f32 1.442695, %v2255_v55  ;;  %v5979_v54 = vld [vmem:[%s7206_s15] ss:$8 sps:$4 sm:$0xff]  }
 0x64e   : > { %6225 = vpow2.f32 %v2260_v59 }
 0x64f   : > { %v2250_v60 = vpop.xlane.xlu0 %2249 }
 0x650   : > { %v2256_v61 = vsub.f32 %v2235_v39, %v2250_v60  ;;  %v2588_v39 = vsel %vm1904_vm1, %v7378_v7, 0  ;;  %v5984_v60 = vld [vmem:[%s7206_s15 + $0x14] ss:$8 sps:$4 sm:$0xff]  }
 0x652   : > { %v2262_v62 = vmul.f32 1.442695, %v2256_v61  ;;  %v5982_v61 = vld [vmem:[%s7206_s15 + $0x10] ss:$8 sps:$4 sm:$0xff]  }
 0x653   : > { %v2253_v63 = vpop.xlane.xlu0 %2252 }
 0x654   : > { %6227 = vpow2.f32 %v2262_v62  ;;  %v2257_v2 = vsub.f32 %v2238_v44, %v2253_v63  ;;  %v5976_v44 = vld [vmem:[%s7206_s15 + $0x70] ss:$8 sps:$4 sm:$0xff]   ;;  %v5987_v62 = vld [vmem:[%s7206_s15 + $0x24] ss:$8 sps:$4 sm:$0xff]  }
 0x655   : > { %2439 = vmatpush1.bf16.msra.mxu0 %v5976_v44  ;;  %v5996_v44 = vld [vmem:[%s7206_s15 + $0x94] ss:$8 sps:$4 sm:$0xff]  }
 0x656   : > { %v6224_v3 = vpop.eup %6223  ;;  %v2264_v4 = vmul.f32 1.442695, %v2257_v2  ;;  %2531 = vmatprep.subr.bf16.mxu0 %v5981_v46  ;;  %v5985_v2 = vld [vmem:[%s7206_s15 + $0x20] ss:$8 sps:$4 sm:$0xff]   ;;  %v5994_v46 = vld [vmem:[%s7206_s15 + $0x90] ss:$8 sps:$4 sm:$0xff]  }
 0x657   : > { %v2266_v40 = vsel %vm1999_vm2, %v6224_v3, 0.0 }
 0x658   : > { %v6226_v5 = vpop.eup %6225  ;;  %6229 = vpow2.f32 %v2264_v4  ;;  %2267 = vadd.xlane.f32.xlu0 %v2266_v40  ;;  %v5990_v4 = vld [vmem:[%s7206_s15 + $0x34] ss:$8 sps:$4 sm:$0xff]  }
 0x659   : > { %v2269_v8 = vsel %vm1999_vm2, %v6226_v5, 0.0 }
 0x65a   : > { %2270 = vadd.xlane.f32.xlu1 %v2269_v8 }
 0x65e   : > { %v6228_v9 = vpop.eup %6227 }
 0x65f   : > { %v2272_v49 = vsel %vm1999_vm2, %v6228_v9, 0.0 }
 0x660   : > { %2273 = vadd.xlane.f32.xlu0 %v2272_v49 }
 0x662   : > { %v6230_v51 = vpop.eup %6229 }
 0x663   : > { %v2275_v6 = vsel %vm1999_vm2, %v6230_v51, 0.0 }
 0x664   : > { %2276 = vadd.xlane.f32.xlu1 %v2275_v6 }
 0x675   : > { %2337 = vrot.lane.b32.xlu1 %v7456_v0, %s6696_s4 }
 0x676   : > { %2289 = vrot.lane.b32.xlu0 %v7448_v50, %s6696_s4 }
 0x6e5   : > { %v2268_v13 = vpop.xlane.xlu0 %2267 }
 0x6e6   : > { %6231 = vrcp.f32 %v2268_v13 }
 0x6e7   : > { %v2271_v14 = vpop.xlane.xlu1 %2270 }
 0x6e8   : > { %6233 = vrcp.f32 %v2271_v14 }
 0x6ed   : > { %v2274_v0 = vpop.xlane.xlu0 %2273 }
 0x6ee   : > { %6235 = vrcp.f32 %v2274_v0 }
 0x6f0   : > { %v6232_v15 = vpop.eup %6231 }
 0x6f1   : > { %v2277_v50 = vpop.xlane.xlu1 %2276  ;;  %v2290_v16 = vpop.permute.xlu0 %2289  ;;  %v2282_v27 = vmul.f32 %v6232_v15, %v6224_v3 }
 0x6f2   : > { %v6234_v21 = vpop.eup %6233  ;;  %6237 = vrcp.f32 %v2277_v50  ;;  %5583 = vmatpush3.bf16.msra.mxu1 %v2290_v16 }
 0x6f3   : > { %v2283_v29 = vmul.f32 %v6234_v21, %v6226_v5  ;;  %5588 = vmatprep.subr.bf16.mxu1 %v6694_v20 }
 0x6f5   : > { %v2338_v32 = vpop.permute.xlu1 %2337  ;;  %v2286_v33 = vpack.c.bf16 %v2283_v29, %v2282_v27 }
 0x6f7   : > { %5585 = vmatmul.mubr.msk.bf16.vlgmr.msra.gmra.mrb[24].mxu1 %vm1999_vm2, %v2286_v33 }
 0x6f8   : > { %5589 = vmatpush3.bf16.msra.mxu1 %v2338_v32  ;;  %5590 = vmatprep.mubr.msk.bf16.mxu1 %vm6695_vm0, %v6694_v20  ;;  %v6236_v34 = vpop.eup %6235 }
 0x6f9   : > { %5594 = vmatprep.subr.bf16.mxu1 %v6694_v20  ;;  %v2284_v36 = vmul.f32 %v6236_v34, %v6228_v9  ;;  %v5988_v9 = vld [vmem:[%s7206_s15 + $0x30] ss:$8 sps:$4 sm:$0xff]  }
 0x6fc   : > { %v6238_v35 = vpop.eup %6237 }
 0x6fd   : > { %v2285_v37 = vmul.f32 %v6238_v35, %v6230_v51 }
 0x6ff   : > { %v2287_v38 = vpack.c.bf16 %v2285_v37, %v2284_v36 }
 0x701   : > { %5591 = vmatmul.mubr.msk.bf16.vlgmr.msra.gmra.mrb[28].mxu1 %vm1999_vm2, %v2287_v38 }
 0x702   : > { %5595 = vmatpush3.bf16.xpose.msra.mxu1 %v2588_v39  ;;  %5596 = vmatprep.mubr.msk.bf16.mxu1 %vm6695_vm0, %v6694_v20 }
 0x703   : > { %5600 = vmatprep.subr.bf16.mxu1 %v6694_v20 }
 0x709   : > { %5597 = vmatmul.mubr.msk.bf16.vlgmr.msra.gmra.mrb[32].mxu1 %vm1904_vm1, %v7367_v41 }
 0x70a   : > { %5601 = vmatpush3.bf16.xpose.msra.mxu1 %v2635_v42  ;;  %5602 = vmatprep.mubr.msk.bf16.mxu1 %vm6695_vm0, %v6694_v20  ;;  %v5991_v42 = vld [vmem:[%s7206_s15 + $0x80] ss:$8 sps:$4 sm:$0xff]  }
 0x70b   : > { %5606 = vmatprep.subr.bf16.mxu1 %v6694_v20 }
 0x711   : > { %5603 = vmatmul.mubr.msk.bf16.vlgmr.msra.gmra.mrb[36].mxu1 %vm1904_vm1, %v7371_v57 }
 0x712   : > { %5607 = vmatpush3.bf16.msra.mxu1 %v7450_v52  ;;  %5608 = vmatprep.mubr.msk.bf16.mxu1 %vm6695_vm0, %v6694_v20 }
 0x713   : > { %5612 = vmatprep.subr.bf16.mxu1 %v6694_v20 }
 0x7ca   : > { %v2329_v47 = vpop.f32.mrb[24].mxu1 }
 0x7cb   : > { %v5586_v48 = vpop.f32.mrb[25].mxu1 }
 0x7cc   : > { %v2332_v53 = vpop.f32.mrb[26].mxu1  ;;  %v5997_v48 = vld [vmem:[%s7206_s15 + $0xa0] ss:$8 sps:$4 sm:$0xff]  }
 0x7cd   : > { %v2384_v55 = vpack.c.bf16 %v2332_v53, %v2329_v47  ;;  %v5587_v59 = vpop.f32.mrb[27].mxu1  ;;  %v5999_v47 = vld [vmem:[%s7206_s15 + $0xa4] ss:$8 sps:$4 sm:$0xff]  }
 0x7cf   : > { %5288 = vmatmul.mubr.msk.bf16.vlgmr.msra.gmra.mrb[24].mxu0 %vm1904_vm1, %v2384_v55 }
 0x7d0   : > { %2532 = vmatpush1.bf16.msra.mxu0 %v5979_v54  ;;  %2474 = vmatprep.mubr.bf16.mxu0 %v6697_v45 }
 0x7d1   : > { %2533 = vmatprep.subr.bf16.mxu0 %v5984_v60 }
 0x7d4   : > { %v2377_v63 = vpop.f32.mrb[28].mxu1  ;;  %2534 = vmatpush1.bf16.msra.mxu0 %v5982_v61 }
 0x7d5   : > { %v5592_v3 = vpop.f32.mrb[29].mxu1  ;;  %2535 = vmatprep.subr.bf16.mxu0 %v5987_v62 }
 0x7d6   : > { %v2380_v40 = vpop.f32.mrb[30].mxu1 }
 0x7d7   : > { %v2385_v5 = vpack.c.bf16 %v2380_v40, %v2377_v63  ;;  %v5593_v8 = vpop.f32.mrb[31].mxu1 }
 0x7d8   : > { %2536 = vmatpush1.bf16.msra.mxu0 %v5985_v2 }
 0x7d9   : > { %5289 = vmatmul.mubr.msk.bf16.gmra.mrb[28].mxu0 %vm1904_vm1, %v2385_v5  ;;  %2537 = vmatprep.subr.bf16.mxu0 %v5990_v4 }
 0x7da   : > { %2563 = vmatprep.mubr.bf16.mxu0 %v6697_v45 }
 0x7dc   : > { %v2624_v49 = vpop.f32.mrb[32].mxu1  ;;  %2538 = vmatpush1.bf16.msra.mxu0 %v5988_v9 }
 0x7dd   : > { %v5598_v51 = vpop.f32.mrb[33].mxu1  ;;  %v2678_v6 = vsel %vm1999_vm2, %v2624_v49, -inf  ;;  %2860 = vmatprep.subr.bf16.mxu0 %v5993_v43 }
 0x7de   : > { %2679 = vmax.xlane.f32.xlu1 %v2678_v6  ;;  %v2627_v56 = vpop.f32.mrb[34].mxu1  ;;  %v6002_v51 = vld [vmem:[%s7206_s15 + $0xb4] ss:$8 sps:$4 sm:$0xff]   ;;  %v6000_v6 = vld [vmem:[%s7206_s15 + $0xb0] ss:$8 sps:$4 sm:$0xff]  }
 0x7df   : > { %v5599_v17 = vpop.f32.mrb[35].mxu1  ;;  %v2681_v58 = vsel %vm1999_vm2, %v2627_v56, -inf }
 0x7e0   : > { %2682 = vmax.xlane.f32.xlu0 %v2681_v58 }
 0x7e1   : > { %5298 = vmatmul.mubr.msk.bf16.vlgmr.msra.gmra.mrb[24].mxu0 %vm1904_vm1, %v2134_v26 }
 0x7e2   : > { %2573 = vmatprep.mubr.bf16.mxu0 %v6697_v45  ;;  %2861 = vmatpush1.bf16.msra.mxu0 %v5991_v42 }
 0x7e3   : > { %2862 = vmatprep.subr.bf16.mxu0 %v5996_v44 }
 0x7e4   : > { %v2671_v10 = vpop.f32.mrb[36].mxu1 }
 0x7e5   : > { %v5604_v11 = vpop.f32.mrb[37].mxu1  ;;  %v2684_v12 = vsel %vm1999_vm2, %v2671_v10, -inf }
 0x7e6   : > { %2685 = vmax.xlane.f32.xlu0 %v2684_v12  ;;  %v2674_v13 = vpop.f32.mrb[38].mxu1  ;;  %2863 = vmatpush1.bf16.msra.mxu0 %v5994_v46 }
 0x7e7   : > { %v5605_v14 = vpop.f32.mrb[39].mxu1  ;;  %v2687_v0 = vsel %vm1999_vm2, %v2674_v13, -inf  ;;  %2864 = vmatprep.subr.bf16.mxu0 %v5999_v47 }
 0x7e8   : > { %2688 = vmax.xlane.f32.xlu1 %v2687_v0 }
 0x7e9   : > { %5299 = vmatmul.mubr.msk.bf16.gmra.mrb[28].mxu0 %vm1904_vm1, %v2135_v31 }
 0x7ea   : > { %2892 = vmatprep.mubr.bf16.mxu0 %v6697_v45  ;;  %2865 = vmatpush1.bf16.msra.mxu0 %v5997_v48 }
 0x7eb   : > { %2866 = vmatprep.subr.bf16.mxu0 %v6002_v51 }
 0x7ee   : > { %2867 = vmatpush1.bf16.msra.mxu0 %v6000_v6 }
 0x86b   : > { %v2680_v19 = vpop.xlane.xlu1 %2679 }
 0x86c   : > { %v2690_v25 = vsub.f32 %v2624_v49, %v2680_v19 }
 0x86d   : > { %v2683_v26 = vpop.xlane.xlu0 %2682 }
 0x86e   : > { %v2694_v15 = vmul.f32 1.442695, %v2690_v25  ;;  %v2691_v50 = vsub.f32 %v2627_v56, %v2683_v26 }
 0x870   : > { %6239 = vpow2.f32 %v2694_v15  ;;  %v2696_v16 = vmul.f32 1.442695, %v2691_v50 }
 0x872   : > { %6241 = vpow2.f32 %v2696_v16 }
 0x873   : > { %v2686_v21 = vpop.xlane.xlu0 %2685 }
 0x874   : > { %v2692_v27 = vsub.f32 %v2671_v10, %v2686_v21 }
 0x875   : > { %v2689_v29 = vpop.xlane.xlu1 %2688 }
 0x876   : > { %v2698_v32 = vmul.f32 1.442695, %v2692_v27  ;;  %v2693_v33 = vsub.f32 %v2674_v13, %v2689_v29 }
 0x878   : > { %6243 = vpow2.f32 %v2698_v32  ;;  %v2700_v34 = vmul.f32 1.442695, %v2693_v33 }
 0x87a   : > { %v6240_v28 = vpop.eup %6239  ;;  %6245 = vpow2.f32 %v2700_v34 }
 0x87b   : > { %v2702_v30 = vsel %vm1999_vm2, %v6240_v28, 0.0 }
 0x87c   : > { %v6242_v31 = vpop.eup %6241  ;;  %2703 = vadd.xlane.f32.xlu0 %v2702_v30 }
 0x87d   : > { %v2705_v35 = vsel %vm1999_vm2, %v6242_v31, 0.0 }
 0x87e   : > { %2706 = vadd.xlane.f32.xlu1 %v2705_v35 }
 0x882   : > { %v6244_v36 = vpop.eup %6243 }
 0x883   : > { %v2708_v37 = vsel %vm1999_vm2, %v6244_v36, 0.0 }
 0x884   : > { %v6246_v38 = vpop.eup %6245  ;;  %2709 = vadd.xlane.f32.xlu0 %v2708_v37 }
 0x885   : > { %v2711_v39 = vsel %vm1999_vm2, %v6246_v38, 0.0 }
 0x886   : > { %2712 = vadd.xlane.f32.xlu1 %v2711_v39 }
 0x897   : > { %2922 = vrot.lane.b32.xlu1 %v7367_v41, %s6696_s4 }
 0x89a   : > { %2925 = vrot.lane.b32.xlu0 %v7378_v7, %s6696_s4 }
 0x89b   : > { %2978 = vrot.lane.b32.xlu1 %v7385_v18, %s6696_s4 }
 0x89f   : > { %2975 = vrot.lane.b32.xlu1 %v7371_v57, %s6696_s4 }
 0x909   : > { %v2704_v41 = vpop.xlane.xlu0 %2703 }
 0x90a   : > { %6247 = vrcp.f32 %v2704_v41 }
 0x90b   : > { %v2707_v7 = vpop.xlane.xlu1 %2706 }
 0x90c   : > { %6249 = vrcp.f32 %v2707_v7 }
 0x911   : > { %v2710_v18 = vpop.xlane.xlu0 %2709 }
 0x912   : > { %6251 = vrcp.f32 %v2710_v18 }
 0x913   : > { %v2713_v53 = vpop.xlane.xlu1 %2712 }
 0x914   : > { %v6248_v57 = vpop.eup %6247  ;;  %6253 = vrcp.f32 %v2713_v53 }
 0x915   : > { %v2718_v55 = vmul.f32 %v6248_v57, %v6240_v28  ;;  %v2926_v3 = vpop.permute.xlu0 %2925 }
 0x916   : > { %v6250_v54 = vpop.eup %6249  ;;  %v2931_v5 = vsel %vm1904_vm1, %v2926_v3, 0 }
 0x917   : > { %v2719_v59 = vmul.f32 %v6250_v54, %v6242_v31  ;;  %v2923_v40 = vpop.permute.xlu1 %2922 }
 0x919   : > { %v2722_v60 = vpack.c.bf16 %v2719_v59, %v2718_v55  ;;  %v6003_v59 = vld [vmem:[%s7206_s15 + $0xc0] ss:$8 sps:$4 sm:$0xff]  }
 0x91b   : > { %5609 = vmatmul.mubr.msk.bf16.vlgmr.msra.gmra.mrb[40].mxu1 %vm1999_vm2, %v2722_v60  ;;  %v2979_v8 = vpop.permute.xlu1 %2978  ;;  %v6005_v60 = vld [vmem:[%s7206_s15 + $0xc4] ss:$8 sps:$4 sm:$0xff]  }
 0x91c   : > { %v6252_v61 = vpop.eup %6251  ;;  %5613 = vmatpush3.bf16.msra.mxu1 %v7458_v1  ;;  %5614 = vmatprep.mubr.msk.bf16.mxu1 %vm6695_vm0, %v6694_v20  ;;  %v2984_v9 = vsel %vm1904_vm1, %v2979_v8, 0 }
 0x91d   : > { %5618 = vmatprep.subr.bf16.mxu1 %v6694_v20  ;;  %v2720_v63 = vmul.f32 %v6252_v61, %v6244_v36  ;;  %v6008_v61 = vld [vmem:[%s7206_s15 + $0xd4] ss:$8 sps:$4 sm:$0xff]   ;;  %3217 = vmatprep.subr.bf16.mxu0 %v6005_v60 }
 0x91e   : > { %v6254_v62 = vpop.eup %6253  ;;  %v3278_v60 = vld [vmem:[%s8139_s23] sm:$0x3] }
 0x91f   : > { %v2721_v2 = vmul.f32 %v6254_v62, %v6246_v38  ;;  %v2976_v49 = vpop.permute.xlu1 %2975  ;;  %v6006_v62 = vld [vmem:[%s7206_s15 + $0xd0] ss:$8 sps:$4 sm:$0xff]  }
 0x921   : > { %v2723_v4 = vpack.c.bf16 %v2721_v2, %v2720_v63  ;;  %v6011_v63 = vld [vmem:[%s7206_s15 + $0xe4] ss:$8 sps:$4 sm:$0xff]   ;;  %v6009_v2 = vld [vmem:[%s7206_s15 + $0xe0] ss:$8 sps:$4 sm:$0xff]  }
 0x923   : > { %5615 = vmatmul.mubr.msk.bf16.vlgmr.msra.gmra.mrb[44].mxu1 %vm1999_vm2, %v2723_v4 }
 0x924   : > { %5620 = vmatprep.mubr.msk.bf16.mxu1 %vm6695_vm0, %v6694_v20 }
 0x925   : > { %5619 = vmatpush3.bf16.xpose.msra.mxu1 %v2931_v5 }
 0x926   : > { %5624 = vmatprep.subr.bf16.mxu1 %v6694_v20 }
 0x92c   : > { %5621 = vmatmul.mubr.msk.bf16.vlgmr.msra.gmra.mrb[48].mxu1 %vm1904_vm1, %v2923_v40 }
 0x92d   : > { %5625 = vmatpush3.bf16.xpose.msra.mxu1 %v2984_v9  ;;  %5626 = vmatprep.mubr.msk.bf16.mxu1 %vm6695_vm0, %v6694_v20 }
 0x92e   : > { %5630 = vmatprep.subr.bf16.mxu1 %v6694_v20 }
 0x934   : > { %5627 = vmatmul.mubr.msk.bf16.vlgmr.msra.gmra.mrb[52].mxu1 %vm1904_vm1, %v2976_v49 }
 0x935   : > { %5632 = vmatprep.mubr.msk.bf16.mxu1 %vm6695_vm0, %v6694_v20 }
 0x9ee   : > { %v2761_v56 = vpop.f32.mrb[40].mxu1 }
 0x9ef   : > { %v5610_v17 = vpop.f32.mrb[41].mxu1 }
 0x9f0   : > { %v2764_v58 = vpop.f32.mrb[42].mxu1 }
 0x9f1   : > { %v2812_v10 = vpack.c.bf16 %v2764_v58, %v2761_v56  ;;  %v5611_v11 = vpop.f32.mrb[43].mxu1 }
 0x9f3   : > { %5312 = vmatmul.mubr.msk.bf16.vlgmr.msra.gmra.mrb[24].mxu0 %vm1904_vm1, %v2812_v10 }
 0x9f4   : > { %2902 = vmatprep.mubr.bf16.mxu0 %v6697_v45  ;;  %3218 = vmatpush1.bf16.msra.mxu0 %v6003_v59  ;;  %v6054_v59 = vld [vmem:[%s7212_s26 + $0xc8] ss:$16 sps:$4 sm:$0xff]  }
 0x9f5   : > { %3219 = vmatprep.subr.bf16.mxu0 %v6008_v61  ;;  %v3283_v61 = vrot.slane %v3278_v60, %v7353_v24 }
 0x9f6   : > { %v2805_v12 = vpop.f32.mrb[44].mxu1 }
 0x9f7   : > { %v5616_v13 = vpop.f32.mrb[45].mxu1 }
 0x9f8   : > { %v2808_v14 = vpop.f32.mrb[46].mxu1  ;;  %3220 = vmatpush1.bf16.msra.mxu0 %v6006_v62  ;;  %v6012_v13 = vld [vmem:[%s7206_s15 + $0xf0] ss:$8 sps:$4 sm:$0xff]   ;;  %v3287_v62 = vrot.slane %v3278_v60, %v7361_v23 }
 0x9f9   : > { %v2813_v0 = vpack.c.bf16 %v2808_v14, %v2805_v12  ;;  %v5617_v19 = vpop.f32.mrb[47].mxu1  ;;  %3221 = vmatprep.subr.bf16.mxu0 %v6011_v63  ;;  %v6014_v12 = vld [vmem:[%s7206_s15 + $0xf4] ss:$8 sps:$4 sm:$0xff]   ;;  %v6069_v60 = vld [vmem:[%s7212_s26 + $0x120] ss:$16 sps:$4 sm:$0xff]  }
 0x9fb   : > { %5313 = vmatmul.mubr.msk.bf16.gmra.mrb[28].mxu0 %vm1904_vm1, %v2813_v0 }
 0x9fc   : > { %3249 = vmatprep.mubr.bf16.mxu0 %v6697_v45  ;;  %3222 = vmatpush1.bf16.msra.mxu0 %v6009_v2 }
 0x9fd   : > { %3223 = vmatprep.subr.bf16.mxu0 %v6014_v12 }
 0x9ff   : > { %v2967_v25 = vpop.f32.mrb[48].mxu1 }
 0xa00   : > { %v5622_v26 = vpop.f32.mrb[49].mxu1  ;;  %v3027_v15 = vsel %vm1999_vm2, %v2967_v25, -inf  ;;  %3224 = vmatpush1.bf16.msra.mxu0 %v6012_v13 }
 0xa01   : > { %3028 = vmax.xlane.f32.xlu0 %v3027_v15  ;;  %v2970_v50 = vpop.f32.mrb[50].mxu1 }
 0xa02   : > { %v5623_v16 = vpop.f32.mrb[51].mxu1  ;;  %v3030_v21 = vsel %vm1999_vm2, %v2970_v50, -inf }
 0xa03   : > { %3031 = vmax.xlane.f32.xlu1 %v3030_v21 }
 0xa07   : > { %v3020_v27 = vpop.f32.mrb[52].mxu1 }
 0xa08   : > { %v5628_v29 = vpop.f32.mrb[53].mxu1  ;;  %v3033_v32 = vsel %vm1999_vm2, %v3020_v27, -inf }
 0xa09   : > { %3034 = vmax.xlane.f32.xlu0 %v3033_v32  ;;  %v3023_v33 = vpop.f32.mrb[54].mxu1  ;;  %v6017_v29 = vld [vmem:[%s7212_s26 + $0x4] ss:$16 sps:$4 sm:$0xff]   ;;  %v6018_v32 = vld [vmem:[%s7212_s26 + $0x8] ss:$16 sps:$4 sm:$0xff]  }
 0xa0a   : > { %v5629_v34 = vpop.f32.mrb[55].mxu1  ;;  %v3036_v28 = vsel %vm1999_vm2, %v3023_v33, -inf }
 0xa0b   : > { %v6023_v34 = vld [vmem:[%s7212_s26 + $0x24] ss:$16 sps:$4 sm:$0xff]  }
 0xa0d   : > { %3037 = vmax.xlane.f32.xlu0 %v3036_v28  ;;  %v6021_v28 = vld [vmem:[%s7212_s26 + $0x20] ss:$16 sps:$4 sm:$0xff]  }
 0xa8e   : > { %v3029_v30 = vpop.xlane.xlu0 %3028 }
 0xa8f   : > { %v3039_v31 = vsub.f32 %v2967_v25, %v3029_v30  ;;  %v6024_v30 = vld [vmem:[%s7212_s26 + $0x28] ss:$16 sps:$4 sm:$0xff]  }
 0xa90   : > { %v3032_v35 = vpop.xlane.xlu1 %3031 }
 0xa91   : > { %v3043_v36 = vmul.f32 1.442695, %v3039_v31  ;;  %v3040_v37 = vsub.f32 %v2970_v50, %v3032_v35  ;;  %v6029_v31 = vld [vmem:[%s7212_s26 + $0x44] ss:$16 sps:$4 sm:$0xff]   ;;  %v6032_v35 = vld [vmem:[%s7212_s26 + $0x4c] ss:$16 sps:$4 sm:$0xff]  }
 0xa93   : > { %6255 = vpow2.f32 %v3043_v36  ;;  %v3045_v38 = vmul.f32 1.442695, %v3040_v37  ;;  %v6027_v36 = vld [vmem:[%s7212_s26 + $0x40] ss:$16 sps:$4 sm:$0xff]   ;;  %v6030_v37 = vld [vmem:[%s7212_s26 + $0x48] ss:$16 sps:$4 sm:$0xff]  }
 0xa95   : > { %6257 = vpow2.f32 %v3045_v38  ;;  %v6035_v38 = vld [vmem:[%s7212_s26 + $0x64] ss:$16 sps:$4 sm:$0xff]  }
 0xa96   : > { %v3035_v39 = vpop.xlane.xlu0 %3034 }
 0xa97   : > { %v3041_v42 = vsub.f32 %v3020_v27, %v3035_v39  ;;  %v6015_v27 = vld [vmem:[%s7212_s26] ss:$16 sps:$4 sm:$0xff]   ;;  %v6038_v39 = vld [vmem:[%s7212_s26 + $0x6c] ss:$16 sps:$4 sm:$0xff]  }
 0xa99   : > { %v3047_v43 = vmul.f32 1.442695, %v3041_v42  ;;  %v6033_v42 = vld [vmem:[%s7212_s26 + $0x60] ss:$16 sps:$4 sm:$0xff]  }
 0xa9a   : > { %v3038_v44 = vpop.xlane.xlu0 %3037 }
 0xa9b   : > { %6259 = vpow2.f32 %v3047_v43  ;;  %v3042_v46 = vsub.f32 %v3023_v33, %v3038_v44  ;;  %v6020_v33 = vld [vmem:[%s7212_s26 + $0xc] ss:$16 sps:$4 sm:$0xff]   ;;  %v6036_v43 = vld [vmem:[%s7212_s26 + $0x68] ss:$16 sps:$4 sm:$0xff]   ;;  %v6041_v44 = vld [vmem:[%s7212_s26 + $0x84] ss:$16 sps:$4 sm:$0xff]  }
 0xa9c   : > { %3886 = vmatprep.subr.bf16.mxu0 %v6020_v33 }
 0xa9d   : > { %v6256_v47 = vpop.eup %6255  ;;  %v3049_v48 = vmul.f32 1.442695, %v3042_v46  ;;  %v6044_v46 = vld [vmem:[%s7212_s26 + $0x8c] ss:$16 sps:$4 sm:$0xff]  }
 0xa9e   : > { %v3051_v41 = vsel %vm1999_vm2, %v6256_v47, 0.0 }
 0xa9f   : > { %v6258_v7 = vpop.eup %6257  ;;  %6261 = vpow2.f32 %v3049_v48  ;;  %3052 = vadd.xlane.f32.xlu0 %v3051_v41  ;;  %v6042_v48 = vld [vmem:[%s7212_s26 + $0x88] ss:$16 sps:$4 sm:$0xff]   ;;  %v6047_v41 = vld [vmem:[%s7212_s26 + $0xa4] ss:$16 sps:$4 sm:$0xff]  }
 0xaa0   : > { %v3054_v18 = vsel %vm1999_vm2, %v6258_v7, 0.0 }
 0xaa1   : > { %3055 = vadd.xlane.f32.xlu1 %v3054_v18  ;;  %v6045_v18 = vld [vmem:[%s7212_s26 + $0xa0] ss:$16 sps:$4 sm:$0xff]  }
 0xaa5   : > { %v6260_v53 = vpop.eup %6259 }
 0xaa6   : > { %v3057_v57 = vsel %vm1999_vm2, %v6260_v53, 0.0 }
 0xaa7   : > { %3058 = vadd.xlane.f32.xlu1 %v3057_v57  ;;  %v6053_v57 = vld [vmem:[%s7212_s26 + $0xc4] ss:$16 sps:$4 sm:$0xff]  }
 0xaa9   : > { %v6262_v54 = vpop.eup %6261 }
 0xaaa   : > { %v3060_v55 = vsel %vm1999_vm2, %v6262_v54, 0.0 }
 0xaab   : > { %3061 = vadd.xlane.f32.xlu1 %v3060_v55  ;;  %v6051_v55 = vld [vmem:[%s7212_s26 + $0xc0] ss:$16 sps:$4 sm:$0xff]  }
 0xab5   : > { %3074 = vrot.lane.b32.xlu0 %v7450_v52, %s6696_s4 }
 0xabc   : > { %3122 = vrot.lane.b32.xlu1 %v7458_v1, %s6696_s4 }
 0xb2c   : > { %v3053_v3 = vpop.xlane.xlu0 %3052 }
 0xb2d   : > { %6263 = vrcp.f32 %v3053_v3 }
 0xb2e   : > { %v3056_v4 = vpop.xlane.xlu1 %3055 }
 0xb2f   : > { %6265 = vrcp.f32 %v3056_v4 }
 0xb30   : > { %v3075_v52 = vpop.permute.xlu0 %3074 }
 0xb31   : > { %5631 = vmatpush3.bf16.msra.mxu1 %v3075_v52 }
 0xb32   : > { %5636 = vmatprep.subr.bf16.mxu1 %v6694_v20 }
 0xb34   : > { %v3059_v1 = vpop.xlane.xlu1 %3058 }
 0xb35   : > { %6267 = vrcp.f32 %v3059_v1  ;;  %v6287_v1 = vld [vmem:[#allocation2] sm:$0xff] }
 0xb37   : > { %v6264_v40 = vpop.eup %6263 }
 0xb38   : > { %v3062_v5 = vpop.xlane.xlu1 %3061  ;;  %v3067_v9 = vmul.f32 %v6264_v40, %v6256_v47  ;;  %v6039_v47 = vld [vmem:[%s7212_s26 + $0x80] ss:$16 sps:$4 sm:$0xff]  }
 0xb39   : > { %v6266_v8 = vpop.eup %6265  ;;  %6269 = vrcp.f32 %v3062_v5 }
 0xb3a   : > { %v3068_v49 = vmul.f32 %v6266_v8, %v6258_v7  ;;  %v6050_v7 = vld [vmem:[%s7212_s26 + $0xac] ss:$16 sps:$4 sm:$0xff]  }
 0xb3c   : > { %v3123_v51 = vpop.permute.xlu1 %3122  ;;  %v3071_v6 = vpack.c.bf16 %v3068_v49, %v3067_v9  ;;  %v6288_v9 = vld [vmem:[#allocation2 + $0x8] sm:$0xff] }
 0xb3e   : > { %5633 = vmatmul.mubr.msk.bf16.vlgmr.msra.gmra.mrb[56].mxu1 %vm1999_vm2, %v3071_v6  ;;  %v6289_v6 = vld [vmem:[#allocation2 + $0x10] sm:$0xff] }
 0xb3f   : > { %5637 = vmatpush3.bf16.msra.mxu1 %v3123_v51  ;;  %5638 = vmatprep.mubr.msk.bf16.mxu1 %vm6695_vm0, %v6694_v20  ;;  %v6268_v56 = vpop.eup %6267 }
 0xb40   : > { %v3069_v58 = vmul.f32 %v6268_v56, %v6260_v53  ;;  %3833 = vmatprep.subr.bf16.mxu1 %v6017_v29  ;;  %v6048_v53 = vld [vmem:[%s7212_s26 + $0xa8] ss:$16 sps:$4 sm:$0xff]  }
 0xb43   : > { %v6270_v17 = vpop.eup %6269 }
 0xb44   : > { %v3070_v10 = vmul.f32 %v6270_v17, %v6262_v54  ;;  %v6056_v54 = vld [vmem:[%s7212_s26 + $0xcc] ss:$16 sps:$4 sm:$0xff]   ;;  %v6290_v17 = vld [vmem:[#allocation2 + $0x18] sm:$0xff] }
 0xb46   : > { %v3072_v11 = vpack.c.bf16 %v3070_v10, %v3069_v58 }
 0xb48   : > { %5639 = vmatmul.mubr.msk.bf16.vlgmr.msra.gmra.mrb[60].mxu1 %vm1999_vm2, %v3072_v11 }
 0xb49   : > { %3834 = vmatpush1.bf16.msra.mxu1 %v6015_v27 }
 0xb4a   : > { %3835 = vmatprep.subr.bf16.mxu1 %v6023_v34 }
 0xb4d   : > { %3836 = vmatpush1.bf16.msra.mxu1 %v6021_v28  ;;  %v6293_v28 = vld [vmem:[#allocation2 + $0x30] sm:$0xff] }
 0xb4e   : > { %3837 = vmatprep.subr.bf16.mxu1 %v6029_v31  ;;  %v6294_v31 = vld [vmem:[#allocation2 + $0x38] sm:$0xff] }
 0xb51   : > { %3838 = vmatpush1.bf16.msra.mxu1 %v6027_v36 }
 0xb52   : > { %3839 = vmatprep.subr.bf16.mxu1 %v6035_v38 }
 0xb55   : > { %3840 = vmatpush1.bf16.msra.mxu1 %v6033_v42 }
 0xb56   : > { %3841 = vmatprep.subr.bf16.mxu1 %v6041_v44  ;;  %v6059_v44 = vld [vmem:[%s7212_s26 + $0xe4] ss:$16 sps:$4 sm:$0xff]  }
 0xb59   : > { %3842 = vmatpush1.bf16.msra.mxu1 %v6039_v47 }
 0xb5a   : > { %3843 = vmatprep.subr.bf16.mxu1 %v6047_v41  ;;  %v6057_v41 = vld [vmem:[%s7212_s26 + $0xe0] ss:$16 sps:$4 sm:$0xff]  }
 0xb5d   : > { %3844 = vmatpush1.bf16.msra.mxu1 %v6045_v18  ;;  %v6065_v18 = vld [vmem:[%s7212_s26 + $0x104] ss:$16 sps:$4 sm:$0xff]  }
 0xb5e   : > { %3845 = vmatprep.subr.bf16.mxu1 %v6053_v57  ;;  %v6063_v57 = vld [vmem:[%s7212_s26 + $0x100] ss:$16 sps:$4 sm:$0xff]  }
 0xb61   : > { %3846 = vmatpush1.bf16.msra.mxu1 %v6051_v55  ;;  %v6071_v55 = vld [vmem:[%s7212_s26 + $0x124] ss:$16 sps:$4 sm:$0xff]  }
 0xb62   : > { %3847 = vmatprep.subr.bf16.mxu1 %v6059_v44 }
 0xb65   : > { %3848 = vmatpush1.bf16.msra.mxu1 %v6057_v41 }
 0xb66   : > { %3849 = vmatprep.subr.bf16.mxu1 %v6065_v18 }
 0xb69   : > { %3850 = vmatpush1.bf16.msra.mxu1 %v6063_v57 }
 0xb6a   : > { %3851 = vmatprep.subr.bf16.mxu1 %v6071_v55 }
 0xb6d   : > { %3852 = vmatpush1.bf16.msra.mxu1 %v6069_v60 }
 0xc11   : > { %v3114_v14 = vpop.f32.mrb[56].mxu1 }
 0xc12   : > { %v5634_v0 = vpop.f32.mrb[57].mxu1 }
 0xc13   : > { %v3117_v19 = vpop.f32.mrb[58].mxu1 }
 0xc14   : > { %v3169_v20 = vpack.c.bf16 %v3117_v19, %v3114_v14  ;;  %v5635_v25 = vpop.f32.mrb[59].mxu1 }
 0xc16   : > { %5326 = vmatmul.mubr.msk.bf16.vlgmr.msra.gmra.mrb[24].mxu0 %vm1904_vm1, %v3169_v20 }
 0xc17   : > { %3259 = vmatprep.mubr.bf16.mxu0 %v6697_v45  ;;  %v6026_v45 = vld [vmem:[%s7212_s26 + $0x2c] ss:$16 sps:$4 sm:$0xff]   ;;  %3887 = vmatpush1.bf16.msra.mxu0 %v6018_v32  ;;  %v6292_v32 = vld [vmem:[#allocation2 + $0x28] sm:$0xff] }
 0xc18   : > { %3888 = vmatprep.subr.bf16.mxu0 %v6026_v45 }
 0xc1b   : > { %v3162_v26 = vpop.f32.mrb[60].mxu1  ;;  %3889 = vmatpush1.bf16.msra.mxu0 %v6024_v30 }
 0xc1c   : > { %v5640_v15 = vpop.f32.mrb[61].mxu1  ;;  %3890 = vmatprep.subr.bf16.mxu0 %v6032_v35 }
 0xc1d   : > { %v3165_v50 = vpop.f32.mrb[62].mxu1 }
 0xc1e   : > { %v3170_v16 = vpack.c.bf16 %v3165_v50, %v3162_v26  ;;  %v5641_v21 = vpop.f32.mrb[63].mxu1 }
 0xc1f   : > { %3891 = vmatpush1.bf16.msra.mxu0 %v6030_v37 }
 0xc20   : > { %5327 = vmatmul.mubr.msk.bf16.gmra.mrb[28].mxu0 %vm1904_vm1, %v3170_v16  ;;  %3892 = vmatprep.subr.bf16.mxu0 %v6038_v39  ;;  %v6291_v16 = vld [vmem:[#allocation2 + $0x20] sm:$0xff] }
 0xc23   : > { %3893 = vmatpush1.bf16.msra.mxu0 %v6036_v43 }
 0xc24   : > { %3894 = vmatprep.subr.bf16.mxu0 %v6044_v46  ;;  %v6062_v46 = vld [vmem:[%s7212_s26 + $0xec] ss:$16 sps:$4 sm:$0xff]  }
 0xc27   : > { %3895 = vmatpush1.bf16.msra.mxu0 %v6042_v48 }
 0xc28   : > { %3896 = vmatprep.subr.bf16.mxu0 %v6050_v7  ;;  %v6060_v7 = vld [vmem:[%s7212_s26 + $0xe8] ss:$16 sps:$4 sm:$0xff]  }
 0xc2b   : > { %3897 = vmatpush1.bf16.msra.mxu0 %v6048_v53  ;;  %v6068_v53 = vld [vmem:[%s7212_s26 + $0x10c] ss:$16 sps:$4 sm:$0xff]  }
 0xc2c   : > { %3898 = vmatprep.subr.bf16.mxu0 %v6056_v54  ;;  %v6066_v54 = vld [vmem:[%s7212_s26 + $0x108] ss:$16 sps:$4 sm:$0xff]  }
 0xc2f   : > { %3899 = vmatpush1.bf16.msra.mxu0 %v6054_v59  ;;  %v6074_v59 = vld [vmem:[%s7212_s26 + $0x12c] ss:$16 sps:$4 sm:$0xff]  }
 0xc30   : > { %3900 = vmatprep.subr.bf16.mxu0 %v6062_v46 }
 0xc33   : > { %3901 = vmatpush1.bf16.msra.mxu0 %v6060_v7 }
 0xc34   : > { %3902 = vmatprep.subr.bf16.mxu0 %v6068_v53 }
 0xc37   : > { %3903 = vmatpush1.bf16.msra.mxu0 %v6066_v54 }
 0xc38   : > { %3904 = vmatprep.subr.bf16.mxu0 %v6074_v59 }
 0xce9   : > { %v3251_v63 = vpop.f32.mrb[24].mxu0 }
 0xcea   : > { %v3290_v2 = vadd.f32 %v3283_v61, %v3251_v63  ;;  %v3253_v3 = vpop.f32.mrb[25].mxu0  ;;  %v6080_v63 = vld [vmem:[%s7212_s26 + $0x14c] ss:$16 sps:$4 sm:$0xff]  }
 0xceb   : > { %v3291_v4 = vadd.f32 %v3287_v62, %v3253_v3  ;;  %v3255_v52 = vpop.f32.mrb[26].mxu0  ;;  %v6078_v3 = vld [vmem:[%s7212_s26 + $0x148] ss:$16 sps:$4 sm:$0xff]  }
 0xcec   : > { %v7672_v40 = vadd.f32 %v6287_v1, %v3290_v2  ;;  %v3292_v5 = vadd.f32 %v3283_v61, %v3255_v52  ;;  %v3257_v8 = vpop.f32.mrb[27].mxu0  ;;  %v6075_v2 = vld [vmem:[%s7212_s26 + $0x140] ss:$16 sps:$4 sm:$0xff]   ;;  %v6086_v52 = vld [vmem:[%s7212_s26 + $0x16c] ss:$16 sps:$4 sm:$0xff]  }
 0xced   : > { %v7674_v49 = vadd.f32 %v6288_v9, %v3291_v4  ;;  %v3293_v51 = vadd.f32 %v3287_v62, %v3257_v8  ;;  %v6083_v4 = vld [vmem:[%s7212_s26 + $0x164] ss:$16 sps:$4 sm:$0xff]   ;;  %v6081_v1 = vld [vmem:[%s7212_s26 + $0x160] ss:$16 sps:$4 sm:$0xff]   ;;  %v6092_v9 = vld [vmem:[%s7212_s26 + $0x18c] ss:$16 sps:$4 sm:$0xff]  }
 0xcee   : > { %v7676_v56 = vadd.f32 %v6289_v6, %v3292_v5  ;;  %v3325_v11 = vmul.f32 %v7672_v40, %v7672_v40  ;;  %v6084_v5 = vld [vmem:[%s7212_s26 + $0x168] ss:$16 sps:$4 sm:$0xff]   ;;  %v6089_v8 = vld [vmem:[%s7212_s26 + $0x184] ss:$16 sps:$4 sm:$0xff]  }
 0xcef   : > { %v7678_v58 = vadd.f32 %v6290_v17, %v3293_v51  ;;  %v3308_v10 = vadd.f32 %v7674_v49, %v7672_v40  ;;  %v3326_v12 = vmul.f32 %v7674_v49, %v7674_v49  ;;  %v6087_v51 = vld [vmem:[%s7212_s26 + $0x180] ss:$16 sps:$4 sm:$0xff]   ;;  %v6090_v6 = vld [vmem:[%s7212_s26 + $0x188] ss:$16 sps:$4 sm:$0xff]   ;;  %v6095_v17 = vld [vmem:[%s7212_s26 + $0x1a4] ss:$16 sps:$4 sm:$0xff]  }
 0xcf0   : > { %v3327_v19 = vmul.f32 %v7676_v56, %v7676_v56 }
 0xcf1   : > { %3309 = vadd.xlane.f32.xlu0 %v3308_v10  ;;  %v3311_v13 = vadd.f32 %v7678_v58, %v7676_v56  ;;  %v3333_v0 = vadd.f32 %v3326_v12, %v3325_v11  ;;  %v3328_v20 = vmul.f32 %v7678_v58, %v7678_v58  ;;  %v6098_v10 = vld [vmem:[%s7212_s26 + $0x1ac] ss:$16 sps:$4 sm:$0xff]   ;;  %v6093_v11 = vld [vmem:[%s7212_s26 + $0x1a0] ss:$16 sps:$4 sm:$0xff]   ;;  %v6096_v12 = vld [vmem:[%s7212_s26 + $0x1a8] ss:$16 sps:$4 sm:$0xff]  }
 0xcf3   : > { %3312 = vadd.xlane.f32.xlu1 %v3311_v13  ;;  %v3261_v14 = vpop.f32.mrb[28].mxu0  ;;  %v3336_v45 = vadd.f32 %v3328_v20, %v3327_v19  ;;  %v6101_v13 = vld [vmem:[%s7212_s26 + $0x1c4] ss:$16 sps:$4 sm:$0xff]   ;;  %v6102_v19 = vld [vmem:[%s7212_s26 + $0x1c8] ss:$16 sps:$4 sm:$0xff]  }
 0xcf4   : > { %v3294_v25 = vadd.f32 %v3283_v61, %v3261_v14  ;;  %v3263_v26 = vpop.f32.mrb[29].mxu0  ;;  %v6104_v14 = vld [vmem:[%s7212_s26 + $0x1cc] ss:$16 sps:$4 sm:$0xff]   ;;  %v6107_v20 = vld [vmem:[%s7212_s26 + $0x1e4] ss:$16 sps:$4 sm:$0xff]  }
 0xcf5   : > { %v3295_v15 = vadd.f32 %v3287_v62, %v3263_v26  ;;  %3334 = vadd.xlane.f32.xlu0 %v3333_v0  ;;  %v3265_v50 = vpop.f32.mrb[30].mxu0  ;;  %v6099_v0 = vld [vmem:[%s7212_s26 + $0x1c0] ss:$16 sps:$4 sm:$0xff]  }
 0xcf6   : > { %v7692_v21 = vadd.f32 %v6291_v16, %v3294_v25  ;;  %v3296_v27 = vadd.f32 %v3283_v61, %v3265_v50  ;;  %v3267_v29 = vpop.f32.mrb[31].mxu0  ;;  %v6072_v61 = vld [vmem:[%s7212_s26 + $0x128] ss:$16 sps:$4 sm:$0xff]   ;;  %v6110_v25 = vld [vmem:[%s7212_s26 + $0x1ec] ss:$16 sps:$4 sm:$0xff]  }
 0xcf7   : > { %v7694_v33 = vadd.f32 %v6292_v32, %v3295_v15  ;;  %v3297_v34 = vadd.f32 %v3287_v62, %v3267_v29  ;;  %3905 = vmatpush1.bf16.msra.mxu0 %v6072_v61  ;;  %v6077_v62 = vld [vmem:[%s7212_s26 + $0x144] ss:$16 sps:$4 sm:$0xff]   ;;  %v6105_v26 = vld [vmem:[%s7212_s26 + $0x1e0] ss:$16 sps:$4 sm:$0xff]   ;;  %v6108_v15 = vld [vmem:[%s7212_s26 + $0x1e8] ss:$16 sps:$4 sm:$0xff]  }
 0xcf8   : > { %v7696_v30 = vadd.f32 %v6293_v28, %v3296_v27  ;;  %v3329_v37 = vmul.f32 %v7692_v21, %v7692_v21  ;;  %3853 = vmatprep.subr.bf16.mxu1 %v6077_v62  ;;  %3906 = vmatprep.subr.bf16.mxu0 %v6080_v63  ;;  %v6113_v50 = vld [vmem:[%s8140_s24 + $0x4] ss:$8 sps:$4 sm:$0xff]  }
 0xcf9   : > { %v7698_v35 = vadd.f32 %v6294_v31, %v3297_v34  ;;  %3337 = vadd.xlane.f32.xlu0 %v3336_v45  ;;  %v3314_v36 = vadd.f32 %v7694_v33, %v7692_v21  ;;  %v3330_v39 = vmul.f32 %v7694_v33, %v7694_v33  ;;  %3854 = vmatpush1.bf16.msra.mxu1 %v6075_v2  ;;  %v3306_v2 = vld [vmem:[%s1026_s16] sm:$0x3] }
 0xcfa   : > { %v3331_v42 = vmul.f32 %v7696_v30, %v7696_v30  ;;  %3855 = vmatprep.subr.bf16.mxu1 %v6083_v4 }
 0xcfb   : > { %v3317_v38 = vadd.f32 %v7698_v35, %v7696_v30  ;;  %v3332_v43 = vmul.f32 %v7698_v35, %v7698_v35  ;;  %v3339_v47 = vadd.f32 %v3330_v39, %v3329_v37  ;;  %3907 = vmatpush1.bf16.msra.mxu0 %v6078_v3 }
 0xcfc   : > { %3908 = vmatprep.subr.bf16.mxu0 %v6086_v52 }
 0xcfd   : > { %3315 = vadd.xlane.f32.xlu0 %v3314_v36  ;;  %3318 = vadd.xlane.f32.xlu1 %v3317_v38  ;;  %v3342_v48 = vadd.f32 %v3332_v43, %v3331_v42 }
 0xcfe   : > { %3856 = vmatpush1.bf16.msra.mxu1 %v6081_v1 }
 0xcff   : > { %3909 = vmatpush1.bf16.msra.mxu0 %v6084_v5  ;;  %3857 = vmatprep.subr.bf16.mxu1 %v6089_v8  ;;  %v3307_v8 = vld [vmem:[%s1030_s17] sm:$0x3] }
 0xd00   : > { %3910 = vmatprep.subr.bf16.mxu0 %v6092_v9 }
 0xd01   : > { %3340 = vadd.xlane.f32.xlu0 %v3339_v47  ;;  %3343 = vadd.xlane.f32.xlu1 %v3342_v48 }
 0xd02   : > { %3858 = vmatpush1.bf16.msra.mxu1 %v6087_v51  ;;  %v3389_v51 = vrot.slane %v3306_v2, %v7353_v24 }
 0xd03   : > { %3911 = vmatpush1.bf16.msra.mxu0 %v6090_v6  ;;  %3859 = vmatprep.subr.bf16.mxu1 %v6095_v17  ;;  %v3393_v6 = vrot.slane %v3306_v2, %v7361_v23  ;;  %v6134_v2 = vld [vmem:[%s8140_s24 + $0x74] ss:$8 sps:$4 sm:$0xff]  }
 0xd04   : > { %3912 = vmatprep.subr.bf16.mxu0 %v6098_v10 }
 0xd06   : > { %3860 = vmatpush1.bf16.msra.mxu1 %v6093_v11  ;;  %v3408_v11 = vrot.slane %v3307_v8, %v7353_v24 }
 0xd07   : > { %3913 = vmatpush1.bf16.msra.mxu0 %v6096_v12  ;;  %3861 = vmatprep.subr.bf16.mxu1 %v6101_v13  ;;  %v3412_v12 = vrot.slane %v3307_v8, %v7361_v23  ;;  %v6143_v8 = vld [vmem:[%s8140_s24 + $0xa4] ss:$8 sps:$4 sm:$0xff]  }
 0xd08   : > { %3914 = vmatprep.subr.bf16.mxu0 %v6104_v14 }
 0xd0a   : > { %3862 = vmatpush1.bf16.msra.mxu1 %v6099_v0 }
 0xd0b   : > { %3915 = vmatpush1.bf16.msra.mxu0 %v6102_v19  ;;  %3863 = vmatprep.subr.bf16.mxu1 %v6107_v20 }
 0xd0c   : > { %3916 = vmatprep.subr.bf16.mxu0 %v6110_v25 }
 0xd0e   : > { %3864 = vmatpush1.bf16.msra.mxu1 %v6105_v26 }
 0xd0f   : > { %3917 = vmatpush1.bf16.msra.mxu0 %v6108_v15  ;;  %4359 = vmatprep.subr.bf16.mxu1 %v6113_v50 }
 0xd7e   : > { %v3310_v16 = vpop.xlane.xlu0 %3309 }
 0xd7f   : > { %v3321_v27 = vmul.f32 0.00390625, %v3310_v16 }
 0xd80   : > { %v3313_v29 = vpop.xlane.xlu1 %3312 }
 0xd81   : > { %v3322_v34 = vmul.f32 0.00390625, %v3313_v29  ;;  %v3349_v45 = vmul.f32 %v3321_v27, %v3321_v27  ;;  %v3361_v3 = vsub.f32 %v7672_v40, %v3321_v27  ;;  %v3362_v4 = vsub.f32 %v7674_v49, %v3321_v27 }
 0xd82   : > { %v3335_v32 = vpop.xlane.xlu0 %3334 }
 0xd83   : > { %v3345_v28 = vmul.f32 0.00390625, %v3335_v32  ;;  %v3350_v39 = vmul.f32 %v3322_v34, %v3322_v34  ;;  %v3363_v10 = vsub.f32 %v7676_v56, %v3322_v34  ;;  %v3364_v40 = vsub.f32 %v7678_v58, %v3322_v34  ;;  %v6111_v32 = vld [vmem:[%s8140_s24] ss:$8 sps:$4 sm:$0xff]  }
 0xd85   : > { %v3353_v31 = vsub.f32 %v3345_v28, %v3349_v45 }
 0xd86   : > { %v3338_v36 = vpop.xlane.xlu0 %3337 }
 0xd87   : > { %v3357_v37 = vmax.f32 %v3353_v31, 0.0  ;;  %v3346_v38 = vmul.f32 0.00390625, %v3338_v36  ;;  %v6116_v31 = vld [vmem:[%s8140_s24 + $0x14] ss:$8 sps:$4 sm:$0xff]  }
 0xd89   : > { %v3369_v42 = vadd.f32 1e-05, %v3357_v37  ;;  %v3354_v43 = vsub.f32 %v3346_v38, %v3350_v39 }
 0xd8a   : > { %v3316_v44 = vpop.xlane.xlu0 %3315  ;;  %v3319_v46 = vpop.xlane.xlu1 %3318 }
 0xd8b   : > { %6271 = vrsqrt.f32 %v3369_v42  ;;  %v3358_v47 = vmax.f32 %v3354_v43, 0.0  ;;  %v3323_v48 = vmul.f32 0.00390625, %v3316_v44  ;;  %v3324_v41 = vmul.f32 0.00390625, %v3319_v46  ;;  %v6114_v43 = vld [vmem:[%s8140_s24 + $0x10] ss:$8 sps:$4 sm:$0xff]  }
 0xd8d   : > { %v3370_v7 = vadd.f32 1e-05, %v3358_v47  ;;  %v3351_v18 = vmul.f32 %v3323_v48, %v3323_v48  ;;  %v3352_v55 = vmul.f32 %v3324_v41, %v3324_v41  ;;  %v3365_v50 = vsub.f32 %v7692_v21, %v3323_v48 }
 0xd8e   : > { %v3341_v53 = vpop.xlane.xlu0 %3340  ;;  %v3344_v57 = vpop.xlane.xlu1 %3343  ;;  %v3366_v16 = vsub.f32 %v7694_v33, %v3323_v48  ;;  %v3367_v45 = vsub.f32 %v7696_v30, %v3324_v41  ;;  %v3368_v28 = vsub.f32 %v7698_v35, %v3324_v41  ;;  %v6119_v35 = vld [vmem:[%s8140_s24 + $0x24] ss:$8 sps:$4 sm:$0xff]  }
 0xd8f   : > { %6273 = vrsqrt.f32 %v3370_v7  ;;  %v3347_v54 = vmul.f32 0.00390625, %v3341_v53  ;;  %v3348_v59 = vmul.f32 0.00390625, %v3344_v57  ;;  %v6117_v53 = vld [vmem:[%s8140_s24 + $0x20] ss:$8 sps:$4 sm:$0xff]   ;;  %v6122_v57 = vld [vmem:[%s8140_s24 + $0x34] ss:$8 sps:$4 sm:$0xff]  }
 0xd91   : > { %v3355_v60 = vsub.f32 %v3347_v54, %v3351_v18  ;;  %v3356_v61 = vsub.f32 %v3348_v59, %v3352_v55  ;;  %v6120_v54 = vld [vmem:[%s8140_s24 + $0x30] ss:$8 sps:$4 sm:$0xff]   ;;  %v6125_v55 = vld [vmem:[%s8140_s24 + $0x44] ss:$8 sps:$4 sm:$0xff]   ;;  %v6123_v59 = vld [vmem:[%s8140_s24 + $0x40] ss:$8 sps:$4 sm:$0xff]  }
 0xd93   : > { %v3359_v62 = vmax.f32 %v3355_v60, 0.0  ;;  %v3360_v63 = vmax.f32 %v3356_v61, 0.0  ;;  %v6128_v60 = vld [vmem:[%s8140_s24 + $0x54] ss:$8 sps:$4 sm:$0xff]   ;;  %v6126_v61 = vld [vmem:[%s8140_s24 + $0x50] ss:$8 sps:$4 sm:$0xff]  }
 0xd95   : > { %v6272_v52 = vpop.eup %6271  ;;  %v3371_v1 = vadd.f32 1e-05, %v3359_v62  ;;  %v3372_v5 = vadd.f32 1e-05, %v3360_v63  ;;  %v6131_v62 = vld [vmem:[%s8140_s24 + $0x64] ss:$8 sps:$4 sm:$0xff]  }
 0xd96   : > { %v3378_v9 = vmul.f32 %v6272_v52, %v3362_v4  ;;  %v3377_v17 = vmul.f32 %v6272_v52, %v3361_v3  ;;  %v6129_v63 = vld [vmem:[%s8140_s24 + $0x60] ss:$8 sps:$4 sm:$0xff]   ;;  %v6132_v3 = vld [vmem:[%s8140_s24 + $0x70] ss:$8 sps:$4 sm:$0xff]   ;;  %v6137_v4 = vld [vmem:[%s8140_s24 + $0x84] ss:$8 sps:$4 sm:$0xff]  }
 0xd97   : > { %6275 = vrsqrt.f32 %v3371_v1  ;;  %v6135_v52 = vld [vmem:[%s8140_s24 + $0x80] ss:$8 sps:$4 sm:$0xff]   ;;  %v6140_v1 = vld [vmem:[%s8140_s24 + $0x94] ss:$8 sps:$4 sm:$0xff]  }
 0xd98   : > { %6277 = vrsqrt.f32 %v3372_v5  ;;  %v3397_v14 = vmul.f32 %v3393_v6, %v3378_v9  ;;  %v3396_v19 = vmul.f32 %v3389_v51, %v3377_v17  ;;  %v6138_v5 = vld [vmem:[%s8140_s24 + $0x90] ss:$8 sps:$4 sm:$0xff]   ;;  %v6141_v9 = vld [vmem:[%s8140_s24 + $0xa0] ss:$8 sps:$4 sm:$0xff]   ;;  %v6149_v17 = vld [vmem:[%s8140_s24 + $0xc4] ss:$8 sps:$4 sm:$0xff]  }
 0xd99   : > { %v6274_v49 = vpop.eup %6273 }
 0xd9a   : > { %v3380_v13 = vmul.f32 %v6274_v49, %v3364_v40  ;;  %v3379_v0 = vmul.f32 %v6274_v49, %v3363_v10  ;;  %v7767_v26 = vadd.f32 %v3412_v12, %v3397_v14  ;;  %v7771_v56 = vadd.f32 %v3408_v11, %v3396_v19  ;;  %v6147_v10 = vld [vmem:[%s8140_s24 + $0xc0] ss:$8 sps:$4 sm:$0xff]   ;;  %v6152_v40 = vld [vmem:[%s8140_s24 + $0xd4] ss:$8 sps:$4 sm:$0xff]   ;;  %v6150_v49 = vld [vmem:[%s8140_s24 + $0xd0] ss:$8 sps:$4 sm:$0xff]  }
 0xd9b   : > { %v6156_v14 = vld [vmem:[%s8140_s24 + $0xf0] ss:$8 sps:$4 sm:$0xff]   ;;  %v3503_v19 = vsub.s32 2, %v7350_v22 }
 0xd9c   : > { %v3399_v20 = vmul.f32 %v3393_v6, %v3380_v13  ;;  %v3398_v25 = vmul.f32 %v3389_v51, %v3379_v0  ;;  %v6158_v13 = vld [vmem:[%s8140_s24 + $0xf4] ss:$8 sps:$4 sm:$0xff]   ;;  %v6161_v0 = vld [vmem:[%s8140_s24 + $0x104] ss:$8 sps:$4 sm:$0xff]  }
 0xd9e   : > { %v7769_v15 = vadd.f32 %v3412_v12, %v3399_v20  ;;  %v7773_v58 = vadd.f32 %v3408_v11, %v3398_v25  ;;  %v3491_v20 = vld [vmem:[%s7251_s8] sm:$0xf]  ;;  %v3507_v25 = vsub.s32 3, %v7350_v22 }
 0xda0   : > { %v3424_v27 = vpack.c.bf16 %v7769_v15, %v7767_v26  ;;  %v3423_v29 = vpack.c.bf16 %v7773_v58, %v7771_v56 }
 0xda1   : > { %v6276_v34 = vpop.eup %6275 }
 0xda2   : > { %v6278_v36 = vpop.eup %6277  ;;  %3865 = vmatprep.mubr.bf16.mxu1 %v3424_v27  ;;  %3918 = vmatprep.mubr.bf16.mxu0 %v3424_v27  ;;  %v3382_v21 = vmul.f32 %v6276_v34, %v3366_v16  ;;  %v3381_v33 = vmul.f32 %v6276_v34, %v3365_v50  ;;  %v3496_v50 = vrot.slane %v3491_v20, %v7353_v24 }
 0xda3   : > { %3866 = vmatmul.mubr.bf16.vlgmr.msra.gmra.mrb[64].mxu1 %v3423_v29  ;;  %3919 = vmatmul.mubr.bf16.vlgmr.msra.gmra.mrb[32].mxu0 %v3423_v29  ;;  %v3384_v37 = vmul.f32 %v6278_v36, %v3368_v28  ;;  %v3383_v38 = vmul.f32 %v6278_v36, %v3367_v45  ;;  %v3504_v16 = vrot.slane %v3491_v20, %v3503_v19  ;;  %v6167_v19 = vld [vmem:[%s8140_s24 + $0x124] ss:$8 sps:$4 sm:$0xff]  }
 0xda4   : > { %v3401_v39 = vmul.f32 %v3393_v6, %v3382_v21  ;;  %v3400_v42 = vmul.f32 %v3389_v51, %v3381_v33  ;;  %4360 = vmatpush1.bf16.msra.mxu1 %v6111_v32  ;;  %v3500_v27 = vrot.slane %v3491_v20, %v7361_v23  ;;  %v3508_v29 = vrot.slane %v3491_v20, %v3507_v25 }
 0xda5   : > { %v3403_v30 = vmul.f32 %v3393_v6, %v3384_v37  ;;  %v3402_v44 = vmul.f32 %v3389_v51, %v3383_v38  ;;  %4361 = vmatprep.subr.bf16.mxu1 %v6116_v31  ;;  %v6146_v51 = vld [vmem:[%s8140_s24 + $0xb4] ss:$8 sps:$4 sm:$0xff]   ;;  %v6144_v6 = vld [vmem:[%s8140_s24 + $0xb0] ss:$8 sps:$4 sm:$0xff]  }
 0xda6   : > { %v7787_v46 = vadd.f32 %v3412_v12, %v3401_v39  ;;  %v7789_v47 = vadd.f32 %v3408_v11, %v3400_v42 }
 0xda7   : > { %v7791_v48 = vadd.f32 %v3412_v12, %v3403_v30  ;;  %v7793_v41 = vadd.f32 %v3408_v11, %v3402_v44  ;;  %v6155_v11 = vld [vmem:[%s8140_s24 + $0xe4] ss:$8 sps:$4 sm:$0xff]   ;;  %v6153_v12 = vld [vmem:[%s8140_s24 + $0xe0] ss:$8 sps:$4 sm:$0xff]  }
 0xda8   : > { %4362 = vmatpush1.bf16.msra.mxu1 %v6114_v43 }
 0xda9   : > { %v3426_v7 = vpack.c.bf16 %v7791_v48, %v7787_v46  ;;  %v3425_v18 = vpack.c.bf16 %v7793_v41, %v7789_v47  ;;  %4363 = vmatprep.subr.bf16.mxu1 %v6119_v35 }
 0xdab   : > { %3875 = vmatprep.mubr.bf16.mxu1 %v3426_v7  ;;  %3928 = vmatprep.mubr.bf16.mxu0 %v3426_v7 }
 0xdac   : > { %3876 = vmatmul.mubr.bf16.gmra.mrb[68].mxu1 %v3425_v18  ;;  %3929 = vmatmul.mubr.bf16.gmra.mrb[36].mxu0 %v3425_v18 }
 0xdad   : > { %4364 = vmatpush1.bf16.msra.mxu1 %v6117_v53 }
 0xdae   : > { %4365 = vmatprep.subr.bf16.mxu1 %v6122_v57 }
 0xdb1   : > { %4366 = vmatpush1.bf16.msra.mxu1 %v6120_v54 }
 0xdb2   : > { %4367 = vmatprep.subr.bf16.mxu1 %v6125_v55 }
 0xdb5   : > { %4368 = vmatpush1.bf16.msra.mxu1 %v6123_v59 }
 0xdb6   : > { %4369 = vmatprep.subr.bf16.mxu1 %v6128_v60 }
 0xdb9   : > { %4370 = vmatpush1.bf16.msra.mxu1 %v6126_v61 }
 0xdba   : > { %4371 = vmatprep.subr.bf16.mxu1 %v6131_v62 }
 0xdbd   : > { %4372 = vmatpush1.bf16.msra.mxu1 %v6129_v63 }
 0xdbe   : > { %4373 = vmatprep.subr.bf16.mxu1 %v6134_v2  ;;  %v6159_v2 = vld [vmem:[%s8140_s24 + $0x100] ss:$8 sps:$4 sm:$0xff]  }
 0xdc1   : > { %4374 = vmatpush1.bf16.msra.mxu1 %v6132_v3 }
 0xdc2   : > { %4375 = vmatprep.subr.bf16.mxu1 %v6137_v4 }
 0xdc5   : > { %4376 = vmatpush1.bf16.msra.mxu1 %v6135_v52  ;;  %v6164_v52 = vld [vmem:[%s8140_s24 + $0x114] ss:$8 sps:$4 sm:$0xff]  }
 0xdc6   : > { %4377 = vmatprep.subr.bf16.mxu1 %v6140_v1 }
 0xdc9   : > { %4378 = vmatpush1.bf16.msra.mxu1 %v6138_v5 }
 0xdca   : > { %4379 = vmatprep.subr.bf16.mxu1 %v6143_v8 }
 0xdcd   : > { %4380 = vmatpush1.bf16.msra.mxu1 %v6141_v9 }
 0xdce   : > { %4381 = vmatprep.subr.bf16.mxu1 %v6146_v51 }
 0xdd1   : > { %4382 = vmatpush1.bf16.msra.mxu1 %v6144_v6 }
 0xdd2   : > { %4383 = vmatprep.subr.bf16.mxu1 %v6149_v17 }
 0xdd5   : > { %4384 = vmatpush1.bf16.msra.mxu1 %v6147_v10 }
 0xdd6   : > { %4385 = vmatprep.subr.bf16.mxu1 %v6152_v40 }
 0xdd9   : > { %4386 = vmatpush1.bf16.msra.mxu1 %v6150_v49 }
 0xdda   : > { %4387 = vmatprep.subr.bf16.mxu1 %v6155_v11 }
 0xddd   : > { %4388 = vmatpush1.bf16.msra.mxu1 %v6153_v12 }
 0xdde   : > { %4389 = vmatprep.subr.bf16.mxu1 %v6158_v13  ;;  %v6162_v13 = vld [vmem:[%s8140_s24 + $0x110] ss:$8 sps:$4 sm:$0xff]  }
 0xde1   : > { %4390 = vmatpush1.bf16.msra.mxu1 %v6156_v14 }
 0xde2   : > { %4412 = vmatprep.subr.bf16.mxu1 %v6161_v0 }
 0xe76   : > { %v3867_v32 = vpop.f32.mrb[64].mxu1  ;;  %v3920_v34 = vpop.f32.mrb[32].mxu0 }
 0xe77   : > { %v3868_v45 = vadd.f32 %v3867_v32, %v3496_v50  ;;  %v3921_v28 = vadd.f32 %v3920_v34, %v3504_v16  ;;  %v3869_v31 = vpop.f32.mrb[65].mxu1  ;;  %v3922_v36 = vpop.f32.mrb[33].mxu0 }
 0xe78   : > { %v3870_v21 = vadd.f32 %v3869_v31, %v3500_v27  ;;  %v3923_v33 = vadd.f32 %v3922_v36, %v3508_v29  ;;  %v3871_v37 = vpop.f32.mrb[66].mxu1  ;;  %v3924_v38 = vpop.f32.mrb[34].mxu0 }
 0xe79   : > { %v3872_v39 = vadd.f32 %v3871_v37, %v3496_v50  ;;  %v3925_v42 = vadd.f32 %v3924_v38, %v3504_v16  ;;  %v3873_v43 = vpop.f32.mrb[67].mxu1  ;;  %v3926_v22 = vpop.f32.mrb[35].mxu0  ;;  %v3939_v35 = vmax.f32 %v3868_v45, 0.0  ;;  %v3941_v7 = vmax.f32 %v3921_v28, 0.0  ;;  %v6168_v37 = vld [vmem:[%s8140_s24 + $0x130] ss:$8 sps:$4 sm:$0xff]  }
 0xe7a   : > { %v3874_v30 = vadd.f32 %v3873_v43, %v3500_v27  ;;  %v3927_v44 = vadd.f32 %v3926_v22, %v3508_v29  ;;  %v3940_v57 = vmax.f32 %v3870_v21, 0.0  ;;  %v3942_v54 = vmax.f32 %v3923_v33, 0.0  ;;  %v6165_v21 = vld [vmem:[%s8140_s24 + $0x120] ss:$8 sps:$4 sm:$0xff]   ;;  %v6170_v33 = vld [vmem:[%s8140_s24 + $0x134] ss:$8 sps:$4 sm:$0xff]  }
 0xe7b   : > { %v3943_v18 = vmax.f32 %v3872_v39, 0.0  ;;  %v3945_v53 = vmax.f32 %v3925_v42, 0.0  ;;  %v6173_v38 = vld [vmem:[%s8140_s24 + $0x144] ss:$8 sps:$4 sm:$0xff]   ;;  %v6171_v39 = vld [vmem:[%s8140_s24 + $0x140] ss:$8 sps:$4 sm:$0xff]  }
 0xe7c   : > { %v3944_v55 = vmax.f32 %v3874_v30, 0.0  ;;  %v3946_v59 = vmax.f32 %v3927_v44, 0.0  ;;  %v6176_v42 = vld [vmem:[%s8140_s24 + $0x154] ss:$8 sps:$4 sm:$0xff]   ;;  %v6174_v43 = vld [vmem:[%s8140_s24 + $0x150] ss:$8 sps:$4 sm:$0xff]  }
 0xe7d   : > { %v3955_v60 = vpack.c.bf16 %v3943_v18, %v3939_v35  ;;  %v7832_v61 = vpack.c.bf16 %v3945_v53, %v3941_v7  ;;  %v6179_v22 = vld [vmem:[%s8140_s24 + $0x164] ss:$8 sps:$4 sm:$0xff]   ;;  %v6177_v30 = vld [vmem:[%s8140_s24 + $0x160] ss:$8 sps:$4 sm:$0xff]   ;;  %v6182_v44 = vld [vmem:[%s8140_s24 + $0x174] ss:$8 sps:$4 sm:$0xff]  }
 0xe7e   : > { %v3956_v62 = vpack.c.bf16 %v3944_v55, %v3940_v57  ;;  %v3958_v63 = vpack.c.bf16 %v3946_v59, %v3942_v54  ;;  %v6180_v35 = vld [vmem:[%s8140_s24 + $0x170] ss:$8 sps:$4 sm:$0xff]   ;;  %v6185_v7 = vld [vmem:[%s8140_s24 + $0x184] ss:$8 sps:$4 sm:$0xff]   ;;  %v6183_v18 = vld [vmem:[%s8140_s24 + $0x180] ss:$8 sps:$4 sm:$0xff]  }
 0xe7f   : > { %v3877_v3 = vpop.f32.mrb[68].mxu1  ;;  %v3930_v4 = vpop.f32.mrb[36].mxu0  ;;  %v6188_v53 = vld [vmem:[%s8140_s24 + $0x194] ss:$8 sps:$4 sm:$0xff]   ;;  %v6186_v57 = vld [vmem:[%s8140_s24 + $0x190] ss:$8 sps:$4 sm:$0xff]  }
 0xe80   : > { %v3878_v1 = vadd.f32 %v3877_v3, %v3496_v50  ;;  %v3931_v5 = vadd.f32 %v3930_v4, %v3504_v16  ;;  %v3879_v8 = vpop.f32.mrb[69].mxu1  ;;  %v3932_v9 = vpop.f32.mrb[37].mxu0  ;;  %4391 = vmatprep.mubr.bf16.mxu1 %v3956_v62  ;;  %v6191_v54 = vld [vmem:[%s8140_s24 + $0x1a4] ss:$8 sps:$4 sm:$0xff]   ;;  %v6189_v55 = vld [vmem:[%s8140_s24 + $0x1a0] ss:$8 sps:$4 sm:$0xff]  }
 0xe81   : > { %v3880_v51 = vadd.f32 %v3879_v8, %v3500_v27  ;;  %v3933_v6 = vadd.f32 %v3932_v9, %v3508_v29  ;;  %v3881_v17 = vpop.f32.mrb[70].mxu1  ;;  %v3934_v10 = vpop.f32.mrb[38].mxu0  ;;  %4392 = vmatmul.mubr.bf16.vlgmr.msra.gmra.mrb[72].mxu1 %v3955_v60  ;;  %v6194_v59 = vld [vmem:[%s8140_s24 + $0x1b4] ss:$8 sps:$4 sm:$0xff]   ;;  %v6192_v60 = vld [vmem:[%s8140_s24 + $0x1b0] ss:$8 sps:$4 sm:$0xff]  }
 0xe82   : > { %v3882_v40 = vadd.f32 %v3881_v17, %v3496_v50  ;;  %v3935_v49 = vadd.f32 %v3934_v10, %v3504_v16  ;;  %v3883_v11 = vpop.f32.mrb[71].mxu1  ;;  %v3936_v12 = vpop.f32.mrb[39].mxu0  ;;  %4413 = vmatpush1.bf16.msra.mxu1 %v6159_v2  ;;  %v3947_v20 = vmax.f32 %v3878_v1, 0.0  ;;  %v3949_v25 = vmax.f32 %v3931_v5, 0.0  ;;  %v6197_v62 = vld [vmem:[%s8140_s24 + $0x1c4] ss:$8 sps:$4 sm:$0xff]  }
 0xe83   : > { %v3884_v14 = vadd.f32 %v3883_v11, %v3500_v27  ;;  %v3937_v0 = vadd.f32 %v3936_v12, %v3508_v29  ;;  %4414 = vmatprep.subr.bf16.mxu1 %v6164_v52  ;;  %v3948_v45 = vmax.f32 %v3880_v51, 0.0  ;;  %v3950_v28 = vmax.f32 %v3933_v6, 0.0  ;;  %v6200_v2 = vld [vmem:[%s8140_s24 + $0x1d4] ss:$8 sps:$4 sm:$0xff]   ;;  %v6198_v3 = vld [vmem:[%s8140_s24 + $0x1d0] ss:$8 sps:$4 sm:$0xff]  }
 0xe84   : > { %v3951_v32 = vmax.f32 %v3882_v40, 0.0  ;;  %v3953_v34 = vmax.f32 %v3935_v49, 0.0  ;;  %v6203_v4 = vld [vmem:[%s8140_s24 + $0x1e4] ss:$8 sps:$4 sm:$0xff]   ;;  %v6201_v52 = vld [vmem:[%s8140_s24 + $0x1e0] ss:$8 sps:$4 sm:$0xff]  }
 0xe85   : > { %v3952_v31 = vmax.f32 %v3884_v14, 0.0  ;;  %v3954_v50 = vmax.f32 %v3937_v0, 0.0  ;;  %v6206_v1 = vld [vmem:[%s8140_s24 + $0x1f4] ss:$8 sps:$4 sm:$0xff]   ;;  %v6204_v5 = vld [vmem:[%s8140_s24 + $0x1f0] ss:$8 sps:$4 sm:$0xff]  }
 0xe86   : > { %v3959_v16 = vpack.c.bf16 %v3951_v32, %v3947_v20  ;;  %v7838_v36 = vpack.c.bf16 %v3953_v34, %v3949_v25  ;;  %4415 = vmatpush1.bf16.msra.mxu1 %v6162_v13  ;;  %v4027_v8 = vld [vmem:[%s1038_s25] sm:$0x3] }
 0xe87   : > { %v3960_v27 = vpack.c.bf16 %v3952_v31, %v3948_v45  ;;  %v3962_v29 = vpack.c.bf16 %v3954_v50, %v3950_v28  ;;  %4416 = vmatprep.subr.bf16.mxu1 %v6167_v19  ;;  %v4032_v9 = vrot.slane %v4027_v8, %v7353_v24  ;;  %v4036_v51 = vrot.slane %v4027_v8, %v7361_v23 }
 0xe89   : > { %4401 = vmatprep.mubr.bf16.mxu1 %v3960_v27 }
 0xe8a   : > { %4402 = vmatmul.mubr.bf16.gmra.mrb[76].mxu1 %v3959_v16 }
 0xe8b   : > { %4417 = vmatpush1.bf16.msra.mxu1 %v6165_v21  ;;  %4444 = vmatprep.mubr.bf16.mxu1 %v3958_v63  ;;  %v6195_v63 = vld [vmem:[%s8140_s24 + $0x1c0] ss:$8 sps:$4 sm:$0xff]  }
 0xe8c   : > { %4418 = vmatprep.subr.bf16.mxu1 %v6170_v33 }
 0xe8f   : > { %4419 = vmatpush1.bf16.msra.mxu1 %v6168_v37 }
 0xe90   : > { %4420 = vmatprep.subr.bf16.mxu1 %v6173_v38 }
 0xe93   : > { %4421 = vmatpush1.bf16.msra.mxu1 %v6171_v39 }
 0xe94   : > { %4422 = vmatprep.subr.bf16.mxu1 %v6176_v42 }
 0xe97   : > { %4423 = vmatpush1.bf16.msra.mxu1 %v6174_v43 }
 0xe98   : > { %4424 = vmatprep.subr.bf16.mxu1 %v6179_v22 }
 0xe9b   : > { %4425 = vmatpush1.bf16.msra.mxu1 %v6177_v30 }
 0xe9c   : > { %4426 = vmatprep.subr.bf16.mxu1 %v6182_v44 }
 0xe9f   : > { %4427 = vmatpush1.bf16.msra.mxu1 %v6180_v35 }
 0xea0   : > { %4428 = vmatprep.subr.bf16.mxu1 %v6185_v7 }
 0xea3   : > { %4429 = vmatpush1.bf16.msra.mxu1 %v6183_v18 }
 0xea4   : > { %4430 = vmatprep.subr.bf16.mxu1 %v6188_v53 }
 0xea7   : > { %4431 = vmatpush1.bf16.msra.mxu1 %v6186_v57 }
 0xea8   : > { %4432 = vmatprep.subr.bf16.mxu1 %v6191_v54 }
 0xeab   : > { %4433 = vmatpush1.bf16.msra.mxu1 %v6189_v55 }
 0xeac   : > { %4434 = vmatprep.subr.bf16.mxu1 %v6194_v59 }
 0xeaf   : > { %4435 = vmatpush1.bf16.msra.mxu1 %v6192_v60 }
 0xeb0   : > { %4436 = vmatprep.subr.bf16.mxu1 %v6197_v62 }
 0xeb3   : > { %4437 = vmatpush1.bf16.msra.mxu1 %v6195_v63 }
 0xeb4   : > { %4438 = vmatprep.subr.bf16.mxu1 %v6200_v2 }
 0xeb7   : > { %4439 = vmatpush1.bf16.msra.mxu1 %v6198_v3 }
 0xeb8   : > { %4440 = vmatprep.subr.bf16.mxu1 %v6203_v4 }
 0xebb   : > { %4441 = vmatpush1.bf16.msra.mxu1 %v6201_v52 }
 0xebc   : > { %4442 = vmatprep.subr.bf16.mxu1 %v6206_v1 }
 0xebf   : > { %4443 = vmatpush1.bf16.msra.mxu1 %v6204_v5 }
 0xec2   : > { %4445 = vmatmul.mubr.bf16.vlgmr.msra.gmra.mrb[72].mxu1 %v7832_v61 }
 0xec3   : > { %4454 = vmatprep.mubr.bf16.mxu1 %v3962_v29 }
 0xeca   : > { %4455 = vmatmul.mubr.bf16.gmra.mrb[76].mxu1 %v7838_v36 }
 0xf95   : > { %v4446_v6 = vpop.f32.mrb[72].mxu1 }
 0xf96   : > { %v5642_v17 = vadd.f32 %v4446_v6, %v4032_v9  ;;  %v4448_v10 = vpop.f32.mrb[73].mxu1 }
 0xf97   : > { %v5643_v40 = vadd.f32 %v4448_v10, %v4036_v51  ;;  %v4450_v49 = vpop.f32.mrb[74].mxu1 }
 0xf98   : > { %v7877_v11 = vadd.f32 %v5642_v17, %v7771_v56  ;;  %v5644_v61 = vadd.f32 %v4450_v49, %v4032_v9  ;;  %v4452_v12 = vpop.f32.mrb[75].mxu1 }
 0xf99   : > { %v7880_v13 = vadd.f32 %v5643_v40, %v7767_v26  ;;  %v5645_v14 = vadd.f32 %v4452_v12, %v4036_v51 }
 0xf9a   : > { %v7883_v0 = vadd.f32 %v5644_v61, %v7773_v58  ;;  %v4491_v25 = vmul.f32 %v7877_v11, %v7877_v11 }
 0xf9b   : > { %v7886_v19 = vadd.f32 %v5645_v14, %v7769_v15  ;;  %v4475_v20 = vadd.f32 %v7880_v13, %v7877_v11  ;;  %v4492_v56 = vmul.f32 %v7880_v13, %v7880_v13  ;;  %v4473_v14 = vld [vmem:[%s1042_s10] sm:$0x3] }
 0xf9c   : > { %v4493_v58 = vmul.f32 %v7883_v0, %v7883_v0 }
 0xf9d   : > { %v4456_v32 = vpop.f32.mrb[76].mxu1  ;;  %4476 = vadd.xlane.f32.xlu0 %v4475_v20  ;;  %v4478_v26 = vadd.f32 %v7886_v19, %v7883_v0  ;;  %v4494_v15 = vmul.f32 %v7886_v19, %v7886_v19  ;;  %v4499_v50 = vadd.f32 %v4492_v56, %v4491_v25  ;;  %v4474_v56 = vld [vmem:[%s1046_s13] sm:$0x3] }
 0xf9e   : > { %v5646_v34 = vadd.f32 %v4456_v32, %v4032_v9  ;;  %v4458_v45 = vpop.f32.mrb[77].mxu1 }
 0xf9f   : > { %v5647_v28 = vadd.f32 %v4458_v45, %v4036_v51  ;;  %v4460_v31 = vpop.f32.mrb[78].mxu1  ;;  %4479 = vadd.xlane.f32.xlu1 %v4478_v26  ;;  %v4502_v33 = vadd.f32 %v4494_v15, %v4493_v58  ;;  %v4555_v15 = vrot.slane %v4473_v14, %v7353_v24 }
 0xfa0   : > { %v7901_v16 = vadd.f32 %v5646_v34, %v7789_v47  ;;  %v5648_v36 = vadd.f32 %v4460_v31, %v4032_v9  ;;  %v4462_v27 = vpop.f32.mrb[79].mxu1  ;;  %v4559_v34 = vrot.slane %v4473_v14, %v7361_v23  ;;  %v4578_v31 = vrot.slane %v4474_v56, %v7361_v23 }
 0xfa1   : > { %v7904_v29 = vadd.f32 %v5647_v28, %v7787_v46  ;;  %v5649_v21 = vadd.f32 %v4462_v27, %v4036_v51  ;;  %4500 = vadd.xlane.f32.xlu0 %v4499_v50  ;;  %v4574_v28 = vrot.slane %v4474_v56, %v7353_v24 }
 0xfa2   : > { %v7907_v37 = vadd.f32 %v5648_v36, %v7793_v41  ;;  %v4495_v47 = vmul.f32 %v7901_v16, %v7901_v16 }
 0xfa3   : > { %v7910_v38 = vadd.f32 %v5649_v21, %v7791_v48  ;;  %4503 = vadd.xlane.f32.xlu1 %v4502_v33  ;;  %v4481_v39 = vadd.f32 %v7904_v29, %v7901_v16  ;;  %v4496_v46 = vmul.f32 %v7904_v29, %v7904_v29 }
 0xfa4   : > { %v4497_v41 = vmul.f32 %v7907_v37, %v7907_v37 }
 0xfa5   : > { %4482 = vadd.xlane.f32.xlu0 %v4481_v39  ;;  %v4484_v42 = vadd.f32 %v7910_v38, %v7907_v37  ;;  %v4498_v48 = vmul.f32 %v7910_v38, %v7910_v38  ;;  %v4505_v43 = vadd.f32 %v4496_v46, %v4495_v47 }
 0xfa7   : > { %4485 = vadd.xlane.f32.xlu1 %v4484_v42  ;;  %v4508_v22 = vadd.f32 %v4498_v48, %v4497_v41 }
 0xfa9   : > { %4506 = vadd.xlane.f32.xlu0 %v4505_v43 }
 0xfab   : > { %4509 = vadd.xlane.f32.xlu1 %v4508_v22 }
0x102a   : > { %v4477_v30 = vpop.xlane.xlu0 %4476 }
0x102b   : > { %v4487_v44 = vmul.f32 0.00390625, %v4477_v30 }
0x102c   : > { %v4480_v35 = vpop.xlane.xlu1 %4479 }
0x102d   : > { %v4488_v7 = vmul.f32 0.00390625, %v4480_v35  ;;  %v4515_v53 = vmul.f32 %v4487_v44, %v4487_v44  ;;  %v4527_v26 = vsub.f32 %v7877_v11, %v4487_v44  ;;  %v4528_v58 = vsub.f32 %v7880_v13, %v4487_v44 }
0x102e   : > { %v4501_v18 = vpop.xlane.xlu0 %4500 }
0x102f   : > { %v4511_v57 = vmul.f32 0.00390625, %v4501_v18  ;;  %v4516_v59 = vmul.f32 %v4488_v7, %v4488_v7  ;;  %v4529_v50 = vsub.f32 %v7883_v0, %v4488_v7  ;;  %v4530_v36 = vsub.f32 %v7886_v19, %v4488_v7 }
0x1030   : > { %v4504_v54 = vpop.xlane.xlu1 %4503 }
0x1031   : > { %v4519_v55 = vsub.f32 %v4511_v57, %v4515_v53  ;;  %v4512_v60 = vmul.f32 0.00390625, %v4504_v54 }
0x1032   : > { %v4483_v62 = vpop.xlane.xlu0 %4482 }
0x1033   : > { %v4523_v63 = vmax.f32 %v4519_v55, 0.0  ;;  %v4520_v2 = vsub.f32 %v4512_v60, %v4516_v59  ;;  %v4489_v3 = vmul.f32 0.00390625, %v4483_v62 }
0x1034   : > { %v4486_v4 = vpop.xlane.xlu1 %4485 }
0x1035   : > { %v4535_v52 = vadd.f32 1e-05, %v4523_v63  ;;  %v4524_v1 = vmax.f32 %v4520_v2, 0.0  ;;  %v4490_v5 = vmul.f32 0.00390625, %v4486_v4  ;;  %v4517_v51 = vmul.f32 %v4489_v3, %v4489_v3 }
0x1036   : > { %v4507_v8 = vpop.xlane.xlu0 %4506  ;;  %v4531_v43 = vsub.f32 %v7901_v16, %v4489_v3  ;;  %v4532_v0 = vsub.f32 %v7904_v29, %v4489_v3 }
0x1037   : > { %6279 = vrsqrt.f32 %v4535_v52  ;;  %v4536_v9 = vadd.f32 1e-05, %v4524_v1  ;;  %v4513_v6 = vmul.f32 0.00390625, %v4507_v8  ;;  %v4518_v40 = vmul.f32 %v4490_v5, %v4490_v5 }
0x1038   : > { %v4510_v17 = vpop.xlane.xlu1 %4509  ;;  %v4533_v22 = vsub.f32 %v7907_v37, %v4490_v5  ;;  %v4534_v30 = vsub.f32 %v7910_v38, %v4490_v5 }
0x1039   : > { %6281 = vrsqrt.f32 %v4536_v9  ;;  %v4521_v10 = vsub.f32 %v4513_v6, %v4517_v51  ;;  %v4514_v49 = vmul.f32 0.00390625, %v4510_v17 }
0x103b   : > { %v4525_v61 = vmax.f32 %v4521_v10, 0.0  ;;  %v4522_v12 = vsub.f32 %v4514_v49, %v4518_v40 }
0x103d   : > { %v4537_v20 = vadd.f32 1e-05, %v4525_v61  ;;  %v4526_v25 = vmax.f32 %v4522_v12, 0.0 }
0x103f   : > { %6283 = vrsqrt.f32 %v4537_v20  ;;  %v4538_v32 = vadd.f32 1e-05, %v4526_v25 }
0x1041   : > { %v6280_v45 = vpop.eup %6279  ;;  %6285 = vrsqrt.f32 %v4538_v32 }
0x1042   : > { %v4543_v27 = vmul.f32 %v6280_v45, %v4527_v26  ;;  %v4544_v21 = vmul.f32 %v6280_v45, %v4528_v58 }
0x1043   : > { %v6282_v33 = vpop.eup %6281 }
0x1044   : > { %v4562_v11 = vmul.f32 %v4555_v15, %v4543_v27  ;;  %v4563_v39 = vmul.f32 %v4559_v34, %v4544_v21  ;;  %v4545_v13 = vmul.f32 %v6282_v33, %v4529_v50  ;;  %v4546_v47 = vmul.f32 %v6282_v33, %v4530_v36 }
0x1046   : > { %v7942_v46 = vadd.f32 %v4574_v28, %v4562_v11  ;;  %v4582_v42 = vadd.f32 %v4578_v31, %v4563_v39  ;;  %v4564_v41 = vmul.f32 %v4555_v15, %v4545_v13  ;;  %v4565_v48 = vmul.f32 %v4559_v34, %v4546_v47 }
0x1048   : > { %v7944_v24 = vadd.f32 %v4574_v28, %v4564_v41  ;;  %v4584_v23 = vadd.f32 %v4578_v31, %v4565_v48  ;;  %4593 = vst [vmem:[#allocation2] sm:$0xff] (!%p5456_p3), %v7942_v46  ;;  %4594 = vst [vmem:[#allocation2 + $0x8] sm:$0xff] (!%p5456_p3), %v4582_v42 }
0x1049   : > { %v6284_v19 = vpop.eup %6283 }
0x104a   : > { %v4547_v44 = vmul.f32 %v6284_v19, %v4531_v43  ;;  %v4548_v35 = vmul.f32 %v6284_v19, %v4532_v0  ;;  %4592 = sbr.rel (%p5456_p3) target bundleno = 4179 (0x1053), region = 140  ;;  %4595 = vst [vmem:[#allocation2 + $0x10] sm:$0xff] (!%p5456_p3), %v7944_v24  ;;  %4596 = vst [vmem:[#allocation2 + $0x18] sm:$0xff] (!%p5456_p3), %v4584_v23 }
0x104b   : > { %v6286_v7 = vpop.eup %6285 }
0x104c   : > { %v4566_v18 = vmul.f32 %v4555_v15, %v4547_v44  ;;  %v4567_v53 = vmul.f32 %v4559_v34, %v4548_v35  ;;  %v4549_v57 = vmul.f32 %v6286_v7, %v4533_v22  ;;  %v4550_v54 = vmul.f32 %v6286_v7, %v4534_v30 }
0x104e   : > { %v7950_v55 = vadd.f32 %v4574_v28, %v4566_v18  ;;  %v4586_v59 = vadd.f32 %v4578_v31, %v4567_v53  ;;  %v4568_v60 = vmul.f32 %v4555_v15, %v4549_v57  ;;  %v4569_v62 = vmul.f32 %v4559_v34, %v4550_v54 }
0x1050   : > { %v7952_v16 = vadd.f32 %v4574_v28, %v4568_v60  ;;  %v4588_v29 = vadd.f32 %v4578_v31, %v4569_v62  ;;  %4597 = vst [vmem:[#allocation2 + $0x20] sm:$0xff] (!%p5456_p3), %v7950_v55  ;;  %4598 = vst [vmem:[#allocation2 + $0x28] sm:$0xff] (!%p5456_p3), %v4586_v59 }
0x1052   : > { %4599 = vst [vmem:[#allocation2 + $0x30] sm:$0xff] %v7952_v16  ;;  %4600 = vst [vmem:[#allocation2 + $0x38] sm:$0xff] %v4588_v29 }
0x1053 PF: > { %s8147_s10 = sld [smem:[#allocation28_spill]] }
0x1059   : > { %p5457_p1 = scmp.ne.s32.totalorder %s8147_s10, 1 }
0x105a   : > { %v6295_v37 = vld [vmem:[#allocation17 + $0x40] sm:$0xff] (!%p5457_p1)   ;;  %v4606_v63 = vpack.c.bf16 (!%p5457_p1), %v4584_v23, %v4582_v42  ;;  %v4608_v2 = vpack.c.bf16 (!%p5457_p1), %v4588_v29, %v4586_v59  ;;  %v6297_v3 = vld [vmem:[#allocation17 + $0x48] sm:$0xff] (!%p5457_p1)   ;;  %v6299_v52 = vld [vmem:[#allocation17 + $0x50] sm:$0xff] (!%p5457_p1)   ;;  %v4605_v12 = vpack.c.bf16 (!%p5457_p1), %v7944_v24, %v7942_v46  ;;  %v4607_v14 = vpack.c.bf16 (!%p5457_p1), %v7952_v16, %v7950_v55  ;;  %s8148_s30 = sld [smem:[#allocation53_spill]] (!%p5457_p1) }
0x105b   : > { %4604 = sbr.rel (%p5457_p1) target bundleno = 4439 (0x1157), region = 144  ;;  %v6296_v38 = vld [vmem:[#allocation17] sm:$0xff] (!%p5457_p1)   ;;  %5518 = vmatprep.subr.bf16.mxu0 (!%p5457_p1), %v6295_v37  ;;  %5682 = vmatprep.subr.bf16.mxu1 (!%p5457_p1), %v6295_v37  ;;  %v6298_v4 = vld [vmem:[#allocation17 + $0x8] sm:$0xff] (!%p5457_p1)   ;;  %v6300_v1 = vld [vmem:[#allocation17 + $0x10] sm:$0xff] (!%p5457_p1)  }
0x105c   : > { %5519 = vmatpush3.bf16.msra.mxu0 (!%p5457_p1), %v6296_v38  ;;  %5690 = vmatpush3.bf16.msra.mxu1 (!%p5457_p1), %v6296_v38  ;;  %v6301_v5 = vld [vmem:[#allocation17 + $0x58] sm:$0xff] (!%p5457_p1)   ;;  %v6303_v9 = vld [vmem:[#allocation17 + $0x60] sm:$0xff] (!%p5457_p1)   ;;  %v6305_v6 = vld [vmem:[#allocation17 + $0x68] sm:$0xff] (!%p5457_p1)  }
0x105d   : > { %5520 = vmatprep.subr.bf16.mxu0 (!%p5457_p1), %v6297_v3  ;;  %5683 = vmatprep.subr.bf16.mxu1 (!%p5457_p1), %v6297_v3  ;;  %v6302_v8 = vld [vmem:[#allocation17 + $0x18] sm:$0xff] (!%p5457_p1)   ;;  %v6304_v51 = vld [vmem:[#allocation17 + $0x20] sm:$0xff] (!%p5457_p1)   ;;  %v6306_v17 = vld [vmem:[#allocation17 + $0x28] sm:$0xff] (!%p5457_p1)  }
0x105e   : > { %4776 = vmatprep.mubr.bf16.mxu0 (!%p5457_p1), %v4606_v63  ;;  %4784 = vmatprep.mubr.bf16.mxu1 (!%p5457_p1), %v4608_v2  ;;  %v6307_v10 = vld [vmem:[#allocation17 + $0x70] sm:$0xff] (!%p5457_p1)   ;;  %v6309_v49 = vld [vmem:[#allocation17 + $0x78] sm:$0xff] (!%p5457_p1)  }
0x105f   : > { %v6308_v40 = vld [vmem:[#allocation17 + $0x30] sm:$0xff] (!%p5457_p1)   ;;  %v6310_v61 = vld [vmem:[#allocation17 + $0x38] sm:$0xff] (!%p5457_p1)  }
0x1060   : > { %5521 = vmatpush3.bf16.msra.mxu0 (!%p5457_p1), %v6298_v4  ;;  %5691 = vmatpush3.bf16.msra.mxu1 (!%p5457_p1), %v6298_v4  ;;  %v5458_v56 = vld [vmem:[%s8148_s30] ss:$0 sm:$0xff] (!%p5457_p1) }
0x1061   : > { %5522 = vmatprep.subr.bf16.mxu0 (!%p5457_p1), %v6299_v52  ;;  %5684 = vmatprep.subr.bf16.mxu1 (!%p5457_p1), %v6299_v52 }
0x1064   : > { %5523 = vmatpush3.bf16.msra.mxu0 %v6300_v1  ;;  %5692 = vmatpush3.bf16.msra.mxu1 %v6300_v1 }
0x1065   : > { %5524 = vmatprep.subr.bf16.mxu0 %v6301_v5  ;;  %5685 = vmatprep.subr.bf16.mxu1 %v6301_v5 }
0x1068   : > { %5525 = vmatpush3.bf16.msra.mxu0 %v6302_v8  ;;  %5693 = vmatpush3.bf16.msra.mxu1 %v6302_v8 }
0x1069   : > { %5526 = vmatprep.subr.bf16.mxu0 %v6303_v9  ;;  %5686 = vmatprep.subr.bf16.mxu1 %v6303_v9 }
0x106c   : > { %5527 = vmatpush3.bf16.msra.mxu0 %v6304_v51  ;;  %5694 = vmatpush3.bf16.msra.mxu1 %v6304_v51 }
0x106d   : > { %5528 = vmatprep.subr.bf16.mxu0 %v6305_v6  ;;  %5687 = vmatprep.subr.bf16.mxu1 %v6305_v6 }
0x1070   : > { %5529 = vmatpush3.bf16.msra.mxu0 %v6306_v17  ;;  %5695 = vmatpush3.bf16.msra.mxu1 %v6306_v17 }
0x1071   : > { %5530 = vmatprep.subr.bf16.mxu0 %v6307_v10  ;;  %5688 = vmatprep.subr.bf16.mxu1 %v6307_v10 }
0x1074   : > { %5531 = vmatpush3.bf16.msra.mxu0 %v6308_v40  ;;  %5696 = vmatpush3.bf16.msra.mxu1 %v6308_v40 }
0x1075   : > { %5532 = vmatprep.subr.bf16.mxu0 %v6309_v49  ;;  %5689 = vmatprep.subr.bf16.mxu1 %v6309_v49 }
0x1078   : > { %5533 = vmatpush3.bf16.msra.mxu0 %v6310_v61  ;;  %5697 = vmatpush3.bf16.msra.mxu1 %v6310_v61 }
0x107b   : > { %4777 = vmatmul.mubr.bf16.vlgmr.msra.gmra.mrb[0].mxu0 %v4605_v12  ;;  %4785 = vmatmul.mubr.bf16.vlgmr.msra.gmra.mrb[0].mxu1 %v4607_v14 }
0x114e   : > { %v5534_v20 = vpop.f32.mrb[0].mxu0  ;;  %v5540_v25 = vpop.f32.mrb[0].mxu1 }
0x114f   : > { %v5535_v32 = vpop.f32.mrb[1].mxu0  ;;  %v5541_v26 = vpop.f32.mrb[1].mxu1 }
0x1150   : > { %v5536_v58 = vadd.f32 %v5535_v32, %v5534_v20  ;;  %v5542_v15 = vadd.f32 %v5541_v26, %v5540_v25  ;;  %v5537_v34 = vpop.f32.mrb[2].mxu0  ;;  %v5543_v45 = vpop.f32.mrb[2].mxu1 }
0x1151   : > { %v5538_v28 = vpop.f32.mrb[3].mxu0  ;;  %v5544_v31 = vpop.f32.mrb[3].mxu1 }
0x1152   : > { %v4779_v50 = vadd.f32 %v5536_v58, %v5458_v56  ;;  %v4787_v36 = vadd.f32 %v5542_v15, %v5458_v56  ;;  %v5539_v27 = vadd.f32 %v5538_v28, %v5537_v34  ;;  %v5545_v21 = vadd.f32 %v5544_v31, %v5543_v45 }
0x1154   : > { %4793 = vst [vmem:[#allocation18] sm:$0xff] %v4779_v50  ;;  %4795 = vst [vmem:[#allocation18 + $0x10] sm:$0xff] %v4787_v36  ;;  %v4782_v33 = vadd.f32 %v5539_v27, %v5458_v56  ;;  %v4790_v11 = vadd.f32 %v5545_v21, %v5458_v56 }
0x1156   : > { %4794 = vst [vmem:[#allocation18 + $0x8] sm:$0xff] %v4782_v33  ;;  %4796 = vst [vmem:[#allocation18 + $0x18] sm:$0xff] %v4790_v11 }
0x1157 PF: > { %s8149_s1 = sld [smem:[#allocation31_spill]]  ;;  %s6698_s2 = smov [#allocation18]  }
0x1158   : > { %s4806_s18 = sshll.u32 %s6698_s2, 4  ;;  %s4807_s18 = int_to_ptr.vmem [resolvable:$true] %s4806_s18 }
0x1159   : > { %s6577_s14 = scalar_lea.vmem %s4807_s18, 512  ;;  %p6584_p9 = scmp.lt.s32.totalorder %s4807_s18, %s4807_s18 }
0x115a   : > { %p6578_p12 = scmp.ne.s32.totalorder %s4807_s18, %s6577_s14  ;;  %p6585_p10 = scmp.lt.s32.totalorder %s6577_s14, %s6577_s14 }
0x115c   : > { %p6586_p11 = por %p6585_p10, %p6584_p9 }
0x115d   : > { %p5758_p13 = scmp.eq.s32.totalorder %s8149_s1, 1 }
0x115f   : > { %p6579_p4 = pnand %p6578_p12, %p5758_p13 }
0x1161   : > { %p6580_p5 = pneg %p6579_p4 }
0x1163   : > { %p6587_p7 = pnand %p6586_p11, %p6580_p5 }
0x1165   : > { %6590 = shalt.err (!%p6587_p7)
}
0x1166   : > { %s8150_s21 = sld [smem:[#allocation54_spill]] }
0x116c   : > { %s8151_s15 = smov %s8150_s21  ;;  %s6591_s0 = scalar_lea.hbm %s8150_s21, 512 }
0x116d   : > { %p6592_p6 = scmp.ne.s32.totalorder %s8151_s15, %s6591_s0  ;;  %p6597_p2 = scmp.lt.u32.totalorder %s6591_s0, %s8151_s15 }
0x116f   : > { %p6593_p8 = pnand %p6592_p6, %p5758_p13 }
0x1171   : > { %p6594_p0 = pneg %p6593_p8 }
0x1173   : > { %p6599_p3 = pnand %p6597_p2, %p6594_p0 }
0x1175   : > { %6602 = shalt.err (!%p6599_p3)
}
0x1176   : > { %s6699_s27 = smov 128   ;;  %s6700_s3 = smov 8  }
0x1177   : > { %5721 = dma.vmem_to_hbm [thread:$0]  (%p5758_p13), %s4807_s18, 512, %s8151_s15, [#allocation5], %s6699_s27, %s6699_s27, %s6700_s3  }
0x1178   : > { %6652 = dma.done.wait (%p5758_p13), [#allocation5], 512  }
0x1179   : > { %6654 = vsyncadd (%p5758_p13), [#allocation5], 4294966784 }
0x117a PF: > { %s8152_s16 = sld [smem:[#allocation30_spill]]  ;;  %s8153_s0 = sld [smem:[#allocation26_spill]] }
0x117b   : > { %s8154_s30 = sld [smem:[#allocation27_spill]]  ;;  %s8155_s20 = sld [smem:[#allocation33_spill]] }
0x117c   : > { %s8156_s21 = sld [smem:[#allocation29_spill]]  ;;  %s8157_s1 = sld [smem:[#allocation32_spill]] }
0x1180   : > { %s43_s22 = sadd.s32 1, %s8152_s16  }
0x1181   : > { %p40_p1 = scmp.ge.s32.totalorder %s43_s22, 4  }
0x1183   :  { %42 = sbr.rel (!%p40_p1) target bundleno = 33 (0x21), region = 255 }
0x118a   :  { %4822 = vsyncpa [#allocation4], 1 }
0x118b   :  { %4824 = vsyncpa [#allocation4 + $0x1], 1 }
0x118c   :  { %4825 = vsyncpa [#allocation7], 1 }
0x118d   :  { %4827 = vsyncpa [#allocation7 + $0x1], 1 }
0x118e   :  { %4828 = vsyncpa [#allocation10], 1 }
0x118f   :  { %4830 = vsyncpa [#allocation10 + $0x1], 1 }
0x1190   :  { %4831 = vsyncpa [#allocation13], 1 }
0x1191   :  { %4833 = vsyncpa [#allocation13 + $0x1], 1 }
0x1192   :  { %4834 = vsyncpa [#allocation16], 1 }
0x1193   :  { %4836 = vsyncpa [#allocation16 + $0x1], 1 }
0x1194   :  { %4837 = vsyncpa [#allocation5], 1 }
0x1195   :  { %4839 = vsyncpa [#allocation5 + $0x1], 1 }

</bundles_post_ra>
